<compile_context>
chip_gen: v7x
topology: tpu7x:2x2x1
jax: 0.10.0
libtpu: 0.0.40
codegen_flags: <defaults>
</compile_context>

<pallas_src>
import math
import functools

import jax
import jax.numpy as jnp
from jax.experimental import pallas as pl
from jax.experimental.pallas import tpu as pltpu

LN_EPS = 1e-5


def _round_up(n, m):
    return ((n + m - 1) // m) * m


def _layer_norm(y, gamma, beta):
    mean = jnp.mean(y, axis=-1, keepdims=True)
    centered = y - mean
    var = jnp.mean(centered * centered, axis=-1, keepdims=True)
    return centered * jax.lax.rsqrt(var + LN_EPS) * gamma + beta


def _attention_block_kernel(
    x_ref,            # (1, S, D)
    wqkv_ref,         # (D, 3*D) bf16   (Q columns pre-scaled by 1/sqrt(hd))
    wo_ref,           # (D, D)   bf16   (= wo.T)
    w1_ref,           # (D, Dff) bf16
    w2_ref,           # (Dff, D) bf16
    misc_ref,         # (8, W)   f32 slab: [b_qkv | bf1 | bo | g1 | be1 | bf2 | g2 | be2]
    o_ref,            # (1, S, D)
    *, nhead: int,
):
    x_in = x_ref[0]
    S, D = x_in.shape
    Dff = w1_ref.shape[1]
    hd = D // nhead

    x_f32 = x_in.astype(jnp.float32)     # residual / LayerNorm math in f32
    x_bf = x_in.astype(jnp.bfloat16)     # MXU operands in bf16

    # Single hoisted load of the packed small-parameter slab; 2-D row slices broadcast.
    misc = misc_ref[...]
    b_qkv = misc[0:1, :3 * D]
    b_f1 = misc[1:2, :Dff]
    b_o = misc[2:3, :D]
    g1 = misc[3:4, :D]
    be1 = misc[4:5, :D]
    b_f2 = misc[5:6, :D]
    g2 = misc[6:7, :D]
    be2 = misc[7:8, :D]

    # --- Fused QKV: one lane-dense (S,D)@(D,3D) MXU pass; scale already folded in -----
    qkv = jnp.dot(x_bf, wqkv_ref[...], preferred_element_type=jnp.float32) + b_qkv
    q = qkv[:, 0 * D:1 * D].astype(jnp.bfloat16)      # 128-aligned column slices
    k = qkv[:, 1 * D:2 * D].astype(jnp.bfloat16)
    v = qkv[:, 2 * D:3 * D].astype(jnp.bfloat16)

    # --- Per-head attention (scores contraction is inherently K=hd) ---------------------
    trans_b = (((1,), (1,)), ((), ()))                 # q @ k.T without an explicit .T
    ctx_heads = []
    for h in range(nhead):
        sl = slice(h * hd, (h + 1) * hd)
        qh, kh, vh = q[:, sl], k[:, sl], v[:, sl]
        s = jax.lax.dot_general(qh, kh, trans_b, preferred_element_type=jnp.float32)
        s = s - jnp.max(s, axis=-1, keepdims=True)     # denom >= 1 => approx recip safe
        p = jnp.exp(s)
        p = p * pl.reciprocal(jnp.sum(p, axis=-1, keepdims=True), approx=True)
        ctx_heads.append(
            jnp.dot(p.astype(jnp.bfloat16), vh, preferred_element_type=jnp.float32))
    ctx = jnp.concatenate(ctx_heads, axis=-1)          # (S, D) f32, head-major lanes

    # --- Fused out-projection: (S, H*hd) @ (D, D); head reduction inside the MXU --------
    attn = jnp.dot(ctx.astype(jnp.bfloat16), wo_ref[...],
                   preferred_element_type=jnp.float32) + b_o

    x1 = _layer_norm(x_f32 + attn, g1, be1)

    # --- Feed-forward --------------------------------------------------------------------
    h1 = jnp.dot(x1.astype(jnp.bfloat16), w1_ref[...],
                 preferred_element_type=jnp.float32) + b_f1
    h1 = jnp.maximum(h1, 0.0)
    ff = jnp.dot(h1.astype(jnp.bfloat16), w2_ref[...],
                 preferred_element_type=jnp.float32) + b_f2

    x2 = _layer_norm(x1 + ff, g2, be2)
    o_ref[0] = x2.astype(o_ref.dtype)


def _prepare_params(params, nhead, compute_dtype=jnp.bfloat16):
    """One-time (load-time, outside jit) weight re-layout: transposed, bf16, scale-folded,
    small f32 params packed into a single (8, W) slab."""
    (wq, wk, wv, bq, bk, bv, wo, bo,
     g1, be1, w1, bf1, w2, bf2, g2, be2) = params
    d_model = wq.shape[0]
    if d_model % nhead != 0:
        raise ValueError(f"d_model={d_model} must be divisible by nhead={nhead}")
    hd = d_model // nhead
    d_ff = w1.shape[0]
    scale = 1.0 / math.sqrt(hd)

    # (D, 3D): columns ordered [q heads | k heads | v heads]; softmax scale folded into Q.
    wqkv = jnp.concatenate([wq.T * scale, wk.T, wv.T], axis=1).astype(compute_dtype)
    wo_t = wo.T.astype(compute_dtype)                       # (D, D)
    w1_t = w1.T.astype(compute_dtype)                       # (D, Dff)
    w2_t = w2.T.astype(compute_dtype)                       # (Dff, D)

    b_qkv = jnp.concatenate(
        [bq.reshape(-1) * scale, bk.reshape(-1), bv.reshape(-1)]).astype(jnp.float32)

    W = _round_up(max(3 * d_model, d_ff), 128)
    slab = jnp.zeros((8, W), jnp.float32)
    slab = slab.at[0, :3 * d_model].set(b_qkv)
    slab = slab.at[1, :d_ff].set(bf1.reshape(-1).astype(jnp.float32))
    slab = slab.at[2, :d_model].set(bo.reshape(-1).astype(jnp.float32))
    slab = slab.at[3, :d_model].set(g1.reshape(-1).astype(jnp.float32))
    slab = slab.at[4, :d_model].set(be1.reshape(-1).astype(jnp.float32))
    slab = slab.at[5, :d_model].set(bf2.reshape(-1).astype(jnp.float32))
    slab = slab.at[6, :d_model].set(g2.reshape(-1).astype(jnp.float32))
    slab = slab.at[7, :d_model].set(be2.reshape(-1).astype(jnp.float32))

    return (wqkv, wo_t, w1_t, w2_t, slab)


def self_attention_block(x, prepared, nhead, *, single_buffer_weights=False):
    B, S, D = x.shape
    wqkv, wo_t, w1_t, w2_t, slab = prepared
    Dff = w1_t.shape[1]

    def const_spec(a):
        idx = lambda b, nd=a.ndim: (0,) * nd
        if single_buffer_weights:
            # Constant across the grid -> no need for double buffering (big VMEM win on v7x).
            return pl.BlockSpec(a.shape, idx, pipeline_mode=pl.Buffered(1))
        return pl.BlockSpec(a.shape, idx)

    in_specs = [pl.BlockSpec((1, S, D), lambda b: (b, 0, 0))] + [const_spec(a) for a in prepared]

    flops = 2 * B * S * D * (3 * D + D + 2 * Dff) + 4 * B * S * S * D
    transcendentals = B * nhead * S * S + 4 * B * S
    weight_bytes = sum(int(a.size) * a.dtype.itemsize for a in prepared)
    bytes_accessed = 2 * x.size * x.dtype.itemsize + weight_bytes

    # Right-sized VMEM request: weights (x buffering) + streamed in/out tiles + rough f32
    # intermediates, with 2x margin, floored at 32 MiB and capped at 48 MiB (v7x headroom).
    buf = 1 if single_buffer_weights else 2
    act_bytes = 4 * S * (3 * D + 4 * D + Dff)
    io_bytes = 2 * 2 * S * D * x.dtype.itemsize
    vmem_limit = min(48 * 1024 * 1024,
                     max(32 * 1024 * 1024, 2 * (buf * weight_bytes + act_bytes + io_bytes)))

    kernel = functools.partial(_attention_block_kernel, nhead=nhead)

    return pl.pallas_call(
        kernel,
        out_shape=jax.ShapeDtypeStruct((B, S, D), x.dtype),
        grid_spec=pltpu.PrefetchScalarGridSpec(
            num_scalar_prefetch=0,
            grid=(B,),
            in_specs=in_specs,
            out_specs=pl.BlockSpec((1, S, D), lambda b: (b, 0, 0)),
        ),
        compiler_params=pltpu.CompilerParams(
            dimension_semantics=("parallel",),
            vmem_limit_bytes=int(vmem_limit),
        ),
        cost_estimate=pl.CostEstimate(
            flops=int(flops),
            transcendentals=int(transcendentals),
            bytes_accessed=int(bytes_accessed),
        ),
    )(x, *prepared)


def reference_forward(x, params, nhead):
    """Pure-JAX f32 reference matching the PyTorch module (eval mode)."""
    (wq, wk, wv, bq, bk, bv, wo, bo,
     g1, be1, w1, bf1, w2, bf2, g2, be2) = params
    B, S, D = x.shape
    hd = D // nhead
    q = (x @ wq.T + bq).reshape(B, S, nhead, hd).transpose(0, 2, 1, 3)
    k = (x @ wk.T + bk).reshape(B, S, nhead, hd).transpose(0, 2, 1, 3)
    v = (x @ wv.T + bv).reshape(B, S, nhead, hd).transpose(0, 2, 1, 3)
    s = jnp.einsum("bhqe,bhke->bhqk", q, k) / math.sqrt(hd)
    p = jax.nn.softmax(s, axis=-1)
    ctx = jnp.einsum("bhqk,bhke->bhqe", p, v).transpose(0, 2, 1, 3).reshape(B, S, D)
    attn = ctx @ wo.T + bo
    x1 = _layer_norm(x + attn, g1, be1)
    ff = jnp.maximum(x1 @ w1.T + bf1, 0.0) @ w2.T + bf2
    return _layer_norm(x1 + ff, g2, be2)


def init_params(key, d_model):
    d_ff = 4 * d_model
    keys = jax.random.split(key, 8)
    scale = 0.02

    wq = scale * jax.random.normal(keys[0], (d_model, d_model), jnp.float32)
    wk = scale * jax.random.normal(keys[1], (d_model, d_model), jnp.float32)
    wv = scale * jax.random.normal(keys[2], (d_model, d_model), jnp.float32)
    bq = scale * jax.random.normal(keys[3], (1, d_model), jnp.float32)
    bk = jnp.zeros((1, d_model), jnp.float32)
    bv = scale * jax.random.normal(keys[4], (1, d_model), jnp.float32)

    wo = scale * jax.random.normal(keys[5], (d_model, d_model), jnp.float32)
    bo = jnp.zeros((1, d_model), jnp.float32)

    g1 = jnp.ones((1, d_model), jnp.float32)
    be1 = jnp.zeros((1, d_model), jnp.float32)

    w1 = scale * jax.random.normal(keys[6], (d_ff, d_model), jnp.float32)
    bf1 = jnp.zeros((1, d_ff), jnp.float32)
    w2 = scale * jax.random.normal(keys[7], (d_model, d_ff), jnp.float32)
    bf2 = jnp.zeros((1, d_model), jnp.float32)

    g2 = jnp.ones((1, d_model), jnp.float32)
    be2 = jnp.zeros((1, d_model), jnp.float32)

    return (wq, wk, wv, bq, bk, bv, wo, bo,
            g1, be1, w1, bf1, w2, bf2, g2, be2)


if __name__ == "__main__":
    B, S, D, NHEAD = 2, 8, 128, 4   # lane-dense d_model (multiple of 128), d_ff = 512
    key = jax.random.PRNGKey(0)
    kx, kp = jax.random.split(key)
    x = jax.random.normal(kx, (B, S, D), jnp.float32)
    params = init_params(kp, D)

    # One-time weight preparation, hoisted out of the jitted forward path.
    prepared = _prepare_params(params, NHEAD)

    def run(single_buffer):
        fn = jax.jit(functools.partial(self_attention_block, nhead=NHEAD,
                                       single_buffer_weights=single_buffer))
        return jax.block_until_ready(fn(x, prepared))

    try:
        out = run(True)
    except Exception:
        # Fallback if this jax build rejects pipeline_mode=pl.Buffered(1) on pallas_call
        # BlockSpecs: use default (double-buffered) weight blocks.
        out = run(False)

    assert out.shape == (B, S, D)

    ref = reference_forward(x, params, NHEAD)
    err = float(jnp.max(jnp.abs(out.astype(jnp.float32) - ref)))
    if not (bool(jnp.isfinite(out).all()) and err < 5e-2):
        raise SystemExit(f"numerical mismatch vs reference: max abs err={err}")
    print("KERNEL_OK")
</pallas_src>

<mosaic_0001>
module attributes {stable_mosaic.version = 11 : i64} {
  func.func @_attention_block_kernel(%arg0: i32, %arg1: memref<1x8x128xf32, #tpu.memory_space<vmem>>, %arg2: memref<128x384xbf16, #tpu.memory_space<vmem>>, %arg3: memref<128x128xbf16, #tpu.memory_space<vmem>>, %arg4: memref<128x512xbf16, #tpu.memory_space<vmem>>, %arg5: memref<512x128xbf16, #tpu.memory_space<vmem>>, %arg6: memref<8x512xf32, #tpu.memory_space<vmem>>, %arg7: memref<1x8x128xf32, #tpu.memory_space<vmem>>) attributes {dimension_semantics = [#tpu.dimension_semantics<parallel>], iteration_bounds = array<i64: 2>, scalar_prefetch = 0 : i64, scratch_operands = 0 : i64, tpu.core_type = #tpu.core_type<tc>, window_params = [{transform_indices = @transform_0, window_bounds = array<i64: 1, 8, 128>}, {pipeline_mode = #tpu.pipeline_mode<synchronous>, transform_indices = @transform_1, window_bounds = array<i64: 128, 384>}, {pipeline_mode = #tpu.pipeline_mode<synchronous>, transform_indices = @transform_2, window_bounds = array<i64: 128, 128>}, {pipeline_mode = #tpu.pipeline_mode<synchronous>, transform_indices = @transform_3, window_bounds = array<i64: 128, 512>}, {pipeline_mode = #tpu.pipeline_mode<synchronous>, transform_indices = @transform_4, window_bounds = array<i64: 512, 128>}, {pipeline_mode = #tpu.pipeline_mode<synchronous>, transform_indices = @transform_5, window_bounds = array<i64: 8, 512>}, {transform_indices = @transform_6, window_bounds = array<i64: 1, 8, 128>}]} {
    %c0 = arith.constant 0 : index
    %c0_0 = arith.constant 0 : index
    %c0_1 = arith.constant 0 : index
    %0 = vector.load %arg1[%c0, %c0_0, %c0_1] : memref<1x8x128xf32, #tpu.memory_space<vmem>>, vector<1x8x128xf32>
    %1 = vector.shape_cast %0 : vector<1x8x128xf32> to vector<8x128xf32>
    %2 = arith.truncf %1 : vector<8x128xf32> to vector<8x128xbf16>
    %c0_2 = arith.constant 0 : index
    %c0_3 = arith.constant 0 : index
    %3 = vector.load %arg6[%c0_2, %c0_3] : memref<8x512xf32, #tpu.memory_space<vmem>>, vector<8x512xf32>
    %4 = vector.extract_strided_slice %3 {offsets = [0, 0], sizes = [1, 384], strides = [1, 1]} : vector<8x512xf32> to vector<1x384xf32>
    %5 = vector.extract_strided_slice %3 {offsets = [1, 0], sizes = [1, 512], strides = [1, 1]} : vector<8x512xf32> to vector<1x512xf32>
    %6 = vector.extract_strided_slice %3 {offsets = [2, 0], sizes = [1, 128], strides = [1, 1]} : vector<8x512xf32> to vector<1x128xf32>
    %7 = vector.extract_strided_slice %3 {offsets = [3, 0], sizes = [1, 128], strides = [1, 1]} : vector<8x512xf32> to vector<1x128xf32>
    %8 = vector.extract_strided_slice %3 {offsets = [4, 0], sizes = [1, 128], strides = [1, 1]} : vector<8x512xf32> to vector<1x128xf32>
    %9 = vector.extract_strided_slice %3 {offsets = [5, 0], sizes = [1, 128], strides = [1, 1]} : vector<8x512xf32> to vector<1x128xf32>
    %10 = vector.extract_strided_slice %3 {offsets = [6, 0], sizes = [1, 128], strides = [1, 1]} : vector<8x512xf32> to vector<1x128xf32>
    %11 = vector.extract_strided_slice %3 {offsets = [7, 0], sizes = [1, 128], strides = [1, 1]} : vector<8x512xf32> to vector<1x128xf32>
    %c0_4 = arith.constant 0 : index
    %c0_5 = arith.constant 0 : index
    %12 = vector.load %arg2[%c0_4, %c0_5] : memref<128x384xbf16, #tpu.memory_space<vmem>>, vector<128x384xbf16>
    %cst = arith.constant dense<0.000000e+00> : vector<8x384xf32>
    %13 = tpu.matmul %2, %12, %cst {dimension_numbers = #tpu.dot_dimension_numbers<[1], [0], [0], [1], [0, 0, 1, 1], [], []>} : vector<8x128xbf16>, vector<128x384xbf16>, vector<8x384xf32> -> vector<8x384xf32>
    %14 = vector.broadcast %4 : vector<1x384xf32> to vector<8x384xf32>
    %15 = arith.addf %13, %14 : vector<8x384xf32>
    %16 = vector.extract_strided_slice %15 {offsets = [0, 0], sizes = [8, 128], strides = [1, 1]} : vector<8x384xf32> to vector<8x128xf32>
    %17 = arith.truncf %16 : vector<8x128xf32> to vector<8x128xbf16>
    %18 = vector.extract_strided_slice %15 {offsets = [0, 128], sizes = [8, 128], strides = [1, 1]} : vector<8x384xf32> to vector<8x128xf32>
    %19 = arith.truncf %18 : vector<8x128xf32> to vector<8x128xbf16>
    %20 = vector.extract_strided_slice %15 {offsets = [0, 256], sizes = [8, 128], strides = [1, 1]} : vector<8x384xf32> to vector<8x128xf32>
    %21 = arith.truncf %20 : vector<8x128xf32> to vector<8x128xbf16>
    %22 = vector.extract_strided_slice %17 {offsets = [0, 0], sizes = [8, 32], strides = [1, 1]} : vector<8x128xbf16> to vector<8x32xbf16>
    %23 = vector.extract_strided_slice %19 {offsets = [0, 0], sizes = [8, 32], strides = [1, 1]} : vector<8x128xbf16> to vector<8x32xbf16>
    %24 = vector.extract_strided_slice %21 {offsets = [0, 0], sizes = [8, 32], strides = [1, 1]} : vector<8x128xbf16> to vector<8x32xbf16>
    %cst_6 = arith.constant dense<0.000000e+00> : vector<8x8xf32>
    %25 = tpu.matmul %22, %23, %cst_6 {dimension_numbers = #tpu.dot_dimension_numbers<[1], [1], [0], [0], [0, 0, 1, 0], [], []>} : vector<8x32xbf16>, vector<8x32xbf16>, vector<8x8xf32> -> vector<8x8xf32>
    %cst_7 = arith.constant dense<0xFF800000> : vector<8xf32>
    %26 = vector.multi_reduction <maximumf>, %25, %cst_7 [1] : vector<8x8xf32> to vector<8xf32>
    %27 = vector.shape_cast %26 : vector<8xf32> to vector<8x1xf32>
    %28 = vector.broadcast %27 : vector<8x1xf32> to vector<8x8xf32>
    %29 = arith.subf %25, %28 : vector<8x8xf32>
    %30 = math.exp %29 : vector<8x8xf32>
    %cst_8 = arith.constant dense<0.000000e+00> : vector<8xf32>
    %31 = vector.multi_reduction <add>, %30, %cst_8 [1] : vector<8x8xf32> to vector<8xf32>
    %32 = vector.shape_cast %31 : vector<8xf32> to vector<8x1xf32>
    %33 = tpu.reciprocal %32 {approx = true} : vector<8x1xf32> -> vector<8x1xf32>
    %34 = vector.broadcast %33 : vector<8x1xf32> to vector<8x8xf32>
    %35 = arith.mulf %30, %34 : vector<8x8xf32>
    %36 = arith.truncf %35 : vector<8x8xf32> to vector<8x8xbf16>
    %cst_9 = arith.constant dense<0.000000e+00> : vector<8x32xf32>
    %37 = tpu.matmul %36, %24, %cst_9 {dimension_numbers = #tpu.dot_dimension_numbers<[1], [0], [0], [1], [0, 0, 1, 1], [], []>} : vector<8x8xbf16>, vector<8x32xbf16>, vector<8x32xf32> -> vector<8x32xf32>
    %38 = vector.extract_strided_slice %17 {offsets = [0, 32], sizes = [8, 32], strides = [1, 1]} : vector<8x128xbf16> to vector<8x32xbf16>
    %39 = vector.extract_strided_slice %19 {offsets = [0, 32], sizes = [8, 32], strides = [1, 1]} : vector<8x128xbf16> to vector<8x32xbf16>
    %40 = vector.extract_strided_slice %21 {offsets = [0, 32], sizes = [8, 32], strides = [1, 1]} : vector<8x128xbf16> to vector<8x32xbf16>
    %cst_10 = arith.constant dense<0.000000e+00> : vector<8x8xf32>
    %41 = tpu.matmul %38, %39, %cst_10 {dimension_numbers = #tpu.dot_dimension_numbers<[1], [1], [0], [0], [0, 0, 1, 0], [], []>} : vector<8x32xbf16>, vector<8x32xbf16>, vector<8x8xf32> -> vector<8x8xf32>
    %cst_11 = arith.constant dense<0xFF800000> : vector<8xf32>
    %42 = vector.multi_reduction <maximumf>, %41, %cst_11 [1] : vector<8x8xf32> to vector<8xf32>
    %43 = vector.shape_cast %42 : vector<8xf32> to vector<8x1xf32>
    %44 = vector.broadcast %43 : vector<8x1xf32> to vector<8x8xf32>
    %45 = arith.subf %41, %44 : vector<8x8xf32>
    %46 = math.exp %45 : vector<8x8xf32>
    %cst_12 = arith.constant dense<0.000000e+00> : vector<8xf32>
    %47 = vector.multi_reduction <add>, %46, %cst_12 [1] : vector<8x8xf32> to vector<8xf32>
    %48 = vector.shape_cast %47 : vector<8xf32> to vector<8x1xf32>
    %49 = tpu.reciprocal %48 {approx = true} : vector<8x1xf32> -> vector<8x1xf32>
    %50 = vector.broadcast %49 : vector<8x1xf32> to vector<8x8xf32>
    %51 = arith.mulf %46, %50 : vector<8x8xf32>
    %52 = arith.truncf %51 : vector<8x8xf32> to vector<8x8xbf16>
    %cst_13 = arith.constant dense<0.000000e+00> : vector<8x32xf32>
    %53 = tpu.matmul %52, %40, %cst_13 {dimension_numbers = #tpu.dot_dimension_numbers<[1], [0], [0], [1], [0, 0, 1, 1], [], []>} : vector<8x8xbf16>, vector<8x32xbf16>, vector<8x32xf32> -> vector<8x32xf32>
    %54 = vector.extract_strided_slice %17 {offsets = [0, 64], sizes = [8, 32], strides = [1, 1]} : vector<8x128xbf16> to vector<8x32xbf16>
    %55 = vector.extract_strided_slice %19 {offsets = [0, 64], sizes = [8, 32], strides = [1, 1]} : vector<8x128xbf16> to vector<8x32xbf16>
    %56 = vector.extract_strided_slice %21 {offsets = [0, 64], sizes = [8, 32], strides = [1, 1]} : vector<8x128xbf16> to vector<8x32xbf16>
    %cst_14 = arith.constant dense<0.000000e+00> : vector<8x8xf32>
    %57 = tpu.matmul %54, %55, %cst_14 {dimension_numbers = #tpu.dot_dimension_numbers<[1], [1], [0], [0], [0, 0, 1, 0], [], []>} : vector<8x32xbf16>, vector<8x32xbf16>, vector<8x8xf32> -> vector<8x8xf32>
    %cst_15 = arith.constant dense<0xFF800000> : vector<8xf32>
    %58 = vector.multi_reduction <maximumf>, %57, %cst_15 [1] : vector<8x8xf32> to vector<8xf32>
    %59 = vector.shape_cast %58 : vector<8xf32> to vector<8x1xf32>
    %60 = vector.broadcast %59 : vector<8x1xf32> to vector<8x8xf32>
    %61 = arith.subf %57, %60 : vector<8x8xf32>
    %62 = math.exp %61 : vector<8x8xf32>
    %cst_16 = arith.constant dense<0.000000e+00> : vector<8xf32>
    %63 = vector.multi_reduction <add>, %62, %cst_16 [1] : vector<8x8xf32> to vector<8xf32>
    %64 = vector.shape_cast %63 : vector<8xf32> to vector<8x1xf32>
    %65 = tpu.reciprocal %64 {approx = true} : vector<8x1xf32> -> vector<8x1xf32>
    %66 = vector.broadcast %65 : vector<8x1xf32> to vector<8x8xf32>
    %67 = arith.mulf %62, %66 : vector<8x8xf32>
    %68 = arith.truncf %67 : vector<8x8xf32> to vector<8x8xbf16>
    %cst_17 = arith.constant dense<0.000000e+00> : vector<8x32xf32>
    %69 = tpu.matmul %68, %56, %cst_17 {dimension_numbers = #tpu.dot_dimension_numbers<[1], [0], [0], [1], [0, 0, 1, 1], [], []>} : vector<8x8xbf16>, vector<8x32xbf16>, vector<8x32xf32> -> vector<8x32xf32>
    %70 = vector.extract_strided_slice %17 {offsets = [0, 96], sizes = [8, 32], strides = [1, 1]} : vector<8x128xbf16> to vector<8x32xbf16>
    %71 = vector.extract_strided_slice %19 {offsets = [0, 96], sizes = [8, 32], strides = [1, 1]} : vector<8x128xbf16> to vector<8x32xbf16>
    %72 = vector.extract_strided_slice %21 {offsets = [0, 96], sizes = [8, 32], strides = [1, 1]} : vector<8x128xbf16> to vector<8x32xbf16>
    %cst_18 = arith.constant dense<0.000000e+00> : vector<8x8xf32>
    %73 = tpu.matmul %70, %71, %cst_18 {dimension_numbers = #tpu.dot_dimension_numbers<[1], [1], [0], [0], [0, 0, 1, 0], [], []>} : vector<8x32xbf16>, vector<8x32xbf16>, vector<8x8xf32> -> vector<8x8xf32>
    %cst_19 = arith.constant dense<0xFF800000> : vector<8xf32>
    %74 = vector.multi_reduction <maximumf>, %73, %cst_19 [1] : vector<8x8xf32> to vector<8xf32>
    %75 = vector.shape_cast %74 : vector<8xf32> to vector<8x1xf32>
    %76 = vector.broadcast %75 : vector<8x1xf32> to vector<8x8xf32>
    %77 = arith.subf %73, %76 : vector<8x8xf32>
    %78 = math.exp %77 : vector<8x8xf32>
    %cst_20 = arith.constant dense<0.000000e+00> : vector<8xf32>
    %79 = vector.multi_reduction <add>, %78, %cst_20 [1] : vector<8x8xf32> to vector<8xf32>
    %80 = vector.shape_cast %79 : vector<8xf32> to vector<8x1xf32>
    %81 = tpu.reciprocal %80 {approx = true} : vector<8x1xf32> -> vector<8x1xf32>
    %82 = vector.broadcast %81 : vector<8x1xf32> to vector<8x8xf32>
    %83 = arith.mulf %78, %82 : vector<8x8xf32>
    %84 = arith.truncf %83 : vector<8x8xf32> to vector<8x8xbf16>
    %cst_21 = arith.constant dense<0.000000e+00> : vector<8x32xf32>
    %85 = tpu.matmul %84, %72, %cst_21 {dimension_numbers = #tpu.dot_dimension_numbers<[1], [0], [0], [1], [0, 0, 1, 1], [], []>} : vector<8x8xbf16>, vector<8x32xbf16>, vector<8x32xf32> -> vector<8x32xf32>
    %86 = tpu.concatenate %37, %53, %69, %85 in 1 : vector<8x32xf32>, vector<8x32xf32>, vector<8x32xf32>, vector<8x32xf32> -> vector<8x128xf32>
    %87 = arith.truncf %86 : vector<8x128xf32> to vector<8x128xbf16>
    %c0_22 = arith.constant 0 : index
    %c0_23 = arith.constant 0 : index
    %88 = vector.load %arg3[%c0_22, %c0_23] : memref<128x128xbf16, #tpu.memory_space<vmem>>, vector<128x128xbf16>
    %cst_24 = arith.constant dense<0.000000e+00> : vector<8x128xf32>
    %89 = tpu.matmul %87, %88, %cst_24 {dimension_numbers = #tpu.dot_dimension_numbers<[1], [0], [0], [1], [0, 0, 1, 1], [], []>} : vector<8x128xbf16>, vector<128x128xbf16>, vector<8x128xf32> -> vector<8x128xf32>
    %90 = vector.broadcast %6 : vector<1x128xf32> to vector<8x128xf32>
    %91 = arith.addf %89, %90 : vector<8x128xf32>
    %92 = arith.addf %1, %91 : vector<8x128xf32>
    %cst_25 = arith.constant dense<0.000000e+00> : vector<8xf32>
    %93 = vector.multi_reduction <add>, %92, %cst_25 [1] : vector<8x128xf32> to vector<8xf32>
    %94 = vector.shape_cast %93 : vector<8xf32> to vector<8x1xf32>
    %cst_26 = arith.constant 1.280000e+02 : f32
    %95 = vector.broadcast %cst_26 : f32 to vector<8x1xf32>
    %96 = arith.divf %94, %95 : vector<8x1xf32>
    %97 = vector.broadcast %96 : vector<8x1xf32> to vector<8x128xf32>
    %98 = arith.subf %92, %97 : vector<8x128xf32>
    %99 = arith.mulf %98, %98 : vector<8x128xf32>
    %cst_27 = arith.constant dense<0.000000e+00> : vector<8xf32>
    %100 = vector.multi_reduction <add>, %99, %cst_27 [1] : vector<8x128xf32> to vector<8xf32>
    %101 = vector.shape_cast %100 : vector<8xf32> to vector<8x1xf32>
    %cst_28 = arith.constant 1.280000e+02 : f32
    %102 = vector.broadcast %cst_28 : f32 to vector<8x1xf32>
    %103 = arith.divf %101, %102 : vector<8x1xf32>
    %cst_29 = arith.constant 9.99999974E-6 : f32
    %104 = vector.broadcast %cst_29 : f32 to vector<8x1xf32>
    %105 = arith.addf %103, %104 : vector<8x1xf32>
    %106 = math.rsqrt %105 : vector<8x1xf32>
    %107 = vector.broadcast %106 : vector<8x1xf32> to vector<8x128xf32>
    %108 = arith.mulf %98, %107 : vector<8x128xf32>
    %109 = vector.broadcast %7 : vector<1x128xf32> to vector<8x128xf32>
    %110 = arith.mulf %108, %109 : vector<8x128xf32>
    %111 = vector.broadcast %8 : vector<1x128xf32> to vector<8x128xf32>
    %112 = arith.addf %110, %111 : vector<8x128xf32>
    %113 = arith.truncf %112 : vector<8x128xf32> to vector<8x128xbf16>
    %c0_30 = arith.constant 0 : index
    %c0_31 = arith.constant 0 : index
    %114 = vector.load %arg4[%c0_30, %c0_31] : memref<128x512xbf16, #tpu.memory_space<vmem>>, vector<128x512xbf16>
    %cst_32 = arith.constant dense<0.000000e+00> : vector<8x512xf32>
    %115 = tpu.matmul %113, %114, %cst_32 {dimension_numbers = #tpu.dot_dimension_numbers<[1], [0], [0], [1], [0, 0, 1, 1], [], []>} : vector<8x128xbf16>, vector<128x512xbf16>, vector<8x512xf32> -> vector<8x512xf32>
    %116 = vector.broadcast %5 : vector<1x512xf32> to vector<8x512xf32>
    %117 = arith.addf %115, %116 : vector<8x512xf32>
    %cst_33 = arith.constant 0.000000e+00 : f32
    %118 = vector.broadcast %cst_33 : f32 to vector<8x512xf32>
    %119 = arith.maximumf %117, %118 : vector<8x512xf32>
    %120 = arith.truncf %119 : vector<8x512xf32> to vector<8x512xbf16>
    %c0_34 = arith.constant 0 : index
    %c0_35 = arith.constant 0 : index
    %121 = vector.load %arg5[%c0_34, %c0_35] : memref<512x128xbf16, #tpu.memory_space<vmem>>, vector<512x128xbf16>
    %cst_36 = arith.constant dense<0.000000e+00> : vector<8x128xf32>
    %122 = tpu.matmul %120, %121, %cst_36 {dimension_numbers = #tpu.dot_dimension_numbers<[1], [0], [0], [1], [0, 0, 1, 1], [], []>} : vector<8x512xbf16>, vector<512x128xbf16>, vector<8x128xf32> -> vector<8x128xf32>
    %123 = vector.broadcast %9 : vector<1x128xf32> to vector<8x128xf32>
    %124 = arith.addf %122, %123 : vector<8x128xf32>
    %125 = arith.addf %112, %124 : vector<8x128xf32>
    %cst_37 = arith.constant dense<0.000000e+00> : vector<8xf32>
    %126 = vector.multi_reduction <add>, %125, %cst_37 [1] : vector<8x128xf32> to vector<8xf32>
    %127 = vector.shape_cast %126 : vector<8xf32> to vector<8x1xf32>
    %cst_38 = arith.constant 1.280000e+02 : f32
    %128 = vector.broadcast %cst_38 : f32 to vector<8x1xf32>
    %129 = arith.divf %127, %128 : vector<8x1xf32>
    %130 = vector.broadcast %129 : vector<8x1xf32> to vector<8x128xf32>
    %131 = arith.subf %125, %130 : vector<8x128xf32>
    %132 = arith.mulf %131, %131 : vector<8x128xf32>
    %cst_39 = arith.constant dense<0.000000e+00> : vector<8xf32>
    %133 = vector.multi_reduction <add>, %132, %cst_39 [1] : vector<8x128xf32> to vector<8xf32>
    %134 = vector.shape_cast %133 : vector<8xf32> to vector<8x1xf32>
    %cst_40 = arith.constant 1.280000e+02 : f32
    %135 = vector.broadcast %cst_40 : f32 to vector<8x1xf32>
    %136 = arith.divf %134, %135 : vector<8x1xf32>
    %cst_41 = arith.constant 9.99999974E-6 : f32
    %137 = vector.broadcast %cst_41 : f32 to vector<8x1xf32>
    %138 = arith.addf %136, %137 : vector<8x1xf32>
    %139 = math.rsqrt %138 : vector<8x1xf32>
    %140 = vector.broadcast %139 : vector<8x1xf32> to vector<8x128xf32>
    %141 = arith.mulf %131, %140 : vector<8x128xf32>
    %142 = vector.broadcast %10 : vector<1x128xf32> to vector<8x128xf32>
    %143 = arith.mulf %141, %142 : vector<8x128xf32>
    %144 = vector.broadcast %11 : vector<1x128xf32> to vector<8x128xf32>
    %145 = arith.addf %143, %144 : vector<8x128xf32>
    %c0_42 = arith.constant 0 : index
    %c0_43 = arith.constant 0 : index
    %c0_44 = arith.constant 0 : index
    %146 = vector.load %arg7[%c0_42, %c0_43, %c0_44] : memref<1x8x128xf32, #tpu.memory_space<vmem>>, vector<1x8x128xf32>
    %147 = vector.shape_cast %146 : vector<1x8x128xf32> to vector<8x128xf32>
    %148 = vector.shape_cast %145 : vector<8x128xf32> to vector<1x8x128xf32>
    tpu.vector_store %arg7[%c0_42, %c0_43, %c0_44], %148 {strides = array<i32>} : memref<1x8x128xf32, #tpu.memory_space<vmem>>, vector<1x8x128xf32>,
    return
  }
  func.func @transform_0(%arg0: i32) -> (i32, i32, i32) {
    %c0_i32 = arith.constant 0 : i32
    %c0_i32_0 = arith.constant 0 : i32
    %c0_i32_1 = arith.constant 0 : i32
    return %arg0, %c0_i32, %c0_i32_0 : i32, i32, i32
  }
  func.func @transform_1(%arg0: i32) -> (i32, i32) {
    %c0_i32 = arith.constant 0 : i32
    %c0_i32_0 = arith.constant 0 : i32
    %c0_i32_1 = arith.constant 0 : i32
    return %c0_i32, %c0_i32_0 : i32, i32
  }
  func.func @transform_2(%arg0: i32) -> (i32, i32) {
    %c0_i32 = arith.constant 0 : i32
    %c0_i32_0 = arith.constant 0 : i32
    %c0_i32_1 = arith.constant 0 : i32
    return %c0_i32, %c0_i32_0 : i32, i32
  }
  func.func @transform_3(%arg0: i32) -> (i32, i32) {
    %c0_i32 = arith.constant 0 : i32
    %c0_i32_0 = arith.constant 0 : i32
    %c0_i32_1 = arith.constant 0 : i32
    return %c0_i32, %c0_i32_0 : i32, i32
  }
  func.func @transform_4(%arg0: i32) -> (i32, i32) {
    %c0_i32 = arith.constant 0 : i32
    %c0_i32_0 = arith.constant 0 : i32
    %c0_i32_1 = arith.constant 0 : i32
    return %c0_i32, %c0_i32_0 : i32, i32
  }
  func.func @transform_5(%arg0: i32) -> (i32, i32) {
    %c0_i32 = arith.constant 0 : i32
    %c0_i32_0 = arith.constant 0 : i32
    %c0_i32_1 = arith.constant 0 : i32
    return %c0_i32, %c0_i32_0 : i32, i32
  }
  func.func @transform_6(%arg0: i32) -> (i32, i32, i32) {
    %c0_i32 = arith.constant 0 : i32
    %c0_i32_0 = arith.constant 0 : i32
    %c0_i32_1 = arith.constant 0 : i32
    return %arg0, %c0_i32, %c0_i32_0 : i32, i32, i32
  }
}

module attributes {stable_mosaic.version = 11 : i64} {
  func.func @_attention_block_kernel(%arg0: i32, %arg1: memref<1x8x128xf32, #tpu.memory_space<vmem>>, %arg2: memref<128x384xbf16, #tpu.memory_space<vmem>>, %arg3: memref<128x128xbf16, #tpu.memory_space<vmem>>, %arg4: memref<128x512xbf16, #tpu.memory_space<vmem>>, %arg5: memref<512x128xbf16, #tpu.memory_space<vmem>>, %arg6: memref<8x512xf32, #tpu.memory_space<vmem>>, %arg7: memref<1x8x128xf32, #tpu.memory_space<vmem>>) attributes {dimension_semantics = [#tpu.dimension_semantics<parallel>], iteration_bounds = array<i64: 2>, scalar_prefetch = 0 : i64, scratch_operands = 0 : i64, tpu.core_type = #tpu.core_type<tc>, window_params = [{transform_indices = @transform_0, window_bounds = array<i64: 1, 8, 128>}, {pipeline_mode = #tpu.pipeline_mode<synchronous>, transform_indices = @transform_1, window_bounds = array<i64: 128, 384>}, {pipeline_mode = #tpu.pipeline_mode<synchronous>, transform_indices = @transform_2, window_bounds = array<i64: 128, 128>}, {pipeline_mode = #tpu.pipeline_mode<synchronous>, transform_indices = @transform_3, window_bounds = array<i64: 128, 512>}, {pipeline_mode = #tpu.pipeline_mode<synchronous>, transform_indices = @transform_4, window_bounds = array<i64: 512, 128>}, {pipeline_mode = #tpu.pipeline_mode<synchronous>, transform_indices = @transform_5, window_bounds = array<i64: 8, 512>}, {transform_indices = @transform_6, window_bounds = array<i64: 1, 8, 128>}]} {
    %c0 = arith.constant 0 : index
    %c0_0 = arith.constant 0 : index
    %c0_1 = arith.constant 0 : index
    %0 = vector.load %arg1[%c0, %c0_0, %c0_1] : memref<1x8x128xf32, #tpu.memory_space<vmem>>, vector<1x8x128xf32>
    %1 = vector.shape_cast %0 : vector<1x8x128xf32> to vector<8x128xf32>
    %2 = arith.truncf %1 : vector<8x128xf32> to vector<8x128xbf16>
    %c0_2 = arith.constant 0 : index
    %c0_3 = arith.constant 0 : index
    %3 = vector.load %arg6[%c0_2, %c0_3] : memref<8x512xf32, #tpu.memory_space<vmem>>, vector<8x512xf32>
    %4 = vector.extract_strided_slice %3 {offsets = [0, 0], sizes = [1, 384], strides = [1, 1]} : vector<8x512xf32> to vector<1x384xf32>
    %5 = vector.extract_strided_slice %3 {offsets = [1, 0], sizes = [1, 512], strides = [1, 1]} : vector<8x512xf32> to vector<1x512xf32>
    %6 = vector.extract_strided_slice %3 {offsets = [2, 0], sizes = [1, 128], strides = [1, 1]} : vector<8x512xf32> to vector<1x128xf32>
    %7 = vector.extract_strided_slice %3 {offsets = [3, 0], sizes = [1, 128], strides = [1, 1]} : vector<8x512xf32> to vector<1x128xf32>
    %8 = vector.extract_strided_slice %3 {offsets = [4, 0], sizes = [1, 128], strides = [1, 1]} : vector<8x512xf32> to vector<1x128xf32>
    %9 = vector.extract_strided_slice %3 {offsets = [5, 0], sizes = [1, 128], strides = [1, 1]} : vector<8x512xf32> to vector<1x128xf32>
    %10 = vector.extract_strided_slice %3 {offsets = [6, 0], sizes = [1, 128], strides = [1, 1]} : vector<8x512xf32> to vector<1x128xf32>
    %11 = vector.extract_strided_slice %3 {offsets = [7, 0], sizes = [1, 128], strides = [1, 1]} : vector<8x512xf32> to vector<1x128xf32>
    %c0_4 = arith.constant 0 : index
    %c0_5 = arith.constant 0 : index
    %12 = vector.load %arg2[%c0_4, %c0_5] : memref<128x384xbf16, #tpu.memory_space<vmem>>, vector<128x384xbf16>
    %cst = arith.constant dense<0.000000e+00> : vector<8x384xf32>
    %13 = tpu.matmul %2, %12, %cst {dimension_numbers = #tpu.dot_dimension_numbers<[1], [0], [0], [1], [0, 0, 1, 1], [], []>} : vector<8x128xbf16>, vector<128x384xbf16>, vector<8x384xf32> -> vector<8x384xf32>
    %14 = vector.broadcast %4 : vector<1x384xf32> to vector<8x384xf32>
    %15 = arith.addf %13, %14 : vector<8x384xf32>
    %16 = vector.extract_strided_slice %15 {offsets = [0, 0], sizes = [8, 128], strides = [1, 1]} : vector<8x384xf32> to vector<8x128xf32>
    %17 = arith.truncf %16 : vector<8x128xf32> to vector<8x128xbf16>
    %18 = vector.extract_strided_slice %15 {offsets = [0, 128], sizes = [8, 128], strides = [1, 1]} : vector<8x384xf32> to vector<8x128xf32>
    %19 = arith.truncf %18 : vector<8x128xf32> to vector<8x128xbf16>
    %20 = vector.extract_strided_slice %15 {offsets = [0, 256], sizes = [8, 128], strides = [1, 1]} : vector<8x384xf32> to vector<8x128xf32>
    %21 = arith.truncf %20 : vector<8x128xf32> to vector<8x128xbf16>
    %22 = vector.extract_strided_slice %17 {offsets = [0, 0], sizes = [8, 32], strides = [1, 1]} : vector<8x128xbf16> to vector<8x32xbf16>
    %23 = vector.extract_strided_slice %19 {offsets = [0, 0], sizes = [8, 32], strides = [1, 1]} : vector<8x128xbf16> to vector<8x32xbf16>
    %24 = vector.extract_strided_slice %21 {offsets = [0, 0], sizes = [8, 32], strides = [1, 1]} : vector<8x128xbf16> to vector<8x32xbf16>
    %cst_6 = arith.constant dense<0.000000e+00> : vector<8x8xf32>
    %25 = tpu.matmul %22, %23, %cst_6 {dimension_numbers = #tpu.dot_dimension_numbers<[1], [1], [0], [0], [0, 0, 1, 0], [], []>} : vector<8x32xbf16>, vector<8x32xbf16>, vector<8x8xf32> -> vector<8x8xf32>
    %cst_7 = arith.constant dense<0xFF800000> : vector<8xf32>
    %26 = vector.multi_reduction <maximumf>, %25, %cst_7 [1] : vector<8x8xf32> to vector<8xf32>
    %27 = vector.shape_cast %26 : vector<8xf32> to vector<8x1xf32>
    %28 = vector.broadcast %27 : vector<8x1xf32> to vector<8x8xf32>
    %29 = arith.subf %25, %28 : vector<8x8xf32>
    %30 = math.exp %29 : vector<8x8xf32>
    %cst_8 = arith.constant dense<0.000000e+00> : vector<8xf32>
    %31 = vector.multi_reduction <add>, %30, %cst_8 [1] : vector<8x8xf32> to vector<8xf32>
    %32 = vector.shape_cast %31 : vector<8xf32> to vector<8x1xf32>
    %33 = tpu.reciprocal %32 {approx = true} : vector<8x1xf32> -> vector<8x1xf32>
    %34 = vector.broadcast %33 : vector<8x1xf32> to vector<8x8xf32>
    %35 = arith.mulf %30, %34 : vector<8x8xf32>
    %36 = arith.truncf %35 : vector<8x8xf32> to vector<8x8xbf16>
    %cst_9 = arith.constant dense<0.000000e+00> : vector<8x32xf32>
    %37 = tpu.matmul %36, %24, %cst_9 {dimension_numbers = #tpu.dot_dimension_numbers<[1], [0], [0], [1], [0, 0, 1, 1], [], []>} : vector<8x8xbf16>, vector<8x32xbf16>, vector<8x32xf32> -> vector<8x32xf32>
    %38 = vector.extract_strided_slice %17 {offsets = [0, 32], sizes = [8, 32], strides = [1, 1]} : vector<8x128xbf16> to vector<8x32xbf16>
    %39 = vector.extract_strided_slice %19 {offsets = [0, 32], sizes = [8, 32], strides = [1, 1]} : vector<8x128xbf16> to vector<8x32xbf16>
    %40 = vector.extract_strided_slice %21 {offsets = [0, 32], sizes = [8, 32], strides = [1, 1]} : vector<8x128xbf16> to vector<8x32xbf16>
    %cst_10 = arith.constant dense<0.000000e+00> : vector<8x8xf32>
    %41 = tpu.matmul %38, %39, %cst_10 {dimension_numbers = #tpu.dot_dimension_numbers<[1], [1], [0], [0], [0, 0, 1, 0], [], []>} : vector<8x32xbf16>, vector<8x32xbf16>, vector<8x8xf32> -> vector<8x8xf32>
    %cst_11 = arith.constant dense<0xFF800000> : vector<8xf32>
    %42 = vector.multi_reduction <maximumf>, %41, %cst_11 [1] : vector<8x8xf32> to vector<8xf32>
    %43 = vector.shape_cast %42 : vector<8xf32> to vector<8x1xf32>
    %44 = vector.broadcast %43 : vector<8x1xf32> to vector<8x8xf32>
    %45 = arith.subf %41, %44 : vector<8x8xf32>
    %46 = math.exp %45 : vector<8x8xf32>
    %cst_12 = arith.constant dense<0.000000e+00> : vector<8xf32>
    %47 = vector.multi_reduction <add>, %46, %cst_12 [1] : vector<8x8xf32> to vector<8xf32>
    %48 = vector.shape_cast %47 : vector<8xf32> to vector<8x1xf32>
    %49 = tpu.reciprocal %48 {approx = true} : vector<8x1xf32> -> vector<8x1xf32>
    %50 = vector.broadcast %49 : vector<8x1xf32> to vector<8x8xf32>
    %51 = arith.mulf %46, %50 : vector<8x8xf32>
    %52 = arith.truncf %51 : vector<8x8xf32> to vector<8x8xbf16>
    %cst_13 = arith.constant dense<0.000000e+00> : vector<8x32xf32>
    %53 = tpu.matmul %52, %40, %cst_13 {dimension_numbers = #tpu.dot_dimension_numbers<[1], [0], [0], [1], [0, 0, 1, 1], [], []>} : vector<8x8xbf16>, vector<8x32xbf16>, vector<8x32xf32> -> vector<8x32xf32>
    %54 = vector.extract_strided_slice %17 {offsets = [0, 64], sizes = [8, 32], strides = [1, 1]} : vector<8x128xbf16> to vector<8x32xbf16>
    %55 = vector.extract_strided_slice %19 {offsets = [0, 64], sizes = [8, 32], strides = [1, 1]} : vector<8x128xbf16> to vector<8x32xbf16>
    %56 = vector.extract_strided_slice %21 {offsets = [0, 64], sizes = [8, 32], strides = [1, 1]} : vector<8x128xbf16> to vector<8x32xbf16>
    %cst_14 = arith.constant dense<0.000000e+00> : vector<8x8xf32>
    %57 = tpu.matmul %54, %55, %cst_14 {dimension_numbers = #tpu.dot_dimension_numbers<[1], [1], [0], [0], [0, 0, 1, 0], [], []>} : vector<8x32xbf16>, vector<8x32xbf16>, vector<8x8xf32> -> vector<8x8xf32>
    %cst_15 = arith.constant dense<0xFF800000> : vector<8xf32>
    %58 = vector.multi_reduction <maximumf>, %57, %cst_15 [1] : vector<8x8xf32> to vector<8xf32>
    %59 = vector.shape_cast %58 : vector<8xf32> to vector<8x1xf32>
    %60 = vector.broadcast %59 : vector<8x1xf32> to vector<8x8xf32>
    %61 = arith.subf %57, %60 : vector<8x8xf32>
    %62 = math.exp %61 : vector<8x8xf32>
    %cst_16 = arith.constant dense<0.000000e+00> : vector<8xf32>
    %63 = vector.multi_reduction <add>, %62, %cst_16 [1] : vector<8x8xf32> to vector<8xf32>
    %64 = vector.shape_cast %63 : vector<8xf32> to vector<8x1xf32>
    %65 = tpu.reciprocal %64 {approx = true} : vector<8x1xf32> -> vector<8x1xf32>
    %66 = vector.broadcast %65 : vector<8x1xf32> to vector<8x8xf32>
    %67 = arith.mulf %62, %66 : vector<8x8xf32>
    %68 = arith.truncf %67 : vector<8x8xf32> to vector<8x8xbf16>
    %cst_17 = arith.constant dense<0.000000e+00> : vector<8x32xf32>
    %69 = tpu.matmul %68, %56, %cst_17 {dimension_numbers = #tpu.dot_dimension_numbers<[1], [0], [0], [1], [0, 0, 1, 1], [], []>} : vector<8x8xbf16>, vector<8x32xbf16>, vector<8x32xf32> -> vector<8x32xf32>
    %70 = vector.extract_strided_slice %17 {offsets = [0, 96], sizes = [8, 32], strides = [1, 1]} : vector<8x128xbf16> to vector<8x32xbf16>
    %71 = vector.extract_strided_slice %19 {offsets = [0, 96], sizes = [8, 32], strides = [1, 1]} : vector<8x128xbf16> to vector<8x32xbf16>
    %72 = vector.extract_strided_slice %21 {offsets = [0, 96], sizes = [8, 32], strides = [1, 1]} : vector<8x128xbf16> to vector<8x32xbf16>
    %cst_18 = arith.constant dense<0.000000e+00> : vector<8x8xf32>
    %73 = tpu.matmul %70, %71, %cst_18 {dimension_numbers = #tpu.dot_dimension_numbers<[1], [1], [0], [0], [0, 0, 1, 0], [], []>} : vector<8x32xbf16>, vector<8x32xbf16>, vector<8x8xf32> -> vector<8x8xf32>
    %cst_19 = arith.constant dense<0xFF800000> : vector<8xf32>
    %74 = vector.multi_reduction <maximumf>, %73, %cst_19 [1] : vector<8x8xf32> to vector<8xf32>
    %75 = vector.shape_cast %74 : vector<8xf32> to vector<8x1xf32>
    %76 = vector.broadcast %75 : vector<8x1xf32> to vector<8x8xf32>
    %77 = arith.subf %73, %76 : vector<8x8xf32>
    %78 = math.exp %77 : vector<8x8xf32>
    %cst_20 = arith.constant dense<0.000000e+00> : vector<8xf32>
    %79 = vector.multi_reduction <add>, %78, %cst_20 [1] : vector<8x8xf32> to vector<8xf32>
    %80 = vector.shape_cast %79 : vector<8xf32> to vector<8x1xf32>
    %81 = tpu.reciprocal %80 {approx = true} : vector<8x1xf32> -> vector<8x1xf32>
    %82 = vector.broadcast %81 : vector<8x1xf32> to vector<8x8xf32>
    %83 = arith.mulf %78, %82 : vector<8x8xf32>
    %84 = arith.truncf %83 : vector<8x8xf32> to vector<8x8xbf16>
    %cst_21 = arith.constant dense<0.000000e+00> : vector<8x32xf32>
    %85 = tpu.matmul %84, %72, %cst_21 {dimension_numbers = #tpu.dot_dimension_numbers<[1], [0], [0], [1], [0, 0, 1, 1], [], []>} : vector<8x8xbf16>, vector<8x32xbf16>, vector<8x32xf32> -> vector<8x32xf32>
    %86 = tpu.concatenate %37, %53, %69, %85 in 1 : vector<8x32xf32>, vector<8x32xf32>, vector<8x32xf32>, vector<8x32xf32> -> vector<8x128xf32>
    %87 = arith.truncf %86 : vector<8x128xf32> to vector<8x128xbf16>
    %c0_22 = arith.constant 0 : index
    %c0_23 = arith.constant 0 : index
    %88 = vector.load %arg3[%c0_22, %c0_23] : memref<128x128xbf16, #tpu.memory_space<vmem>>, vector<128x128xbf16>
    %cst_24 = arith.constant dense<0.000000e+00> : vector<8x128xf32>
    %89 = tpu.matmul %87, %88, %cst_24 {dimension_numbers = #tpu.dot_dimension_numbers<[1], [0], [0], [1], [0, 0, 1, 1], [], []>} : vector<8x128xbf16>, vector<128x128xbf16>, vector<8x128xf32> -> vector<8x128xf32>
    %90 = vector.broadcast %6 : vector<1x128xf32> to vector<8x128xf32>
    %91 = arith.addf %89, %90 : vector<8x128xf32>
    %92 = arith.addf %1, %91 : vector<8x128xf32>
    %cst_25 = arith.constant dense<0.000000e+00> : vector<8xf32>
    %93 = vector.multi_reduction <add>, %92, %cst_25 [1] : vector<8x128xf32> to vector<8xf32>
    %94 = vector.shape_cast %93 : vector<8xf32> to vector<8x1xf32>
    %cst_26 = arith.constant 1.280000e+02 : f32
    %95 = vector.broadcast %cst_26 : f32 to vector<8x1xf32>
    %96 = arith.divf %94, %95 : vector<8x1xf32>
    %97 = vector.broadcast %96 : vector<8x1xf32> to vector<8x128xf32>
    %98 = arith.subf %92, %97 : vector<8x128xf32>
    %99 = arith.mulf %98, %98 : vector<8x128xf32>
    %cst_27 = arith.constant dense<0.000000e+00> : vector<8xf32>
    %100 = vector.multi_reduction <add>, %99, %cst_27 [1] : vector<8x128xf32> to vector<8xf32>
    %101 = vector.shape_cast %100 : vector<8xf32> to vector<8x1xf32>
    %cst_28 = arith.constant 1.280000e+02 : f32
    %102 = vector.broadcast %cst_28 : f32 to vector<8x1xf32>
    %103 = arith.divf %101, %102 : vector<8x1xf32>
    %cst_29 = arith.constant 9.99999974E-6 : f32
    %104 = vector.broadcast %cst_29 : f32 to vector<8x1xf32>
    %105 = arith.addf %103, %104 : vector<8x1xf32>
    %106 = math.rsqrt %105 : vector<8x1xf32>
    %107 = vector.broadcast %106 : vector<8x1xf32> to vector<8x128xf32>
    %108 = arith.mulf %98, %107 : vector<8x128xf32>
    %109 = vector.broadcast %7 : vector<1x128xf32> to vector<8x128xf32>
    %110 = arith.mulf %108, %109 : vector<8x128xf32>
    %111 = vector.broadcast %8 : vector<1x128xf32> to vector<8x128xf32>
    %112 = arith.addf %110, %111 : vector<8x128xf32>
    %113 = arith.truncf %112 : vector<8x128xf32> to vector<8x128xbf16>
    %c0_30 = arith.constant 0 : index
    %c0_31 = arith.constant 0 : index
    %114 = vector.load %arg4[%c0_30, %c0_31] : memref<128x512xbf16, #tpu.memory_space<vmem>>, vector<128x512xbf16>
    %cst_32 = arith.constant dense<0.000000e+00> : vector<8x512xf32>
    %115 = tpu.matmul %113, %114, %cst_32 {dimension_numbers = #tpu.dot_dimension_numbers<[1], [0], [0], [1], [0, 0, 1, 1], [], []>} : vector<8x128xbf16>, vector<128x512xbf16>, vector<8x512xf32> -> vector<8x512xf32>
    %116 = vector.broadcast %5 : vector<1x512xf32> to vector<8x512xf32>
    %117 = arith.addf %115, %116 : vector<8x512xf32>
    %cst_33 = arith.constant 0.000000e+00 : f32
    %118 = vector.broadcast %cst_33 : f32 to vector<8x512xf32>
    %119 = arith.maximumf %117, %118 : vector<8x512xf32>
    %120 = arith.truncf %119 : vector<8x512xf32> to vector<8x512xbf16>
    %c0_34 = arith.constant 0 : index
    %c0_35 = arith.constant 0 : index
    %121 = vector.load %arg5[%c0_34, %c0_35] : memref<512x128xbf16, #tpu.memory_space<vmem>>, vector<512x128xbf16>
    %cst_36 = arith.constant dense<0.000000e+00> : vector<8x128xf32>
    %122 = tpu.matmul %120, %121, %cst_36 {dimension_numbers = #tpu.dot_dimension_numbers<[1], [0], [0], [1], [0, 0, 1, 1], [], []>} : vector<8x512xbf16>, vector<512x128xbf16>, vector<8x128xf32> -> vector<8x128xf32>
    %123 = vector.broadcast %9 : vector<1x128xf32> to vector<8x128xf32>
    %124 = arith.addf %122, %123 : vector<8x128xf32>
    %125 = arith.addf %112, %124 : vector<8x128xf32>
    %cst_37 = arith.constant dense<0.000000e+00> : vector<8xf32>
    %126 = vector.multi_reduction <add>, %125, %cst_37 [1] : vector<8x128xf32> to vector<8xf32>
    %127 = vector.shape_cast %126 : vector<8xf32> to vector<8x1xf32>
    %cst_38 = arith.constant 1.280000e+02 : f32
    %128 = vector.broadcast %cst_38 : f32 to vector<8x1xf32>
    %129 = arith.divf %127, %128 : vector<8x1xf32>
    %130 = vector.broadcast %129 : vector<8x1xf32> to vector<8x128xf32>
    %131 = arith.subf %125, %130 : vector<8x128xf32>
    %132 = arith.mulf %131, %131 : vector<8x128xf32>
    %cst_39 = arith.constant dense<0.000000e+00> : vector<8xf32>
    %133 = vector.multi_reduction <add>, %132, %cst_39 [1] : vector<8x128xf32> to vector<8xf32>
    %134 = vector.shape_cast %133 : vector<8xf32> to vector<8x1xf32>
    %cst_40 = arith.constant 1.280000e+02 : f32
    %135 = vector.broadcast %cst_40 : f32 to vector<8x1xf32>
    %136 = arith.divf %134, %135 : vector<8x1xf32>
    %cst_41 = arith.constant 9.99999974E-6 : f32
    %137 = vector.broadcast %cst_41 : f32 to vector<8x1xf32>
    %138 = arith.addf %136, %137 : vector<8x1xf32>
    %139 = math.rsqrt %138 : vector<8x1xf32>
    %140 = vector.broadcast %139 : vector<8x1xf32> to vector<8x128xf32>
    %141 = arith.mulf %131, %140 : vector<8x128xf32>
    %142 = vector.broadcast %10 : vector<1x128xf32> to vector<8x128xf32>
    %143 = arith.mulf %141, %142 : vector<8x128xf32>
    %144 = vector.broadcast %11 : vector<1x128xf32> to vector<8x128xf32>
    %145 = arith.addf %143, %144 : vector<8x128xf32>
    %c0_42 = arith.constant 0 : index
    %c0_43 = arith.constant 0 : index
    %c0_44 = arith.constant 0 : index
    %146 = vector.load %arg7[%c0_42, %c0_43, %c0_44] : memref<1x8x128xf32, #tpu.memory_space<vmem>>, vector<1x8x128xf32>
    %147 = vector.shape_cast %146 : vector<1x8x128xf32> to vector<8x128xf32>
    %148 = vector.shape_cast %145 : vector<8x128xf32> to vector<1x8x128xf32>
    tpu.vector_store %arg7[%c0_42, %c0_43, %c0_44], %148 {strides = array<i32>} : memref<1x8x128xf32, #tpu.memory_space<vmem>>, vector<1x8x128xf32>,
    return
  }
  func.func @transform_0(%arg0: i32) -> (i32, i32, i32) {
    %c0_i32 = arith.constant 0 : i32
    %c0_i32_0 = arith.constant 0 : i32
    %c0_i32_1 = arith.constant 0 : i32
    return %arg0, %c0_i32, %c0_i32_0 : i32, i32, i32
  }
  func.func @transform_1(%arg0: i32) -> (i32, i32) {
    %c0_i32 = arith.constant 0 : i32
    %c0_i32_0 = arith.constant 0 : i32
    %c0_i32_1 = arith.constant 0 : i32
    return %c0_i32, %c0_i32_0 : i32, i32
  }
  func.func @transform_2(%arg0: i32) -> (i32, i32) {
    %c0_i32 = arith.constant 0 : i32
    %c0_i32_0 = arith.constant 0 : i32
    %c0_i32_1 = arith.constant 0 : i32
    return %c0_i32, %c0_i32_0 : i32, i32
  }
  func.func @transform_3(%arg0: i32) -> (i32, i32) {
    %c0_i32 = arith.constant 0 : i32
    %c0_i32_0 = arith.constant 0 : i32
    %c0_i32_1 = arith.constant 0 : i32
    return %c0_i32, %c0_i32_0 : i32, i32
  }
  func.func @transform_4(%arg0: i32) -> (i32, i32) {
    %c0_i32 = arith.constant 0 : i32
    %c0_i32_0 = arith.constant 0 : i32
    %c0_i32_1 = arith.constant 0 : i32
    return %c0_i32, %c0_i32_0 : i32, i32
  }
  func.func @transform_5(%arg0: i32) -> (i32, i32) {
    %c0_i32 = arith.constant 0 : i32
    %c0_i32_0 = arith.constant 0 : i32
    %c0_i32_1 = arith.constant 0 : i32
    return %c0_i32, %c0_i32_0 : i32, i32
  }
  func.func @transform_6(%arg0: i32) -> (i32, i32, i32) {
    %c0_i32 = arith.constant 0 : i32
    %c0_i32_0 = arith.constant 0 : i32
    %c0_i32_1 = arith.constant 0 : i32
    return %arg0, %c0_i32, %c0_i32_0 : i32, i32, i32
  }
}

</mosaic_0001>

<bundles_post_ra>
// kernel: self_attention_block.1
= control target key start
LH: loop header
LB: loop body
LE: loop exit
PB: predicated region body
PF: predicated region fallthrough
CT: control target
= control target key end

     0   :  { %11 = vsyncpa [#allocation3], 0  ;;  %s3259_s0 = inlined_call_operand.hbm [shape: f32[2,8,128], index: 0, kind: input, shape index: {}]   ;;  %s3260_s1 = inlined_call_operand.hbm [shape: bf16[128,384], index: 1, kind: input, shape index: {}]   ;;  %s3261_s2 = inlined_call_operand.hbm [shape: bf16[128,128], index: 2, kind: input, shape index: {}]   ;;  %s3262_s3 = inlined_call_operand.hbm [shape: bf16[128,512], index: 3, kind: input, shape index: {}]   ;;  %s3263_s4 = inlined_call_operand.hbm [shape: bf16[512,128], index: 4, kind: input, shape index: {}]   ;;  %s3264_s5 = inlined_call_operand.hbm [shape: f32[8,512], index: 5, kind: input, shape index: {}]   ;;  %s3265_s6 = inlined_call_operand.hbm [shape: f32[2,8,128], index: 6, kind: output, shape index: {}]  }
   0x1   :  { %13 = vsyncpa [#allocation3 + $0x1], 0 }
   0x2   :  { %14 = vsyncpa [#allocation6], 0 }
   0x3   :  { %15 = vsyncpa [#allocation9], 0 }
   0x4   :  { %16 = vsyncpa [#allocation12], 0 }
   0x5   :  { %17 = vsyncpa [#allocation4], 0 }
   0x6   :  { %19 = vsyncpa [#allocation4 + $0x1], 0  ;;  %s2829_s21 = smov 0   ;;  %s2831_s22 = smov 0  }
   0x7   :  { %s2833_s23 = smov 0   ;;  %s2835_s24 = smov 0  }
   0x8 LB: > { %s2775_s25 = smov [#allocation5]   ;;  %s2850_s27 = sadd.s32 4294967295, %s2773_s24   ;;  %s2773_s24 = sphi %s2835_s24, %s3290_s24   ;;  %s2769_s23 = sphi %s2833_s23, %s3289_s23   ;;  %s2765_s22 = sphi %s2831_s22, %s3288_s22   ;;  %s2761_s21 = sphi %s2829_s21, %s3287_s21  }
   0x9   : > { %s199_s26 = sshll.u32 %s2775_s25, 4  ;;  %p1985_p0 = scmp.ge.s32.totalorder %s2773_s24, 1  ;;  %s2855_s26 = int_to_ptr.vmem [resolvable:$true] %s199_s26 }
   0xa   : > { %p3266_p1 = scmp.eq.s32.totalorder %s2850_s27, 0  ;;  %p187_p2 = scmp.lt.s32.totalorder %s2773_s24, 3 }
   0xb   : > { %s2776_s29 = smov [#allocation8]   ;;  %s2777_s8 = smov [#allocation7]  }
   0xc   : > { %p2857_p3 = pnand %p1985_p0, %p187_p2  ;;  %s225_s30 = sshll.u32 %s2776_s29, 4  ;;  %s2870_s30 = int_to_ptr.vmem [resolvable:$true] %s225_s30 }
   0xd   : > { %s2872_s9 = sshll.u32 %s2777_s8, 4  ;;  %s2525_s12 = scalar_lea.hbm %s3260_s1, 3072  ;;  %s213_s9 = int_to_ptr.vmem [resolvable:$true] %s2872_s9 }
   0xe   : > { %s3269_s28 = scalar_select %p2857_p3, 1, 0 }
   0xf   : > { %p2300_p5 = pneg %p2857_p3  ;;  %p2526_p7 = scmp.ne.s32.totalorder %s3260_s1, %s2525_s12 }
  0x10   : > { %p2532_p11 = scmp.lt.u32.totalorder %s2525_s12, %s3260_s1 }
  0x11   : > { %p2866_p6 = pnand %p2300_p5, %p3266_p1 }
  0x13   : > { %p2882_p8 = pneg %p2866_p6 }
  0x15   : > { %p2528_p9 = pnand %p2882_p8, %p2526_p7 }
  0x17   : > { %p2529_p10 = pneg %p2528_p9 }
  0x19   : > { %p2534_p12 = pnand %p2532_p11, %p2529_p10 }
  0x1b   : > { %2537 = shalt.err (!%p2534_p12)
}
  0x1c   : > { %s2538_s18 = scalar_lea.vmem %s2855_s26, 3072  ;;  %p2546_p5 = scmp.lt.s32.totalorder %s2855_s26, %s2855_s26 }
  0x1d   : > { %p2539_p13 = scmp.ne.s32.totalorder %s2855_s26, %s2538_s18  ;;  %p2547_p4 = scmp.lt.s32.totalorder %s2538_s18, %s2538_s18 }
  0x1f   : > { %p2541_p0 = pnand %p2539_p13, %p2882_p8  ;;  %p2548_p7 = por %p2547_p4, %p2546_p5 }
  0x21   : > { %p2542_p2 = pneg %p2541_p0 }
  0x23   : > { %p2549_p9 = pnand %p2548_p7, %p2542_p2 }
  0x25   : > { %2552 = shalt.err (!%p2549_p9)
}
  0x26   : > { %s2778_s19 = smov 192   ;;  %s2779_s20 = smov 12  }
  0x27   : > { %2303 = dma.hbm_to_vmem [thread:$0]  (!%p2866_p6), %s3260_s1, 3072, %s2855_s26, [#allocation6], %s2778_s19, %s2778_s19, %s2779_s20  }
  0x28   : > { %s2553_s11 = scalar_lea.hbm %s3262_s3, 4096 }
  0x29   : > { %p2554_p4 = scmp.ne.s32.totalorder %s3262_s3, %s2553_s11  ;;  %p2560_p12 = scmp.lt.u32.totalorder %s2553_s11, %s3262_s3 }
  0x2b   : > { %p2556_p10 = pnand %p2554_p4, %p2882_p8 }
  0x2d   : > { %p2557_p11 = pneg %p2556_p10 }
  0x2f   : > { %p2562_p13 = pnand %p2560_p12, %p2557_p11 }
  0x31   : > { %2565 = shalt.err (!%p2562_p13)
}
  0x32   : > { %s2566_s26 = scalar_lea.vmem %s2870_s30, 4096  ;;  %p2574_p7 = scmp.lt.s32.totalorder %s2870_s30, %s2870_s30 }
  0x33   : > { %p2567_p0 = scmp.ne.s32.totalorder %s2870_s30, %s2566_s26  ;;  %p2575_p9 = scmp.lt.s32.totalorder %s2566_s26, %s2566_s26 }
  0x35   : > { %p2569_p2 = pnand %p2567_p0, %p2882_p8  ;;  %p2576_p4 = por %p2575_p9, %p2574_p7 }
  0x37   : > { %p2570_p5 = pneg %p2569_p2 }
  0x39   : > { %p2577_p10 = pnand %p2576_p4, %p2570_p5 }
  0x3b   : > { %2580 = shalt.err (!%p2577_p10)
}
  0x3c   : > { %s2780_s17 = smov 256   ;;  %s2781_s18 = smov 16  }
  0x3d   : > { %2309 = dma.hbm_to_vmem [thread:$0]  (!%p2866_p6), %s3262_s3, 4096, %s2870_s30, [#allocation9], %s2780_s17, %s2780_s17, %s2781_s18  }
  0x3e   : > { %s2581_s8 = scalar_lea.hbm %s3261_s2, 1024 }
  0x3f   : > { %p2582_p11 = scmp.ne.s32.totalorder %s3261_s2, %s2581_s8  ;;  %p2588_p0 = scmp.lt.u32.totalorder %s2581_s8, %s3261_s2 }
  0x41   : > { %p2584_p12 = pnand %p2582_p11, %p2882_p8 }
  0x43   : > { %p2585_p13 = pneg %p2584_p12 }
  0x45   : > { %p2590_p2 = pnand %p2588_p0, %p2585_p13 }
  0x47   : > { %2593 = shalt.err (!%p2590_p2)
}
  0x48   : > { %s2594_s14 = scalar_lea.vmem %s213_s9, 1024  ;;  %p2602_p4 = scmp.lt.s32.totalorder %s213_s9, %s213_s9 }
  0x49   : > { %p2595_p5 = scmp.ne.s32.totalorder %s213_s9, %s2594_s14  ;;  %p2603_p10 = scmp.lt.s32.totalorder %s2594_s14, %s2594_s14 }
  0x4b   : > { %p2597_p7 = pnand %p2595_p5, %p2882_p8  ;;  %p2604_p1 = por %p2603_p10, %p2602_p4 }
  0x4d   : > { %p2598_p9 = pneg %p2597_p7 }
  0x4f   : > { %p2605_p3 = pnand %p2604_p1, %p2598_p9 }
  0x51   : > { %2608 = shalt.err (!%p2605_p3)
}
  0x52   : > { %s2782_s30 = smov 64   ;;  %s2783_s16 = smov 4  }
  0x53   : > { %2306 = dma.hbm_to_vmem [thread:$0]  (!%p2866_p6), %s3261_s2, 1024, %s213_s9, [#allocation6], %s2782_s30, %s2782_s30, %s2783_s16  }
  0x54   : > { %s2784_s18 = smov [#allocation10]   ;;  %s2785_s20 = smov [#allocation11]  }
  0x55   : > { %s238_s19 = sshll.u32 %s2784_s18, 4  ;;  %s252_s25 = sshll.u32 %s2785_s20, 4  ;;  %s239_s19 = int_to_ptr.vmem [resolvable:$true] %s238_s19  ;;  %s253_s25 = int_to_ptr.vmem [resolvable:$true] %s252_s25 }
  0x56   : > { %s2609_s10 = scalar_lea.hbm %s3263_s4, 4096 }
  0x57   : > { %p2610_p1 = scmp.ne.s32.totalorder %s3263_s4, %s2609_s10  ;;  %p2616_p12 = scmp.lt.u32.totalorder %s2609_s10, %s3263_s4 }
  0x59   : > { %p2612_p3 = pnand %p2610_p1, %p2882_p8 }
  0x5b   : > { %p2613_p11 = pneg %p2612_p3 }
  0x5d   : > { %p2618_p13 = pnand %p2616_p12, %p2613_p11 }
  0x5f   : > { %2621 = shalt.err (!%p2618_p13)
}
  0x60   : > { %s2622_s9 = scalar_lea.vmem %s239_s19, 4096  ;;  %p2630_p7 = scmp.lt.s32.totalorder %s239_s19, %s239_s19 }
  0x61   : > { %p2623_p0 = scmp.ne.s32.totalorder %s239_s19, %s2622_s9  ;;  %p2631_p9 = scmp.lt.s32.totalorder %s2622_s9, %s2622_s9 }
  0x63   : > { %p2625_p2 = pnand %p2623_p0, %p2882_p8  ;;  %p2632_p4 = por %p2631_p9, %p2630_p7 }
  0x65   : > { %p2626_p5 = pneg %p2625_p2 }
  0x67   : > { %p2633_p10 = pnand %p2632_p4, %p2626_p5 }
  0x69   : > { %2636 = shalt.err (!%p2633_p10)
}
  0x6a   : > { %2312 = dma.hbm_to_vmem [thread:$0]  (!%p2866_p6), %s3263_s4, 4096, %s239_s19, [#allocation9], %s2782_s30, %s2782_s30, %s2783_s16  }
  0x6b   : > { %s2637_s29 = scalar_lea.hbm %s3264_s5, 512 }
  0x6c   : > { %p2638_p1 = scmp.ne.s32.totalorder %s3264_s5, %s2637_s29  ;;  %p2644_p12 = scmp.lt.u32.totalorder %s2637_s29, %s3264_s5 }
  0x6e   : > { %p2640_p3 = pnand %p2638_p1, %p2882_p8 }
  0x70   : > { %p2641_p11 = pneg %p2640_p3 }
  0x72   : > { %p2646_p13 = pnand %p2644_p12, %p2641_p11 }
  0x74   : > { %2649 = shalt.err (!%p2646_p13)
}
  0x75   : > { %s2650_s13 = scalar_lea.vmem %s253_s25, 512  ;;  %p2658_p7 = scmp.lt.s32.totalorder %s253_s25, %s253_s25 }
  0x76   : > { %p2651_p0 = scmp.ne.s32.totalorder %s253_s25, %s2650_s13  ;;  %p2659_p9 = scmp.lt.s32.totalorder %s2650_s13, %s2650_s13 }
  0x78   : > { %p2653_p2 = pnand %p2651_p0, %p2882_p8  ;;  %p2660_p4 = por %p2659_p9, %p2658_p7 }
  0x7a   : > { %p2654_p5 = pneg %p2653_p2 }
  0x7c   : > { %p2661_p10 = pnand %p2660_p4, %p2654_p5 }
  0x7e   : > { %2664 = shalt.err (!%p2661_p10)
}
  0x7f   : > { %2315 = dma.hbm_to_vmem [thread:$0]  (!%p2866_p6), %s3264_s5, 512, %s253_s25, [#allocation12]  }
  0x80   : > { %s1984_s15 = sadd.s32 4294967294, %s2773_s24   ;;  %s2983_s7 = sadd.s32 1, %s2773_s24  }
  0x81   : > { %s32_s19 = sadd.s32 1, %s2769_s23  ;;  %s29_s14 = ssub.s32 %s2773_s24, %s2983_s7 }
  0x82   : > { %p39_p8 = scmp.ne.s32.totalorder %s2769_s23, %s2765_s22  ;;  %p30_p1 = scmp.eq.s32.totalorder %s29_s14, 0 }
  0x83   : > { %p40_p3 = scmp.eq.s32.totalorder %s2773_s24, 0  ;;  %p45_p11 = scmp.ne.s32.totalorder %s2765_s22, %s2761_s21 }
  0x84   : > { %p174_p12 = scmp.eq.s32.totalorder %s2850_s27, 1  ;;  %p3272_p0 = scmp.eq.s32.totalorder %s2850_s27, 0 }
  0x85   : > { %s2995_s9 = scalar_select %p30_p1, %s2769_s23, %s32_s19  }
  0x86   : > { %p41_p13 = por %p40_p3, %p39_p8  ;;  %p2999_p2 = por %p3272_p0, %p45_p11 }
  0x87   : > { %p3003_p6 = por %p174_p12, %p39_p8  ;;  %p180_p5 = scmp.eq.s32.totalorder %s1984_s15, 1 }
  0x88   : > { %p2329_p7 = scmp.lt.s32.totalorder %s2773_s24, 2  ;;  %s263_s17 = sand.u32 1, %s2769_s23  }
  0x89   : > { %s3274_s25 = scalar_select %p3003_p6, 1, 0 }
  0x8a   : > { %p3009_p9 = por %p180_p5, %p45_p11  ;;  %s1992_s20 = sshll.u32 %s263_s17, 3 }
  0x8b   : > { %s1993_s29 = sshll.u32 %s2773_s24, 7  ;;  %s267_s12 = scalar_lea.vmem [#allocation2], %s1992_s20 }
  0x8c   : > { %s3275_s18 = scalar_select %p3009_p9, 1, 0 }
  0x8d   : > { %s3017_s11 = scalar_lea.hbm %s3259_s0, %s1993_s29  ;;  %s274_s13 = sshll.u32 %s267_s12, 4  ;;  %s3023_s13 = int_to_ptr.vmem [resolvable:$true] %s274_s13 }
  0x8e   : > { %p3019_p4 = pnand %p2329_p7, %p41_p13  ;;  %s264_s16 = scalar_lea.sflag [#allocation3], %s263_s17 }
  0x8f   : > { %s2665_s15 = scalar_lea.hbm %s3017_s11, 128  ;;  %s2670_s20 = scalar_lea.hbm %s3259_s0, 256 }
  0x90   : > { %p2666_p10 = scmp.ne.s32.totalorder %s3017_s11, %s2665_s15  ;;  %p2667_p8 = pneg %p3019_p4 }
  0x91   : > { %p2671_p11 = scmp.lt.u32.totalorder %s3017_s11, %s3259_s0  ;;  %p2672_p12 = scmp.lt.u32.totalorder %s2670_s20, %s2665_s15 }
  0x92   : > { %p2668_p1 = pnand %p2667_p8, %p2666_p10  ;;  %p2674_p0 = scmp.lt.u32.totalorder %s2665_s15, %s3017_s11 }
  0x93   : > { %p2673_p13 = por %p2672_p12, %p2671_p11 }
  0x94   : > { %p2669_p3 = pneg %p2668_p1 }
  0x95   : > { %p2675_p5 = por %p2674_p0, %p2673_p13 }
  0x97   : > { %p2676_p7 = pnand %p2675_p5, %p2669_p3 }
  0x99   : > { %2679 = shalt.err (!%p2676_p7)
}
  0x9a   : > { %s2680_s17 = scalar_lea.vmem %s3023_s13, 128  ;;  %s2786_s10 = smov [#allocation2]  }
  0x9b   : > { %p2681_p10 = scmp.ne.s32.totalorder %s3023_s13, %s2680_s17  ;;  %s2685_s12 = sshll.u32 %s2786_s10, 4  ;;  %s2686_s12 = int_to_ptr.vmem [resolvable:$false] %s2685_s12 }
  0x9c   : > { %s2687_s19 = scalar_lea.vmem %s2686_s12, 256  ;;  %p2688_p6 = scmp.lt.s32.totalorder %s3023_s13, %s2686_s12 }
  0x9d   : > { %p2683_p1 = pnand %p2681_p10, %p2667_p8  ;;  %p2689_p11 = scmp.lt.s32.totalorder %s2687_s19, %s2680_s17 }
  0x9f   : > { %p2684_p9 = pneg %p2683_p1  ;;  %p2690_p12 = por %p2689_p11, %p2688_p6 }
  0xa1   : > { %p2691_p13 = pnand %p2690_p12, %p2684_p9 }
  0xa3   : > { %2694 = shalt.err (!%p2691_p13)
}
  0xa4   : > { %2319 = dma.hbm_to_vmem [thread:$0]  (!%p3019_p4), %s3017_s11, 128, %s3023_s13, %s264_s16  }
  0xa5   : > { %p3277_p3 = scmp.ne.s32.totalorder %s3269_s28, 0 }
  0xa6   : > { %s3053_s15 = sand.u32 (!%p3277_p3), 1, %s2765_s22  }
  0xa7   : > { %283 = sbr.rel (%p3277_p3) target bundleno = 3156 (0xc54), region = 44  ;;  %s1995_s14 = sshll.u32 (!%p3277_p3), %s3053_s15, 3 }
  0xa8   : > { %s286_s20 = scalar_lea.sflag (!%p3277_p3), [#allocation3], %s3053_s15  ;;  %s3059_s29 = scalar_lea.vmem (!%p3277_p3), [#allocation2], %s1995_s14 }
  0xae   : > { %2740 = dma.done.wait (%p2999_p2), %s286_s20, 128  }
  0xaf   : > { %2742 = vsyncadd (%p2999_p2), %s286_s20, 4294967168  ;;  %p3278_p6 = scmp.eq.s32.totalorder %s2850_s27, 0 }
  0xb1   : > { %2744 = dma.done.wait (%p3278_p6), [#allocation6], 4096   ;;  %p3279_p9 = pmov %p3278_p6 }
  0xb2   : > { %p3280_p4 = pmov %p3278_p6 }
  0xb3   : > { %2746 = vsyncadd (%p3279_p9), [#allocation6], 4294963200 }
  0xb4   : > { %2748 = dma.done.wait (%p3280_p4), [#allocation9], 8192   ;;  %p3281_p8 = pmov %p3280_p4 }
  0xb5   : > { %p3282_p0 = pmov %p3280_p4 }
  0xb6   : > { %2750 = vsyncadd (%p3281_p8), [#allocation9], 4294959104 }
  0xb7   : > { %2752 = dma.done.wait (%p3282_p0), [#allocation12], 512   ;;  %p3283_p5 = pmov %p3282_p0 }
  0xb8   : > { %v2787_v0 = vmov 0   ;;  %v2788_v1 = vmov 0.0   ;;  %v2385_v2 = vld [vmem:[#allocation5 + $0x4] ss:$12 sps:$4 sm:$0xff]   ;;  %v2387_v3 = vld [vmem:[#allocation5] ss:$12 sps:$4 sm:$0xff]   ;;  %v377_v28 = vlaneseq }
  0xb9   : > { %2754 = vsyncadd (%p3283_p5), [#allocation12], 4294966784  ;;  %549 = vmatprep.mubr.bf16.mxu0 %v2787_v0  ;;  %2188 = vmatprep.subr.bf16.mxu1 %v2788_v1  ;;  %v2388_v4 = vld [vmem:[#allocation5 + $0x1c] ss:$12 sps:$4 sm:$0xff]   ;;  %v2390_v5 = vld [vmem:[#allocation5 + $0x18] ss:$12 sps:$4 sm:$0xff]  }
  0xba   : > { %517 = vmatprep.subr.bf16.mxu0 %v2385_v2  ;;  %v2391_v6 = vld [vmem:[#allocation5 + $0x34] ss:$12 sps:$4 sm:$0xff]   ;;  %v2393_v7 = vld [vmem:[#allocation5 + $0x30] ss:$12 sps:$4 sm:$0xff]   ;;  %v2394_v8 = vld [vmem:[#allocation5 + $0x4c] ss:$12 sps:$4 sm:$0xff]  }
  0xbb   : > { %518 = vmatpush1.bf16.msra.mxu0 %v2387_v3  ;;  %v2396_v9 = vld [vmem:[#allocation5 + $0x48] ss:$12 sps:$4 sm:$0xff]   ;;  %v2397_v11 = vld [vmem:[#allocation5 + $0x64] ss:$12 sps:$4 sm:$0xff]   ;;  %v2410_v12 = vld [vmem:[#allocation5 + $0x20] ss:$12 sps:$4 sm:$0xff]  }
  0xbc   : > { %519 = vmatprep.subr.bf16.mxu0 %v2388_v4  ;;  %v2409_v10 = vld [vmem:[#allocation5 + $0x8] ss:$12 sps:$4 sm:$0xff]   ;;  %v2399_v13 = vld [vmem:[#allocation5 + $0x60] ss:$12 sps:$4 sm:$0xff]   ;;  %v2402_v15 = vld [vmem:[#allocation5 + $0x78] ss:$12 sps:$4 sm:$0xff]  }
  0xbd   : > { %2189 = vmatpush3.bf16.msra.mxu1 %v2409_v10  ;;  %v2400_v14 = vld [vmem:[#allocation5 + $0x7c] ss:$12 sps:$4 sm:$0xff]   ;;  %v2411_v16 = vld [vmem:[#allocation5 + $0x38] ss:$12 sps:$4 sm:$0xff]   ;;  %v2403_v17 = vld [vmem:[#allocation5 + $0x94] ss:$12 sps:$4 sm:$0xff]  }
  0xbe   : > { %2190 = vmatprep.subr.bf16.mxu1 %v2788_v1  ;;  %v2412_v18 = vld [vmem:[#allocation5 + $0x50] ss:$12 sps:$4 sm:$0xff]   ;;  %v2406_v20 = vld [vmem:[#allocation5 + $0xac] ss:$12 sps:$4 sm:$0xff]   ;;  %v2413_v21 = vld [vmem:[#allocation5 + $0x68] ss:$12 sps:$4 sm:$0xff]  }
  0xbf   : > { %520 = vmatpush1.bf16.msra.mxu0 %v2390_v5  ;;  %v2405_v19 = vld [vmem:[#allocation5 + $0x90] ss:$12 sps:$4 sm:$0xff]   ;;  %v2408_v22 = vld [vmem:[#allocation5 + $0xa8] ss:$12 sps:$4 sm:$0xff]   ;;  %v2414_v24 = vld [vmem:[#allocation5 + $0x80] ss:$12 sps:$4 sm:$0xff]  }
  0xc0   : > { %521 = vmatprep.subr.bf16.mxu0 %v2391_v6  ;;  %v3083_v23 = vld [vmem:[%s3059_s29] sm:$0xff]  ;;  %vm2789_vm0 = vmmov 0   ;;  %v3099_v29 = vshrl.u32 %v377_v28, 7  ;;  %v3102_v31 = vld [vmem:[#allocation11 + $0x8] sm:$0xff]  ;;  %v3104_v32 = vld [vmem:[#allocation11] sm:$0xff]  ;;  %vm601_vm1 = vcmask 261120  }
  0xc1   : > { %2191 = vmatpush3.bf16.msra.mxu1 %v2410_v12  ;;  %v340_v25 = vpack.c.bf16 %v3083_v23, %v3083_v23  ;;  %v2415_v26 = vld [vmem:[#allocation5 + $0x98] ss:$12 sps:$4 sm:$0xff]   ;;  %v2416_v27 = vld [vmem:[#allocation5 + $0xb0] ss:$12 sps:$4 sm:$0xff]   ;;  %2204 = vmatprep.mubr.msk.bf16.mxu1 %vm2789_vm0, %v2788_v1  ;;  %s2790_s28 = smov 96   ;;  %s2791_s26 = smov 64  }
  0xc2   : > { %2192 = vmatprep.subr.bf16.mxu1 %v2788_v1  ;;  %v379_v30 = vsub.s32 0, %v3099_v29  ;;  %s2792_s11 = smov 32   ;;  %v3118_v44 = vld [vmem:[#allocation11 + $0x10] sm:$0xff]  ;;  %vm664_vm2 = vcmask 1043456   ;;  %vm648_vm3 = vcmask 64512   ;;  %vm1054_vm4 = vcmask 523264  }
  0xc3   : > { %522 = vmatpush1.bf16.msra.mxu0 %v2393_v7  ;;  %vm1056_vm5 = vcmask 785408   ;;  %s2107_s13 = sshll.u32 %s2850_s27, 7  ;;  %s337_s30 = scalar_lea.vmem [#allocation13], %s1995_s14 }
  0xc4   : > { %523 = vmatprep.subr.bf16.mxu0 %v2394_v8  ;;  %v384_v33 = vrot.slane %v3102_v31, %v379_v30  ;;  %v380_v34 = vrot.slane %v3104_v32, %v379_v30  ;;  %v388_v45 = vrot.slane %v3118_v44, %v379_v30  ;;  %s1866_s16 = sshll.u32 %s337_s30, 4  ;;  %s3215_s10 = scalar_lea.hbm %s3265_s6, %s2107_s13  ;;  %s3217_s16 = int_to_ptr.vmem [resolvable:$true] %s1866_s16 }
  0xc5   : > { %2193 = vmatpush3.bf16.msra.mxu1 %v2411_v16  ;;  %s1853_s12 = scalar_lea.sflag [#allocation4], %s3053_s15  ;;  %s2695_s19 = scalar_lea.vmem %s3217_s16, 128 }
  0xc6   : > { %2194 = vmatprep.subr.bf16.mxu1 %v2788_v1  ;;  %p2696_p2 = scmp.ne.s32.totalorder %s3217_s16, %s2695_s19  ;;  %p3284_p7 = scmp.ne.s32.totalorder %s3274_s25, 0 }
  0xc7   : > { %524 = vmatpush1.bf16.msra.mxu0 %v2396_v9  ;;  %s2793_s27 = smov [#allocation13]  }
  0xc8   : > { %525 = vmatprep.subr.bf16.mxu0 %v2397_v11  ;;  %p2697_p10 = pnand %p2696_p2, %p3284_p7  ;;  %s2699_s14 = sshll.u32 %s2793_s27, 4  ;;  %s2700_s14 = int_to_ptr.vmem [resolvable:$false] %s2699_s14 }
  0xc9   : > { %2195 = vmatpush3.bf16.msra.mxu1 %v2412_v18  ;;  %s2701_s20 = scalar_lea.vmem %s2700_s14, 256  ;;  %p2702_p11 = scmp.lt.s32.totalorder %s3217_s16, %s2700_s14 }
  0xca   : > { %2196 = vmatprep.subr.bf16.mxu1 %v2788_v1  ;;  %p2698_p1 = pneg %p2697_p10  ;;  %p2703_p12 = scmp.lt.s32.totalorder %s2701_s20, %s2695_s19 }
  0xcb   : > { %526 = vmatpush1.bf16.msra.mxu0 %v2399_v13 }
  0xcc   : > { %527 = vmatprep.subr.bf16.mxu0 %v2400_v14  ;;  %p2704_p13 = por %p2703_p12, %p2702_p11 }
  0xcd   : > { %2197 = vmatpush3.bf16.msra.mxu1 %v2413_v21 }
  0xce   : > { %2198 = vmatprep.subr.bf16.mxu1 %v2788_v1  ;;  %p2705_p3 = pnand %p2704_p13, %p2698_p1 }
  0xcf   : > { %528 = vmatpush1.bf16.msra.mxu0 %v2402_v15 }
  0xd0   : > { %529 = vmatprep.subr.bf16.mxu0 %v2403_v17 }
  0xd1   : > { %2199 = vmatpush3.bf16.msra.mxu1 %v2414_v24 }
  0xd2   : > { %2200 = vmatprep.subr.bf16.mxu1 %v2788_v1 }
  0xd3   : > { %530 = vmatpush1.bf16.msra.mxu0 %v2405_v19 }
  0xd4   : > { %531 = vmatprep.subr.bf16.mxu0 %v2406_v20 }
  0xd5   : > { %2201 = vmatpush3.bf16.msra.mxu1 %v2415_v26 }
  0xd6   : > { %2202 = vmatprep.subr.bf16.mxu1 %v2788_v1 }
  0xd7   : > { %532 = vmatpush1.bf16.msra.mxu0 %v2408_v22 }
  0xd8   : > { %2232 = vmatprep.subr.bf16.mxu0 %v2788_v1 }
  0xd9   : > { %2203 = vmatpush3.bf16.msra.mxu1 %v2416_v27 }
  0xda   : > { %550 = vmatmul.mubr.bf16.vlgmr.msra.gmra.mrb[0].mxu0 %v340_v25  ;;  %2208 = vmatprep.subr.bf16.mxu1 %v2788_v1 }
  0xdb   : > { %2234 = vmatprep.mubr.msk.bf16.mxu0 %vm2789_vm0, %v2788_v1 }
  0xdc   : > { %2205 = vmatmul.mubr.bf16.vlgmr.msra.gmra.mrb[0].mxu1 %v340_v25 }
  0xdd   : > { %2210 = vmatprep.mubr.msk.bf16.mxu1 %vm2789_vm0, %v2788_v1 }
 0x1ad   : > { %v551_v35 = vpop.f32.mrb[0].mxu0 }
 0x1ae   : > { %v553_v36 = vpop.f32.mrb[1].mxu0  ;;  %v552_v40 = vadd.f32 %v551_v35, %v380_v34 }
 0x1af   : > { %v554_v37 = vadd.f32 %v553_v36, %v384_v33  ;;  %v555_v38 = vpop.f32.mrb[2].mxu0  ;;  %v592_v46 = vpop.f32.mrb[0].mxu1 }
 0x1b0   : > { %v556_v39 = vpop.f32.mrb[3].mxu0  ;;  %v598_v43 = vpack.c.bf16 %v552_v40, %v552_v40  ;;  %v593_v47 = vadd.f32 %v592_v46, %v388_v45  ;;  %v2206_v48 = vpop.f32.mrb[1].mxu1 }
 0x1b1   : > { %v599_v41 = vpack.c.bf16 %v554_v37, %v554_v37  ;;  %v595_v49 = vpop.f32.mrb[2].mxu1 }
 0x1b2   : > { %v3121_v50 = vpack.c.bf16 %v593_v47, %v593_v47  ;;  %v2207_v51 = vpop.f32.mrb[3].mxu1 }
 0x1b3   : > { %712 = vrot.lane.b32.xlu1 %v599_v41, %s2790_s28  ;;  %v606_v42 = vsel %vm601_vm1, %v599_v41, 0 }
 0x1b4   : > { %2209 = vmatpush3.bf16.xpose.msra.mxu1 %v606_v42  ;;  %v666_v52 = vsel %vm664_vm2, %v3121_v50, 0 }
 0x1b5   : > { %2214 = vmatprep.subr.bf16.mxu1 %v2788_v1 }
 0x1b7   : > { %709 = vrot.lane.b32.xlu1 %v598_v43, %s2790_s28 }
 0x1bb   : > { %821 = vrot.lane.b32.xlu1 %v598_v43, %s2791_s26  ;;  %2211 = vmatmul.mubr.msk.bf16.vlgmr.msra.gmra.mrb[4].mxu1 %vm601_vm1, %v598_v43 }
 0x1bc   : > { %2216 = vmatprep.mubr.msk.bf16.mxu1 %vm2789_vm0, %v2788_v1  ;;  %2215 = vmatpush3.bf16.msra.mxu1 %v666_v52 }
 0x1bd   : > { %2220 = vmatprep.subr.bf16.mxu1 %v2788_v1 }
 0x1bf   : > { %933 = vrot.lane.b32.xlu1 %v599_v41, %s2792_s11 }
 0x1c3   : > { %931 = vrot.lane.b32.xlu1 %v598_v43, %s2792_s11 }
 0x225   : > { %v713_v63 = vpop.permute.xlu1 %712 }
 0x226   : > { %v718_v12 = vsel %vm601_vm1, %v713_v63, 0 }
 0x229   : > { %v710_v2 = vpop.permute.xlu1 %709 }
 0x22d   : > { %v822_v4 = vpop.permute.xlu1 %821 }
 0x231   : > { %v934_v7 = vpop.permute.xlu1 %933 }
 0x232   : > { %v939_v10 = vsel %vm601_vm1, %v934_v7, 0 }
 0x235   : > { %v932_v13 = vpop.permute.xlu1 %931 }
 0x28e   : > { %v642_v53 = vpop.f32.mrb[4].mxu1 }
 0x28f   : > { %v2212_v54 = vpop.f32.mrb[5].mxu1  ;;  %v649_v55 = vsel %vm648_vm3, %v642_v53, -inf }
 0x290   : > { %650 = vmax.xlane.f32.xlu0 %v649_v55  ;;  %v645_v56 = vpop.f32.mrb[6].mxu1 }
 0x291   : > { %v2213_v57 = vpop.f32.mrb[7].mxu1 }
 0x31d   : > { %v651_v58 = vpop.xlane.xlu0 %650 }
 0x31e   : > { %v652_v59 = vsub.f32 %v642_v53, %v651_v58 }
 0x320   : > { %v653_v60 = vmul.f32 1.442695, %v652_v59 }
 0x322   : > { %2505 = vpow2.f32 %v653_v60 }
 0x32c   : > { %v2506_v61 = vpop.eup %2505 }
 0x32d   : > { %v655_v62 = vsel %vm648_vm3, %v2506_v61, 0.0 }
 0x32e   : > { %656 = vadd.xlane.f32.xlu0 %v655_v62 }
 0x344   : > { %823 = vrot.lane.b32.xlu0 %v599_v41, %s2791_s26 }
 0x3bb   : > { %v657_v3 = vpop.xlane.xlu0 %656 }
 0x3bc   : > { %2507 = vrcp.f32 %v657_v3 }
 0x3bf   : > { %v824_v5 = vpop.permute.xlu0 %823 }
 0x3c0   : > { %v829_v6 = vsel %vm601_vm1, %v824_v5, 0 }
 0x3c1   : > { %2233 = vmatpush3.bf16.xpose.msra.mxu0 %v829_v6 }
 0x3c2   : > { %2244 = vmatprep.subr.bf16.mxu0 %v2788_v1 }
 0x3c6   : > { %v2508_v8 = vpop.eup %2507 }
 0x3c7   : > { %v659_v9 = vmul.f32 %v2508_v8, %v2506_v61 }
 0x3c8   : > { %2235 = vmatmul.mubr.msk.bf16.vlgmr.msra.gmra.mrb[4].mxu0 %vm601_vm1, %v822_v4 }
 0x3c9   : > { %2245 = vmatpush3.bf16.xpose.msra.mxu0 %v939_v10  ;;  %v660_v11 = vpack.c.bf16 %v659_v9, %v659_v9  ;;  %2246 = vmatprep.mubr.msk.bf16.mxu0 %vm2789_vm0, %v2788_v1  ;;  %v2417_v9 = vld [vmem:[#allocation7] sm:$0xff]   ;;  %v2418_v10 = vld [vmem:[#allocation7 + $0x8] sm:$0xff]  }
 0x3ca   : > { %2256 = vmatprep.subr.bf16.mxu0 %v2788_v1 }
 0x3cb   : > { %2217 = vmatmul.mubr.msk.bf16.vlgmr.msra.gmra.mrb[8].mxu1 %vm648_vm3, %v660_v11  ;;  %v2419_v11 = vld [vmem:[#allocation7 + $0x10] sm:$0xff]  }
 0x3cc   : > { %2221 = vmatpush3.bf16.xpose.msra.mxu1 %v718_v12  ;;  %2222 = vmatprep.mubr.msk.bf16.mxu1 %vm2789_vm0, %v2788_v1  ;;  %v2420_v12 = vld [vmem:[#allocation7 + $0x18] sm:$0xff]  }
 0x3cd   : > { %2226 = vmatprep.subr.bf16.mxu1 %v2788_v1 }
 0x3d0   : > { %2247 = vmatmul.mubr.msk.bf16.vlgmr.msra.gmra.mrb[8].mxu0 %vm601_vm1, %v932_v13  ;;  %v2421_v13 = vld [vmem:[#allocation7 + $0x20] sm:$0xff]  }
 0x3d1   : > { %2272 = vmatprep.mubr.msk.bf16.mxu0 %vm2789_vm0, %v2788_v1  ;;  %2257 = vmatpush3.bf16.msra.mxu0 %v2417_v9  ;;  %v2460_v9 = vld [vmem:[#allocation8 + $0xac] ss:$16 sps:$4 sm:$0xff]  }
 0x3d2   : > { %2258 = vmatprep.subr.bf16.mxu0 %v2788_v1 }
 0x3d3   : > { %2223 = vmatmul.mubr.msk.bf16.vlgmr.msra.gmra.mrb[12].mxu1 %vm601_vm1, %v710_v2 }
 0x3d4   : > { %2228 = vmatprep.mubr.msk.bf16.mxu1 %vm2789_vm0, %v2788_v1 }
 0x3d5   : > { %2259 = vmatpush3.bf16.msra.mxu0 %v2418_v10  ;;  %v2455_v10 = vld [vmem:[#allocation8 + $0xa0] ss:$16 sps:$4 sm:$0xff]  }
 0x3d6   : > { %2260 = vmatprep.subr.bf16.mxu0 %v2788_v1 }
 0x3d9   : > { %2261 = vmatpush3.bf16.msra.mxu0 %v2419_v11  ;;  %v2458_v11 = vld [vmem:[#allocation8 + $0xa8] ss:$16 sps:$4 sm:$0xff]  }
 0x3da   : > { %2262 = vmatprep.subr.bf16.mxu0 %v2788_v1 }
 0x3dd   : > { %2263 = vmatpush3.bf16.msra.mxu0 %v2420_v12  ;;  %v2463_v12 = vld [vmem:[#allocation8 + $0xc4] ss:$16 sps:$4 sm:$0xff]  }
 0x3de   : > { %2264 = vmatprep.subr.bf16.mxu0 %v2788_v1 }
 0x3e1   : > { %2265 = vmatpush3.bf16.msra.mxu0 %v2421_v13  ;;  %v2466_v13 = vld [vmem:[#allocation8 + $0xcc] ss:$16 sps:$4 sm:$0xff]  }
 0x3e2   : > { %2266 = vmatprep.subr.bf16.mxu0 %v2788_v1 }
 0x49b   : > { %v865_v14 = vpop.f32.mrb[4].mxu0 }
 0x49c   : > { %v2236_v15 = vpop.f32.mrb[5].mxu0  ;;  %v871_v16 = vsel %vm648_vm3, %v865_v14, -inf }
 0x49d   : > { %872 = vmax.xlane.f32.xlu0 %v871_v16  ;;  %v868_v17 = vpop.f32.mrb[6].mxu0  ;;  %v2423_v15 = vld [vmem:[#allocation7 + $0x30] sm:$0xff]  }
 0x49e   : > { %v3148_v18 = vpop.f32.mrb[8].mxu1  ;;  %v2237_v19 = vpop.f32.mrb[7].mxu0 }
 0x49f   : > { %v2218_v20 = vpop.f32.mrb[9].mxu1 }
 0x4a0   : > { %v705_v21 = vpop.f32.mrb[10].mxu1 }
 0x4a1   : > { %v2219_v22 = vpop.f32.mrb[11].mxu1  ;;  %v2424_v21 = vld [vmem:[#allocation7 + $0x38] sm:$0xff]  }
 0x4a3   : > { %v975_v24 = vpop.f32.mrb[8].mxu0 }
 0x4a4   : > { %v2248_v25 = vpop.f32.mrb[9].mxu0  ;;  %v981_v36 = vsel %vm648_vm3, %v975_v24, -inf }
 0x4a5   : > { %v978_v26 = vpop.f32.mrb[10].mxu0 }
 0x4a6   : > { %v754_v27 = vpop.f32.mrb[12].mxu1  ;;  %v2249_v28 = vpop.f32.mrb[11].mxu0 }
 0x4a7   : > { %v2224_v30 = vpop.f32.mrb[13].mxu1  ;;  %v760_v33 = vsel %vm648_vm3, %v754_v27, -inf }
 0x4a8   : > { %761 = vmax.xlane.f32.xlu1 %v760_v33  ;;  %v757_v34 = vpop.f32.mrb[14].mxu1 }
 0x4a9   : > { %v2225_v35 = vpop.f32.mrb[15].mxu1 }
 0x4ac   : > { %982 = vmax.xlane.f32.xlu1 %v981_v36 }
 0x52a   : > { %v873_v37 = vpop.xlane.xlu0 %872 }
 0x52b   : > { %v874_v38 = vsub.f32 %v865_v14, %v873_v37  ;;  %v2422_v14 = vld [vmem:[#allocation7 + $0x28] sm:$0xff]  }
 0x52c   : > { %2267 = vmatpush3.bf16.msra.mxu0 %v2422_v14  ;;  %v2461_v14 = vld [vmem:[#allocation8 + $0xc0] ss:$16 sps:$4 sm:$0xff]  }
 0x52d   : > { %v875_v39 = vmul.f32 1.442695, %v874_v38  ;;  %2268 = vmatprep.subr.bf16.mxu0 %v2788_v1 }
 0x52f   : > { %2509 = vpow2.f32 %v875_v39 }
 0x530   : > { %2269 = vmatpush3.bf16.msra.mxu0 %v2423_v15  ;;  %v2464_v15 = vld [vmem:[#allocation8 + $0xc8] ss:$16 sps:$4 sm:$0xff]  }
 0x531   : > { %2270 = vmatprep.subr.bf16.mxu0 %v2788_v1 }
 0x534   : > { %2271 = vmatpush3.bf16.msra.mxu0 %v2424_v21  ;;  %v2473_v21 = vld [vmem:[#allocation10 + $0x40] sm:$0xff]  }
 0x535   : > { %v762_v40 = vpop.xlane.xlu1 %761 }
 0x536   : > { %v763_v41 = vsub.f32 %v754_v27, %v762_v40  ;;  %v1077_v40 = vsub.s32 2, %v3099_v29 }
 0x538   : > { %v764_v47 = vmul.f32 1.442695, %v763_v41  ;;  %v1078_v41 = vrot.slane %v3104_v32, %v1077_v40  ;;  %v2477_v40 = vld [vmem:[#allocation10 + $0x48] sm:$0xff]  }
 0x539   : > { %v2510_v42 = vpop.eup %2509  ;;  %v983_v43 = vpop.xlane.xlu1 %982 }
 0x53a   : > { %v984_v45 = vsub.f32 %v975_v24, %v983_v43  ;;  %v877_v46 = vsel %vm648_vm3, %v2510_v42, 0.0 }
 0x53b   : > { %878 = vadd.xlane.f32.xlu0 %v877_v46 }
 0x53c   : > { %v985_v48 = vmul.f32 1.442695, %v984_v45 }
 0x53e   : > { %2511 = vpow2.f32 %v985_v48 }
 0x53f   : > { %2513 = vpow2.f32 %v764_v47 }
 0x548   : > { %v2512_v49 = vpop.eup %2511 }
 0x549   : > { %v987_v51 = vsel %vm648_vm3, %v2512_v49, 0.0  ;;  %v2514_v52 = vpop.eup %2513 }
 0x54a   : > { %988 = vadd.xlane.f32.xlu1 %v987_v51  ;;  %v766_v53 = vsel %vm648_vm3, %v2514_v52, 0.0  ;;  %v2428_v51 = vld [vmem:[#allocation8 + $0x8] ss:$16 sps:$4 sm:$0xff]  }
 0x54e   : > { %767 = vadd.xlane.f32.xlu1 %v766_v53  ;;  %v2433_v53 = vld [vmem:[#allocation8 + $0x24] ss:$16 sps:$4 sm:$0xff]  }
 0x551   : > { %773 = vrot.lane.b32.xlu0 %v3121_v50, %s2790_s28 }
 0x55f   : > { %883 = vrot.lane.b32.xlu1 %v3121_v50, %s2791_s26 }
 0x563   : > { %993 = vrot.lane.b32.xlu1 %v3121_v50, %s2792_s11 }
 0x5c8   : > { %v879_v54 = vpop.xlane.xlu0 %878 }
 0x5cc   : > { %v774_v55 = vpop.permute.xlu0 %773 }
 0x5cd   : > { %v779_v56 = vsel %vm664_vm2, %v774_v55, 0  ;;  %v2434_v55 = vld [vmem:[#allocation8 + $0x28] ss:$16 sps:$4 sm:$0xff]  }
 0x5ce   : > { %2227 = vmatpush3.bf16.msra.mxu1 %v779_v56  ;;  %v2439_v56 = vld [vmem:[#allocation8 + $0x44] ss:$16 sps:$4 sm:$0xff]  }
 0x5cf   : > { %2238 = vmatprep.subr.bf16.mxu1 %v2788_v1 }
 0x5d7   : > { %v989_v57 = vpop.xlane.xlu1 %988 }
 0x5db   : > { %v768_v58 = vpop.xlane.xlu1 %767 }
 0x5dc   : > { %2515 = vrcp.f32 %v768_v58  ;;  %v2437_v58 = vld [vmem:[#allocation8 + $0x40] ss:$16 sps:$4 sm:$0xff]  }
 0x5dd   : > { %2517 = vrcp.f32 %v879_v54  ;;  %v2436_v54 = vld [vmem:[#allocation8 + $0x2c] ss:$16 sps:$4 sm:$0xff]  }
 0x5de   : > { %2519 = vrcp.f32 %v989_v57  ;;  %v2442_v57 = vld [vmem:[#allocation8 + $0x4c] ss:$16 sps:$4 sm:$0xff]  }
 0x5df   : > { %v884_v61 = vpop.permute.xlu1 %883 }
 0x5e0   : > { %v889_v2 = vsel %vm664_vm2, %v884_v61, 0 }
 0x5e3   : > { %v994_v3 = vpop.permute.xlu1 %993 }
 0x5e4   : > { %v999_v6 = vsel %vm664_vm2, %v994_v3, 0  ;;  %v2446_v3 = vld [vmem:[#allocation8 + $0x68] ss:$16 sps:$4 sm:$0xff]  }
 0x5e6   : > { %v2516_v59 = vpop.eup %2515 }
 0x5e7   : > { %v770_v60 = vmul.f32 %v2516_v59, %v2514_v52  ;;  %v2518_v63 = vpop.eup %2517  ;;  %v2430_v52 = vld [vmem:[#allocation8 + $0xc] ss:$16 sps:$4 sm:$0xff]  }
 0x5e8   : > { %v881_v50 = vmul.f32 %v2518_v63, %v2510_v42  ;;  %v2520_v5 = vpop.eup %2519  ;;  %1440 = vmatprep.subr.bf16.mxu0 %v2430_v52  ;;  %v2445_v63 = vld [vmem:[#allocation8 + $0x64] ss:$16 sps:$4 sm:$0xff]   ;;  %v2488_v52 = vld [vmem:[#allocation10 + $0x98] sm:$0xff]  }
 0x5e9   : > { %v771_v62 = vpack.c.bf16 %v770_v60, %v770_v60  ;;  %v991_v7 = vmul.f32 %v2520_v5, %v2512_v49  ;;  %v2427_v49 = vld [vmem:[#allocation8 + $0x4] ss:$16 sps:$4 sm:$0xff]   ;;  %v2454_v5 = vld [vmem:[#allocation8 + $0x8c] ss:$16 sps:$4 sm:$0xff]  }
 0x5ea   : > { %v882_v4 = vpack.c.bf16 %v881_v50, %v881_v50  ;;  %v2443_v50 = vld [vmem:[#allocation8 + $0x60] ss:$16 sps:$4 sm:$0xff]  }
 0x5eb   : > { %2229 = vmatmul.mubr.msk.bf16.vlgmr.msra.gmra.mrb[16].mxu1 %vm648_vm3, %v771_v62  ;;  %v992_v8 = vpack.c.bf16 %v991_v7, %v991_v7  ;;  %v2452_v7 = vld [vmem:[#allocation8 + $0x88] ss:$16 sps:$4 sm:$0xff]  }
 0x5ec   : > { %2239 = vmatpush3.bf16.msra.mxu1 %v889_v2  ;;  %2240 = vmatprep.mubr.msk.bf16.mxu1 %vm2789_vm0, %v2788_v1  ;;  %v2448_v2 = vld [vmem:[#allocation8 + $0x6c] ss:$16 sps:$4 sm:$0xff]  }
 0x5ed   : > { %2250 = vmatprep.subr.bf16.mxu1 %v2788_v1 }
 0x5f3   : > { %2241 = vmatmul.mubr.msk.bf16.vlgmr.msra.gmra.mrb[20].mxu1 %vm648_vm3, %v882_v4  ;;  %v2451_v4 = vld [vmem:[#allocation8 + $0x84] ss:$16 sps:$4 sm:$0xff]  }
 0x5f4   : > { %2251 = vmatpush3.bf16.msra.mxu1 %v999_v6  ;;  %2252 = vmatprep.mubr.msk.bf16.mxu1 %vm2789_vm0, %v2788_v1  ;;  %v2449_v6 = vld [vmem:[#allocation8 + $0x80] ss:$16 sps:$4 sm:$0xff]  }
 0x5f5   : > { %1399 = vmatprep.subr.bf16.mxu1 %v2427_v49  ;;  %v2486_v49 = vld [vmem:[#allocation10 + $0xd8] sm:$0xff]  }
 0x5fb   : > { %2253 = vmatmul.mubr.msk.bf16.vlgmr.msra.gmra.mrb[24].mxu1 %vm648_vm3, %v992_v8  ;;  %v2457_v8 = vld [vmem:[#allocation8 + $0xa4] ss:$16 sps:$4 sm:$0xff]  }
 0x5fc   : > { %1431 = vmatprep.mubr.bf16.mxu1 %v2787_v0 }
 0x6be   : > { %v815_v16 = vpop.f32.mrb[16].mxu1 }
 0x6bf   : > { %1042 = vrot.lane.b32.xlu0 %v815_v16, %s2792_s11  ;;  %v2230_v17 = vpop.f32.mrb[17].mxu1  ;;  %v2469_v16 = vld [vmem:[#allocation8 + $0xe4] ss:$16 sps:$4 sm:$0xff]  }
 0x6c0   : > { %v818_v19 = vpop.f32.mrb[18].mxu1  ;;  %v2472_v17 = vld [vmem:[#allocation8 + $0xec] ss:$16 sps:$4 sm:$0xff]  }
 0x6c1   : > { %v2231_v20 = vpop.f32.mrb[19].mxu1  ;;  %v2467_v19 = vld [vmem:[#allocation8 + $0xe0] ss:$16 sps:$4 sm:$0xff]  }
 0x6c2   : > { %v2470_v20 = vld [vmem:[#allocation8 + $0xe8] ss:$16 sps:$4 sm:$0xff]  }
 0x6c6   : > { %v925_v22 = vpop.f32.mrb[20].mxu1 }
 0x6c7   : > { %1046 = vrot.lane.b32.xlu1 %v925_v22, %s2791_s26  ;;  %v2242_v24 = vpop.f32.mrb[21].mxu1  ;;  %v2474_v22 = vld [vmem:[#allocation10 + $0xc0] sm:$0xff]  }
 0x6c8   : > { %v928_v25 = vpop.f32.mrb[22].mxu1 }
 0x6c9   : > { %v2243_v26 = vpop.f32.mrb[23].mxu1 }
 0x6ce   : > { %v1035_v27 = vpop.f32.mrb[24].mxu1 }
 0x6cf   : > { %1050 = vrot.lane.b32.xlu0 %v1035_v27, %s2790_s28  ;;  %v2254_v28 = vpop.f32.mrb[25].mxu1  ;;  %v1182_v27 = vsub.s32 3, %v3099_v29 }
 0x6d0   : > { %v1038_v30 = vpop.f32.mrb[26].mxu1  ;;  %v1187_v28 = vsub.s32 4, %v3099_v29 }
 0x6d1   : > { %v2255_v33 = vpop.f32.mrb[27].mxu1  ;;  %v1183_v30 = vrot.slane %v3104_v32, %v1182_v27 }
 0x731   : > { %v1043_v34 = vpop.permute.xlu0 %1042 }
 0x732   : > { %v1053_v1 = vsel %vm601_vm1, %v3148_v18, %v1043_v34  ;;  %v2425_v18 = vld [vmem:[#allocation8] ss:$16 sps:$4 sm:$0xff]  }
 0x733   : > { %1400 = vmatpush1.bf16.msra.mxu1 %v2425_v18  ;;  %v2485_v18 = vld [vmem:[#allocation10 + $0x58] sm:$0xff]  }
 0x734   : > { %1401 = vmatprep.subr.bf16.mxu1 %v2433_v53  ;;  %v2489_v53 = vld [vmem:[#allocation10 + $0x60] sm:$0xff]  }
 0x739   : > { %v1047_v35 = vpop.permute.xlu1 %1046 }
 0x73a   : > { %v1055_v36 = vsel %vm1054_vm4, %v1053_v1, %v1047_v35  ;;  %v1188_v35 = vrot.slane %v3104_v32, %v1187_v28 }
 0x741   : > { %v1051_v37 = vpop.permute.xlu0 %1050 }
 0x742   : > { %v1057_v38 = vsel %vm1056_vm5, %v1055_v36, %v1051_v37  ;;  %v2475_v37 = vld [vmem:[#allocation10] sm:$0xff]  }
 0x743   : > { %v1058_v39 = vpack.c.bf16 %v1057_v38, %v1057_v38  ;;  %v2476_v38 = vld [vmem:[#allocation10 + $0x80] sm:$0xff]  }
 0x745   : > { %2273 = vmatmul.mubr.bf16.vlgmr.msra.gmra.mrb[12].mxu0 %v1058_v39 }
 0x746   : > { %1472 = vmatprep.mubr.bf16.mxu0 %v2787_v0  ;;  %v2431_v0 = vld [vmem:[#allocation8 + $0x20] ss:$16 sps:$4 sm:$0xff]   ;;  %1441 = vmatpush1.bf16.msra.mxu0 %v2428_v51  ;;  %v2487_v51 = vld [vmem:[#allocation10 + $0x18] sm:$0xff]  }
 0x747   : > { %1442 = vmatprep.subr.bf16.mxu0 %v2436_v54  ;;  %1402 = vmatpush1.bf16.msra.mxu1 %v2431_v0  ;;  %v2490_v54 = vld [vmem:[#allocation10 + $0xe0] sm:$0xff]  }
 0x748   : > { %1403 = vmatprep.subr.bf16.mxu1 %v2439_v56  ;;  %v2491_v0 = vld [vmem:[#allocation10 + $0x20] sm:$0xff]   ;;  %v2493_v56 = vld [vmem:[#allocation10 + $0x68] sm:$0xff]  }
 0x74a   : > { %1443 = vmatpush1.bf16.msra.mxu0 %v2434_v55  ;;  %v2492_v55 = vld [vmem:[#allocation10 + $0xa0] sm:$0xff]  }
 0x74b   : > { %1444 = vmatprep.subr.bf16.mxu0 %v2442_v57  ;;  %1404 = vmatpush1.bf16.msra.mxu1 %v2437_v58  ;;  %v2494_v57 = vld [vmem:[#allocation10 + $0xe8] sm:$0xff]  }
 0x74c   : > { %1405 = vmatprep.subr.bf16.mxu1 %v2445_v63  ;;  %v2495_v58 = vld [vmem:[#allocation10 + $0x28] sm:$0xff]   ;;  %v2501_v63 = vld [vmem:[#allocation10 + $0x78] sm:$0xff]  }
 0x74f   : > { %1406 = vmatpush1.bf16.msra.mxu1 %v2443_v50  ;;  %v2503_v50 = vld [vmem:[#allocation10 + $0x38] sm:$0xff]  }
 0x750   : > { %1407 = vmatprep.subr.bf16.mxu1 %v2451_v4  ;;  %v1225_v4 = vsub.s32 1, %v3099_v29 }
 0x753   : > { %1408 = vmatpush1.bf16.msra.mxu1 %v2449_v6  ;;  %v1226_v6 = vrot.slane %v3104_v32, %v1225_v4 }
 0x754   : > { %1409 = vmatprep.subr.bf16.mxu1 %v2457_v8  ;;  %v1230_v8 = vrot.slane %v3102_v31, %v1225_v4 }
 0x757   : > { %1410 = vmatpush1.bf16.msra.mxu1 %v2455_v10 }
 0x758   : > { %1411 = vmatprep.subr.bf16.mxu1 %v2463_v12 }
 0x75b   : > { %1412 = vmatpush1.bf16.msra.mxu1 %v2461_v14 }
 0x75c   : > { %1413 = vmatprep.subr.bf16.mxu1 %v2469_v16 }
 0x75f   : > { %1414 = vmatpush1.bf16.msra.mxu1 %v2467_v19 }
 0x760   : > { %2144 = vmatprep.subr.bf16.mxu1 %v2473_v21 }
 0x818   : > { %v1161_v42 = vpop.f32.mrb[12].mxu0 }
 0x819   : > { %v1162_v43 = vadd.f32 %v1161_v42, %v1078_v41  ;;  %v2274_v45 = vpop.f32.mrb[13].mxu0  ;;  %v2478_v41 = vld [vmem:[#allocation10 + $0xc8] sm:$0xff]  }
 0x81a   : > { %v1164_v46 = vpop.f32.mrb[14].mxu0  ;;  %v2479_v42 = vld [vmem:[#allocation10 + $0x8] sm:$0xff]   ;;  %v2481_v45 = vld [vmem:[#allocation10 + $0x50] sm:$0xff]  }
 0x81b   : > { %v2275_v47 = vpop.f32.mrb[15].mxu0  ;;  %v1167_v48 = vadd.f32 %v1162_v43, %v3083_v23  ;;  %v2440_v23 = vld [vmem:[#allocation8 + $0x48] ss:$16 sps:$4 sm:$0xff]   ;;  %v2482_v46 = vld [vmem:[#allocation10 + $0xd0] sm:$0xff]  }
 0x81c   : > { %1445 = vmatpush1.bf16.msra.mxu0 %v2440_v23  ;;  %v2480_v43 = vld [vmem:[#allocation10 + $0x88] sm:$0xff]   ;;  %v2483_v47 = vld [vmem:[#allocation10 + $0x10] sm:$0xff]  }
 0x81d   : > { %1168 = vadd.xlane.f32.xlu1 %v1167_v48  ;;  %1446 = vmatprep.subr.bf16.mxu0 %v2448_v2  ;;  %v2496_v23 = vld [vmem:[#allocation10 + $0xa8] sm:$0xff]   ;;  %v2502_v2 = vld [vmem:[#allocation10 + $0xf8] sm:$0xff]  }
 0x820   : > { %1447 = vmatpush1.bf16.msra.mxu0 %v2446_v3  ;;  %v2504_v3 = vld [vmem:[#allocation10 + $0xb8] sm:$0xff]  }
 0x821   : > { %1448 = vmatprep.subr.bf16.mxu0 %v2454_v5  ;;  %v344_v5 = vld [vmem:[#allocation11 + $0x18] sm:$0xff] }
 0x824   : > { %1449 = vmatpush1.bf16.msra.mxu0 %v2452_v7  ;;  %v1234_v7 = vrot.slane %v3118_v44, %v1225_v4 }
 0x825   : > { %1450 = vmatprep.subr.bf16.mxu0 %v2460_v9  ;;  %v1238_v9 = vrot.slane %v344_v5, %v1225_v4 }
 0x828   : > { %1451 = vmatpush1.bf16.msra.mxu0 %v2458_v11 }
 0x829   : > { %1452 = vmatprep.subr.bf16.mxu0 %v2466_v13 }
 0x82c   : > { %1453 = vmatpush1.bf16.msra.mxu0 %v2464_v15 }
 0x82d   : > { %1454 = vmatprep.subr.bf16.mxu0 %v2472_v17 }
 0x830   : > { %1455 = vmatpush1.bf16.msra.mxu0 %v2470_v20 }
 0x831   : > { %2166 = vmatprep.subr.bf16.mxu0 %v2474_v22 }
 0x8aa   : > { %v1169_v59 = vpop.xlane.xlu1 %1168 }
 0x8ab   : > { %v1171_v60 = vmul.f32 0.0078125, %v1169_v59  ;;  %v2497_v59 = vld [vmem:[#allocation10 + $0x70] sm:$0xff]  }
 0x8ad   : > { %v1172_v61 = vsub.f32 %v1167_v48, %v1171_v60  ;;  %v2484_v48 = vld [vmem:[#allocation10 + $0x90] sm:$0xff]  }
 0x8ae   : > { %v2498_v60 = vld [vmem:[#allocation10 + $0xf0] sm:$0xff]  }
 0x8af   : > { %v1173_v62 = vmul.f32 %v1172_v61, %v1172_v61 }
 0x8b1   : > { %1174 = vadd.xlane.f32.xlu0 %v1173_v62  ;;  %v2500_v62 = vld [vmem:[#allocation10 + $0xb0] sm:$0xff]  }
 0x93e   : > { %v1175_v24 = vpop.xlane.xlu0 %1174 }
 0x93f   : > { %v1176_v25 = vmul.f32 0.0078125, %v1175_v24 }
 0x941   : > { %v1177_v26 = vadd.f32 1e-05, %v1176_v25 }
 0x943   : > { %2521 = vrsqrt.f32 %v1177_v26 }
 0x94d   : > { %v2522_v33 = vpop.eup %2521 }
 0x94e   : > { %v1179_v34 = vmul.f32 %v2522_v33, %v1172_v61  ;;  %v2499_v61 = vld [vmem:[#allocation10 + $0x30] sm:$0xff]   ;;  %v1555_v33 = vsub.s32 5, %v3099_v29 }
 0x950   : > { %v1184_v1 = vmul.f32 %v1183_v30, %v1179_v34 }
 0x952   : > { %v3194_v36 = vadd.f32 %v1188_v35, %v1184_v1  ;;  %v1556_v1 = vrot.slane %v3104_v32, %v1555_v33 }
 0x954   : > { %v1190_v39 = vpack.c.bf16 %v3194_v36, %v3194_v36 }
 0x956   : > { %1432 = vmatmul.mubr.bf16.vlgmr.msra.gmra.mrb[28].mxu1 %v1190_v39  ;;  %1473 = vmatmul.mubr.bf16.vlgmr.msra.gmra.mrb[16].mxu0 %v1190_v39 }
 0x957   : > { %2145 = vmatpush3.bf16.msra.mxu1 %v2475_v37  ;;  %2167 = vmatpush3.bf16.msra.mxu0 %v2476_v38 }
 0x958   : > { %2146 = vmatprep.subr.bf16.mxu1 %v2477_v40  ;;  %2168 = vmatprep.subr.bf16.mxu0 %v2478_v41 }
 0x95b   : > { %2147 = vmatpush3.bf16.msra.mxu1 %v2479_v42  ;;  %2169 = vmatpush3.bf16.msra.mxu0 %v2480_v43 }
 0x95c   : > { %2148 = vmatprep.subr.bf16.mxu1 %v2481_v45  ;;  %2170 = vmatprep.subr.bf16.mxu0 %v2482_v46 }
 0x95f   : > { %2149 = vmatpush3.bf16.msra.mxu1 %v2483_v47  ;;  %2171 = vmatpush3.bf16.msra.mxu0 %v2484_v48 }
 0x960   : > { %2150 = vmatprep.subr.bf16.mxu1 %v2485_v18  ;;  %2172 = vmatprep.subr.bf16.mxu0 %v2486_v49 }
 0x963   : > { %2151 = vmatpush3.bf16.msra.mxu1 %v2487_v51  ;;  %2173 = vmatpush3.bf16.msra.mxu0 %v2488_v52 }
 0x964   : > { %2152 = vmatprep.subr.bf16.mxu1 %v2489_v53  ;;  %2174 = vmatprep.subr.bf16.mxu0 %v2490_v54 }
 0x967   : > { %2153 = vmatpush3.bf16.msra.mxu1 %v2491_v0  ;;  %2175 = vmatpush3.bf16.msra.mxu0 %v2492_v55  ;;  %v1843_v55 = vsub.s32 6, %v3099_v29 }
 0x968   : > { %2154 = vmatprep.subr.bf16.mxu1 %v2493_v56  ;;  %2176 = vmatprep.subr.bf16.mxu0 %v2494_v57  ;;  %v1848_v56 = vsub.s32 7, %v3099_v29 }
 0x96b   : > { %2155 = vmatpush3.bf16.msra.mxu1 %v2495_v58  ;;  %2177 = vmatpush3.bf16.msra.mxu0 %v2496_v23  ;;  %v1849_v23 = vrot.slane %v3104_v32, %v1848_v56 }
 0x96c   : > { %2156 = vmatprep.subr.bf16.mxu1 %v2497_v59  ;;  %2178 = vmatprep.subr.bf16.mxu0 %v2498_v60 }
 0x96f   : > { %2157 = vmatpush3.bf16.msra.mxu1 %v2499_v61  ;;  %2179 = vmatpush3.bf16.msra.mxu0 %v2500_v62 }
 0x970   : > { %2158 = vmatprep.subr.bf16.mxu1 %v2501_v63  ;;  %2180 = vmatprep.subr.bf16.mxu0 %v2502_v2 }
 0x973   : > { %2159 = vmatpush3.bf16.msra.mxu1 %v2503_v50  ;;  %2181 = vmatpush3.bf16.msra.mxu0 %v2504_v3 }
 0xa29   : > { %v1433_v10 = vpop.f32.mrb[28].mxu1  ;;  %v1474_v11 = vpop.f32.mrb[16].mxu0 }
 0xa2a   : > { %v1434_v12 = vadd.f32 %v1433_v10, %v1226_v6  ;;  %v1475_v13 = vadd.f32 %v1474_v11, %v1234_v7  ;;  %v1435_v14 = vpop.f32.mrb[29].mxu1  ;;  %v1476_v15 = vpop.f32.mrb[17].mxu0 }
 0xa2b   : > { %v1436_v16 = vadd.f32 %v1435_v14, %v1230_v8  ;;  %v1477_v17 = vadd.f32 %v1476_v15, %v1238_v9  ;;  %v1437_v19 = vpop.f32.mrb[30].mxu1  ;;  %v1478_v20 = vpop.f32.mrb[18].mxu0 }
 0xa2c   : > { %v1481_v21 = vmax.f32 %v1434_v12, 0.0  ;;  %v1483_v22 = vmax.f32 %v1475_v13, 0.0  ;;  %v1438_v24 = vpop.f32.mrb[31].mxu1  ;;  %v1479_v25 = vpop.f32.mrb[19].mxu0 }
 0xa2d   : > { %v1482_v26 = vmax.f32 %v1436_v16, 0.0  ;;  %v1484_v27 = vmax.f32 %v1477_v17, 0.0 }
 0xa2e   : > { %v1485_v31 = vpack.c.bf16 %v1481_v21, %v1481_v21  ;;  %v1487_v30 = vpack.c.bf16 %v1483_v22, %v1483_v22 }
 0xa2f   : > { %v1486_v44 = vpack.c.bf16 %v1482_v26, %v1482_v26  ;;  %v1488_v28 = vpack.c.bf16 %v1484_v27, %v1484_v27 }
 0xa31   : > { %1781 = vmatprep.mubr.bf16.mxu1 %v1486_v44  ;;  %1821 = vmatprep.mubr.bf16.mxu0 %v1488_v28 }
 0xa32   : > { %1782 = vmatmul.mubr.bf16.vlgmr.msra.gmra.mrb[32].mxu1 %v1485_v31  ;;  %1822 = vmatmul.mubr.bf16.vlgmr.msra.gmra.mrb[20].mxu0 %v1487_v30 }
 0xb05   : > { %v2160_v34 = vpop.f32.mrb[32].mxu1  ;;  %v2182_v35 = vpop.f32.mrb[20].mxu0 }
 0xb06   : > { %v2161_v37 = vpop.f32.mrb[33].mxu1  ;;  %v2183_v38 = vpop.f32.mrb[21].mxu0 }
 0xb07   : > { %v2162_v39 = vadd.f32 %v2161_v37, %v2160_v34  ;;  %v2184_v40 = vadd.f32 %v2183_v38, %v2182_v35  ;;  %v2163_v41 = vpop.f32.mrb[34].mxu1  ;;  %v2185_v42 = vpop.f32.mrb[22].mxu0 }
 0xb08   : > { %v2164_v43 = vpop.f32.mrb[35].mxu1  ;;  %v2186_v45 = vpop.f32.mrb[23].mxu0 }
 0xb09   : > { %v1784_v46 = vadd.f32 %v2162_v39, %v1556_v1 }
 0xb0b   : > { %v1824_v47 = vadd.f32 %v2184_v40, %v1784_v46 }
 0xb0d   : > { %v1829_v48 = vadd.f32 %v1824_v47, %v3194_v36  ;;  %v1844_v36 = vrot.slane %v3104_v32, %v1843_v55 }
 0xb0f   : > { %1830 = vadd.xlane.f32.xlu0 %v1829_v48 }
 0xb9c   : > { %v1831_v18 = vpop.xlane.xlu0 %1830 }
 0xb9d   : > { %v1832_v49 = vmul.f32 0.0078125, %v1831_v18 }
 0xb9f   : > { %v1833_v51 = vsub.f32 %v1829_v48, %v1832_v49 }
 0xba1   : > { %v1834_v52 = vmul.f32 %v1833_v51, %v1833_v51 }
 0xba3   : > { %1835 = vadd.xlane.f32.xlu1 %v1834_v52 }
 0xc30   : > { %v1836_v53 = vpop.xlane.xlu1 %1835 }
 0xc31   : > { %v1837_v54 = vmul.f32 0.0078125, %v1836_v53 }
 0xc33   : > { %v1838_v0 = vadd.f32 1e-05, %v1837_v54 }
 0xc35   : > { %2523 = vrsqrt.f32 %v1838_v0 }
 0xc3f   : > { %v2524_v57 = vpop.eup %2523 }
 0xc40   : > { %v1840_v58 = vmul.f32 %v2524_v57, %v1833_v51 }
 0xc42   : > { %v1845_v59 = vmul.f32 %v1844_v36, %v1840_v58 }
 0xc44   : > { %v1850_v60 = vadd.f32 %v1849_v23, %v1845_v59 }
 0xc46   : > { %1851 = vst [vmem:[%s337_s30] sm:$0xff] %v1850_v60 }
 0xc47   : > { %2708 = shalt.err (!%p2705_p3)
}
 0xc48   : > { %s2709_s15 = scalar_lea.hbm %s3215_s10, 128  ;;  %s2713_s26 = scalar_lea.hbm %s3265_s6, 256 }
 0xc49   : > { %p2710_p6 = scmp.ne.s32.totalorder %s3215_s10, %s2709_s15  ;;  %p2714_p8 = scmp.lt.u32.totalorder %s3215_s10, %s3265_s6 }
 0xc4a   : > { %p2715_p0 = scmp.lt.u32.totalorder %s2713_s26, %s2709_s15  ;;  %p2717_p2 = scmp.lt.u32.totalorder %s2709_s15, %s3215_s10 }
 0xc4b   : > { %p2711_p9 = pnand %p2710_p6, %p3284_p7 }
 0xc4c   : > { %p2716_p5 = por %p2715_p0, %p2714_p8 }
 0xc4d   : > { %p2712_p4 = pneg %p2711_p9 }
 0xc4e   : > { %p2718_p10 = por %p2717_p2, %p2716_p5 }
 0xc50   : > { %p2719_p1 = pnand %p2718_p10, %p2712_p4 }
 0xc52   : > { %2722 = shalt.err (!%p2719_p1)
}
 0xc53   : > { %2298 = dma.vmem_to_hbm [thread:$0]  (%p3284_p7), %s3217_s16, 128, %s3215_s10, %s1853_s12  }
 0xc54 PF: > { %s1878_s30 = sand.u32 1, %s2761_s21   ;;  %p3285_p11 = scmp.ne.s32.totalorder %s3275_s18, 0 }
 0xc55   : > { %p3286_p12 = scmp.ge.s32.totalorder %s2773_s24, 2  ;;  %s1879_s8 = scalar_lea.sflag [#allocation4], %s1878_s30 }
 0xc57   : > { %p2321_p13 = pnand %p3286_p12, %p3285_p11 }
 0xc59   : > { %2756 = dma.done.wait (!%p2321_p13), %s1879_s8, 128  }
 0xc5a   : > { %2758 = vsyncadd (!%p2321_p13), %s1879_s8, 4294967168  ;;  %p22_p3 = scmp.ge.s32.totalorder %s2983_s7, 4   ;;  %s3287_s21 = smov %s2765_s22 }
 0xc5b   : > { %s3288_s22 = smov %s2769_s23  ;;  %s3289_s23 = smov %s2995_s9 }
 0xc5c   : > { %s3290_s24 = smov %s2983_s7  ;;  %24 = sbr.rel (!%p22_p3) target bundleno = 8 (0x8), region = 109 }
 0xc63   :  { %1884 = vsyncpa [#allocation3], 1 }
 0xc64   :  { %1886 = vsyncpa [#allocation3 + $0x1], 1 }
 0xc65   :  { %1887 = vsyncpa [#allocation6], 1 }
 0xc66   :  { %1888 = vsyncpa [#allocation9], 1 }
 0xc67   :  { %1889 = vsyncpa [#allocation12], 1 }
 0xc68   :  { %1890 = vsyncpa [#allocation4], 1 }
 0xc69   :  { %1892 = vsyncpa [#allocation4 + $0x1], 1 }

// kernel: self_attention_block.1
= control target key start
LH: loop header
LB: loop body
LE: loop exit
PB: predicated region body
PF: predicated region fallthrough
CT: control target
= control target key end

     0   :  { %11 = vsyncpa [#allocation3], 0  ;;  %s3259_s0 = inlined_call_operand.hbm [shape: f32[2,8,128], index: 0, kind: input, shape index: {}]   ;;  %s3260_s1 = inlined_call_operand.hbm [shape: bf16[128,384], index: 1, kind: input, shape index: {}]   ;;  %s3261_s2 = inlined_call_operand.hbm [shape: bf16[128,128], index: 2, kind: input, shape index: {}]   ;;  %s3262_s3 = inlined_call_operand.hbm [shape: bf16[128,512], index: 3, kind: input, shape index: {}]   ;;  %s3263_s4 = inlined_call_operand.hbm [shape: bf16[512,128], index: 4, kind: input, shape index: {}]   ;;  %s3264_s5 = inlined_call_operand.hbm [shape: f32[8,512], index: 5, kind: input, shape index: {}]   ;;  %s3265_s6 = inlined_call_operand.hbm [shape: f32[2,8,128], index: 6, kind: output, shape index: {}]  }
   0x1   :  { %13 = vsyncpa [#allocation3 + $0x1], 0 }
   0x2   :  { %14 = vsyncpa [#allocation6], 0 }
   0x3   :  { %15 = vsyncpa [#allocation9], 0 }
   0x4   :  { %16 = vsyncpa [#allocation12], 0 }
   0x5   :  { %17 = vsyncpa [#allocation4], 0 }
   0x6   :  { %19 = vsyncpa [#allocation4 + $0x1], 0  ;;  %s2829_s21 = smov 0   ;;  %s2831_s22 = smov 0  }
   0x7   :  { %s2833_s23 = smov 0   ;;  %s2835_s24 = smov 0  }
   0x8 LB: > { %s2775_s25 = smov [#allocation5]   ;;  %s2850_s27 = sadd.s32 4294967295, %s2773_s24   ;;  %s2773_s24 = sphi %s2835_s24, %s3290_s24   ;;  %s2769_s23 = sphi %s2833_s23, %s3289_s23   ;;  %s2765_s22 = sphi %s2831_s22, %s3288_s22   ;;  %s2761_s21 = sphi %s2829_s21, %s3287_s21  }
   0x9   : > { %s199_s26 = sshll.u32 %s2775_s25, 4  ;;  %p1985_p0 = scmp.ge.s32.totalorder %s2773_s24, 1  ;;  %s2855_s26 = int_to_ptr.vmem [resolvable:$true] %s199_s26 }
   0xa   : > { %p3266_p1 = scmp.eq.s32.totalorder %s2850_s27, 0  ;;  %p187_p2 = scmp.lt.s32.totalorder %s2773_s24, 3 }
   0xb   : > { %s2776_s29 = smov [#allocation8]   ;;  %s2777_s8 = smov [#allocation7]  }
   0xc   : > { %p2857_p3 = pnand %p1985_p0, %p187_p2  ;;  %s225_s30 = sshll.u32 %s2776_s29, 4  ;;  %s2870_s30 = int_to_ptr.vmem [resolvable:$true] %s225_s30 }
   0xd   : > { %s2872_s9 = sshll.u32 %s2777_s8, 4  ;;  %s2525_s12 = scalar_lea.hbm %s3260_s1, 3072  ;;  %s213_s9 = int_to_ptr.vmem [resolvable:$true] %s2872_s9 }
   0xe   : > { %s3269_s28 = scalar_select %p2857_p3, 1, 0 }
   0xf   : > { %p2300_p5 = pneg %p2857_p3  ;;  %p2526_p7 = scmp.ne.s32.totalorder %s3260_s1, %s2525_s12 }
  0x10   : > { %p2532_p11 = scmp.lt.u32.totalorder %s2525_s12, %s3260_s1 }
  0x11   : > { %p2866_p6 = pnand %p2300_p5, %p3266_p1 }
  0x13   : > { %p2882_p8 = pneg %p2866_p6 }
  0x15   : > { %p2528_p9 = pnand %p2882_p8, %p2526_p7 }
  0x17   : > { %p2529_p10 = pneg %p2528_p9 }
  0x19   : > { %p2534_p12 = pnand %p2532_p11, %p2529_p10 }
  0x1b   : > { %2537 = shalt.err (!%p2534_p12)
}
  0x1c   : > { %s2538_s18 = scalar_lea.vmem %s2855_s26, 3072  ;;  %p2546_p5 = scmp.lt.s32.totalorder %s2855_s26, %s2855_s26 }
  0x1d   : > { %p2539_p13 = scmp.ne.s32.totalorder %s2855_s26, %s2538_s18  ;;  %p2547_p4 = scmp.lt.s32.totalorder %s2538_s18, %s2538_s18 }
  0x1f   : > { %p2541_p0 = pnand %p2539_p13, %p2882_p8  ;;  %p2548_p7 = por %p2547_p4, %p2546_p5 }
  0x21   : > { %p2542_p2 = pneg %p2541_p0 }
  0x23   : > { %p2549_p9 = pnand %p2548_p7, %p2542_p2 }
  0x25   : > { %2552 = shalt.err (!%p2549_p9)
}
  0x26   : > { %s2778_s19 = smov 192   ;;  %s2779_s20 = smov 12  }
  0x27   : > { %2303 = dma.hbm_to_vmem [thread:$0]  (!%p2866_p6), %s3260_s1, 3072, %s2855_s26, [#allocation6], %s2778_s19, %s2778_s19, %s2779_s20  }
  0x28   : > { %s2553_s11 = scalar_lea.hbm %s3262_s3, 4096 }
  0x29   : > { %p2554_p4 = scmp.ne.s32.totalorder %s3262_s3, %s2553_s11  ;;  %p2560_p12 = scmp.lt.u32.totalorder %s2553_s11, %s3262_s3 }
  0x2b   : > { %p2556_p10 = pnand %p2554_p4, %p2882_p8 }
  0x2d   : > { %p2557_p11 = pneg %p2556_p10 }
  0x2f   : > { %p2562_p13 = pnand %p2560_p12, %p2557_p11 }
  0x31   : > { %2565 = shalt.err (!%p2562_p13)
}
  0x32   : > { %s2566_s26 = scalar_lea.vmem %s2870_s30, 4096  ;;  %p2574_p7 = scmp.lt.s32.totalorder %s2870_s30, %s2870_s30 }
  0x33   : > { %p2567_p0 = scmp.ne.s32.totalorder %s2870_s30, %s2566_s26  ;;  %p2575_p9 = scmp.lt.s32.totalorder %s2566_s26, %s2566_s26 }
  0x35   : > { %p2569_p2 = pnand %p2567_p0, %p2882_p8  ;;  %p2576_p4 = por %p2575_p9, %p2574_p7 }
  0x37   : > { %p2570_p5 = pneg %p2569_p2 }
  0x39   : > { %p2577_p10 = pnand %p2576_p4, %p2570_p5 }
  0x3b   : > { %2580 = shalt.err (!%p2577_p10)
}
  0x3c   : > { %s2780_s17 = smov 256   ;;  %s2781_s18 = smov 16  }
  0x3d   : > { %2309 = dma.hbm_to_vmem [thread:$0]  (!%p2866_p6), %s3262_s3, 4096, %s2870_s30, [#allocation9], %s2780_s17, %s2780_s17, %s2781_s18  }
  0x3e   : > { %s2581_s8 = scalar_lea.hbm %s3261_s2, 1024 }
  0x3f   : > { %p2582_p11 = scmp.ne.s32.totalorder %s3261_s2, %s2581_s8  ;;  %p2588_p0 = scmp.lt.u32.totalorder %s2581_s8, %s3261_s2 }
  0x41   : > { %p2584_p12 = pnand %p2582_p11, %p2882_p8 }
  0x43   : > { %p2585_p13 = pneg %p2584_p12 }
  0x45   : > { %p2590_p2 = pnand %p2588_p0, %p2585_p13 }
  0x47   : > { %2593 = shalt.err (!%p2590_p2)
}
  0x48   : > { %s2594_s14 = scalar_lea.vmem %s213_s9, 1024  ;;  %p2602_p4 = scmp.lt.s32.totalorder %s213_s9, %s213_s9 }
  0x49   : > { %p2595_p5 = scmp.ne.s32.totalorder %s213_s9, %s2594_s14  ;;  %p2603_p10 = scmp.lt.s32.totalorder %s2594_s14, %s2594_s14 }
  0x4b   : > { %p2597_p7 = pnand %p2595_p5, %p2882_p8  ;;  %p2604_p1 = por %p2603_p10, %p2602_p4 }
  0x4d   : > { %p2598_p9 = pneg %p2597_p7 }
  0x4f   : > { %p2605_p3 = pnand %p2604_p1, %p2598_p9 }
  0x51   : > { %2608 = shalt.err (!%p2605_p3)
}
  0x52   : > { %s2782_s30 = smov 64   ;;  %s2783_s16 = smov 4  }
  0x53   : > { %2306 = dma.hbm_to_vmem [thread:$0]  (!%p2866_p6), %s3261_s2, 1024, %s213_s9, [#allocation6], %s2782_s30, %s2782_s30, %s2783_s16  }
  0x54   : > { %s2784_s18 = smov [#allocation10]   ;;  %s2785_s20 = smov [#allocation11]  }
  0x55   : > { %s238_s19 = sshll.u32 %s2784_s18, 4  ;;  %s252_s25 = sshll.u32 %s2785_s20, 4  ;;  %s239_s19 = int_to_ptr.vmem [resolvable:$true] %s238_s19  ;;  %s253_s25 = int_to_ptr.vmem [resolvable:$true] %s252_s25 }
  0x56   : > { %s2609_s10 = scalar_lea.hbm %s3263_s4, 4096 }
  0x57   : > { %p2610_p1 = scmp.ne.s32.totalorder %s3263_s4, %s2609_s10  ;;  %p2616_p12 = scmp.lt.u32.totalorder %s2609_s10, %s3263_s4 }
  0x59   : > { %p2612_p3 = pnand %p2610_p1, %p2882_p8 }
  0x5b   : > { %p2613_p11 = pneg %p2612_p3 }
  0x5d   : > { %p2618_p13 = pnand %p2616_p12, %p2613_p11 }
  0x5f   : > { %2621 = shalt.err (!%p2618_p13)
}
  0x60   : > { %s2622_s9 = scalar_lea.vmem %s239_s19, 4096  ;;  %p2630_p7 = scmp.lt.s32.totalorder %s239_s19, %s239_s19 }
  0x61   : > { %p2623_p0 = scmp.ne.s32.totalorder %s239_s19, %s2622_s9  ;;  %p2631_p9 = scmp.lt.s32.totalorder %s2622_s9, %s2622_s9 }
  0x63   : > { %p2625_p2 = pnand %p2623_p0, %p2882_p8  ;;  %p2632_p4 = por %p2631_p9, %p2630_p7 }
  0x65   : > { %p2626_p5 = pneg %p2625_p2 }
  0x67   : > { %p2633_p10 = pnand %p2632_p4, %p2626_p5 }
  0x69   : > { %2636 = shalt.err (!%p2633_p10)
}
  0x6a   : > { %2312 = dma.hbm_to_vmem [thread:$0]  (!%p2866_p6), %s3263_s4, 4096, %s239_s19, [#allocation9], %s2782_s30, %s2782_s30, %s2783_s16  }
  0x6b   : > { %s2637_s29 = scalar_lea.hbm %s3264_s5, 512 }
  0x6c   : > { %p2638_p1 = scmp.ne.s32.totalorder %s3264_s5, %s2637_s29  ;;  %p2644_p12 = scmp.lt.u32.totalorder %s2637_s29, %s3264_s5 }
  0x6e   : > { %p2640_p3 = pnand %p2638_p1, %p2882_p8 }
  0x70   : > { %p2641_p11 = pneg %p2640_p3 }
  0x72   : > { %p2646_p13 = pnand %p2644_p12, %p2641_p11 }
  0x74   : > { %2649 = shalt.err (!%p2646_p13)
}
  0x75   : > { %s2650_s13 = scalar_lea.vmem %s253_s25, 512  ;;  %p2658_p7 = scmp.lt.s32.totalorder %s253_s25, %s253_s25 }
  0x76   : > { %p2651_p0 = scmp.ne.s32.totalorder %s253_s25, %s2650_s13  ;;  %p2659_p9 = scmp.lt.s32.totalorder %s2650_s13, %s2650_s13 }
  0x78   : > { %p2653_p2 = pnand %p2651_p0, %p2882_p8  ;;  %p2660_p4 = por %p2659_p9, %p2658_p7 }
  0x7a   : > { %p2654_p5 = pneg %p2653_p2 }
  0x7c   : > { %p2661_p10 = pnand %p2660_p4, %p2654_p5 }
  0x7e   : > { %2664 = shalt.err (!%p2661_p10)
}
  0x7f   : > { %2315 = dma.hbm_to_vmem [thread:$0]  (!%p2866_p6), %s3264_s5, 512, %s253_s25, [#allocation12]  }
  0x80   : > { %s1984_s15 = sadd.s32 4294967294, %s2773_s24   ;;  %s2983_s7 = sadd.s32 1, %s2773_s24  }
  0x81   : > { %s32_s19 = sadd.s32 1, %s2769_s23  ;;  %s29_s14 = ssub.s32 %s2773_s24, %s2983_s7 }
  0x82   : > { %p39_p8 = scmp.ne.s32.totalorder %s2769_s23, %s2765_s22  ;;  %p30_p1 = scmp.eq.s32.totalorder %s29_s14, 0 }
  0x83   : > { %p40_p3 = scmp.eq.s32.totalorder %s2773_s24, 0  ;;  %p45_p11 = scmp.ne.s32.totalorder %s2765_s22, %s2761_s21 }
  0x84   : > { %p174_p12 = scmp.eq.s32.totalorder %s2850_s27, 1  ;;  %p3272_p0 = scmp.eq.s32.totalorder %s2850_s27, 0 }
  0x85   : > { %s2995_s9 = scalar_select %p30_p1, %s2769_s23, %s32_s19  }
  0x86   : > { %p41_p13 = por %p40_p3, %p39_p8  ;;  %p2999_p2 = por %p3272_p0, %p45_p11 }
  0x87   : > { %p3003_p6 = por %p174_p12, %p39_p8  ;;  %p180_p5 = scmp.eq.s32.totalorder %s1984_s15, 1 }
  0x88   : > { %p2329_p7 = scmp.lt.s32.totalorder %s2773_s24, 2  ;;  %s263_s17 = sand.u32 1, %s2769_s23  }
  0x89   : > { %s3274_s25 = scalar_select %p3003_p6, 1, 0 }
  0x8a   : > { %p3009_p9 = por %p180_p5, %p45_p11  ;;  %s1992_s20 = sshll.u32 %s263_s17, 3 }
  0x8b   : > { %s1993_s29 = sshll.u32 %s2773_s24, 7  ;;  %s267_s12 = scalar_lea.vmem [#allocation2], %s1992_s20 }
  0x8c   : > { %s3275_s18 = scalar_select %p3009_p9, 1, 0 }
  0x8d   : > { %s3017_s11 = scalar_lea.hbm %s3259_s0, %s1993_s29  ;;  %s274_s13 = sshll.u32 %s267_s12, 4  ;;  %s3023_s13 = int_to_ptr.vmem [resolvable:$true] %s274_s13 }
  0x8e   : > { %p3019_p4 = pnand %p2329_p7, %p41_p13  ;;  %s264_s16 = scalar_lea.sflag [#allocation3], %s263_s17 }
  0x8f   : > { %s2665_s15 = scalar_lea.hbm %s3017_s11, 128  ;;  %s2670_s20 = scalar_lea.hbm %s3259_s0, 256 }
  0x90   : > { %p2666_p10 = scmp.ne.s32.totalorder %s3017_s11, %s2665_s15  ;;  %p2667_p8 = pneg %p3019_p4 }
  0x91   : > { %p2671_p11 = scmp.lt.u32.totalorder %s3017_s11, %s3259_s0  ;;  %p2672_p12 = scmp.lt.u32.totalorder %s2670_s20, %s2665_s15 }
  0x92   : > { %p2668_p1 = pnand %p2667_p8, %p2666_p10  ;;  %p2674_p0 = scmp.lt.u32.totalorder %s2665_s15, %s3017_s11 }
  0x93   : > { %p2673_p13 = por %p2672_p12, %p2671_p11 }
  0x94   : > { %p2669_p3 = pneg %p2668_p1 }
  0x95   : > { %p2675_p5 = por %p2674_p0, %p2673_p13 }
  0x97   : > { %p2676_p7 = pnand %p2675_p5, %p2669_p3 }
  0x99   : > { %2679 = shalt.err (!%p2676_p7)
}
  0x9a   : > { %s2680_s17 = scalar_lea.vmem %s3023_s13, 128  ;;  %s2786_s10 = smov [#allocation2]  }
  0x9b   : > { %p2681_p10 = scmp.ne.s32.totalorder %s3023_s13, %s2680_s17  ;;  %s2685_s12 = sshll.u32 %s2786_s10, 4  ;;  %s2686_s12 = int_to_ptr.vmem [resolvable:$false] %s2685_s12 }
  0x9c   : > { %s2687_s19 = scalar_lea.vmem %s2686_s12, 256  ;;  %p2688_p6 = scmp.lt.s32.totalorder %s3023_s13, %s2686_s12 }
  0x9d   : > { %p2683_p1 = pnand %p2681_p10, %p2667_p8  ;;  %p2689_p11 = scmp.lt.s32.totalorder %s2687_s19, %s2680_s17 }
  0x9f   : > { %p2684_p9 = pneg %p2683_p1  ;;  %p2690_p12 = por %p2689_p11, %p2688_p6 }
  0xa1   : > { %p2691_p13 = pnand %p2690_p12, %p2684_p9 }
  0xa3   : > { %2694 = shalt.err (!%p2691_p13)
}
  0xa4   : > { %2319 = dma.hbm_to_vmem [thread:$0]  (!%p3019_p4), %s3017_s11, 128, %s3023_s13, %s264_s16  }
  0xa5   : > { %p3277_p3 = scmp.ne.s32.totalorder %s3269_s28, 0 }
  0xa6   : > { %s3053_s15 = sand.u32 (!%p3277_p3), 1, %s2765_s22  }
  0xa7   : > { %283 = sbr.rel (%p3277_p3) target bundleno = 3156 (0xc54), region = 44  ;;  %s1995_s14 = sshll.u32 (!%p3277_p3), %s3053_s15, 3 }
  0xa8   : > { %s286_s20 = scalar_lea.sflag (!%p3277_p3), [#allocation3], %s3053_s15  ;;  %s3059_s29 = scalar_lea.vmem (!%p3277_p3), [#allocation2], %s1995_s14 }
  0xae   : > { %2740 = dma.done.wait (%p2999_p2), %s286_s20, 128  }
  0xaf   : > { %2742 = vsyncadd (%p2999_p2), %s286_s20, 4294967168  ;;  %p3278_p6 = scmp.eq.s32.totalorder %s2850_s27, 0 }
  0xb1   : > { %2744 = dma.done.wait (%p3278_p6), [#allocation6], 4096   ;;  %p3279_p9 = pmov %p3278_p6 }
  0xb2   : > { %p3280_p4 = pmov %p3278_p6 }
  0xb3   : > { %2746 = vsyncadd (%p3279_p9), [#allocation6], 4294963200 }
  0xb4   : > { %2748 = dma.done.wait (%p3280_p4), [#allocation9], 8192   ;;  %p3281_p8 = pmov %p3280_p4 }
  0xb5   : > { %p3282_p0 = pmov %p3280_p4 }
  0xb6   : > { %2750 = vsyncadd (%p3281_p8), [#allocation9], 4294959104 }
  0xb7   : > { %2752 = dma.done.wait (%p3282_p0), [#allocation12], 512   ;;  %p3283_p5 = pmov %p3282_p0 }
  0xb8   : > { %v2787_v0 = vmov 0   ;;  %v2788_v1 = vmov 0.0   ;;  %v2385_v2 = vld [vmem:[#allocation5 + $0x4] ss:$12 sps:$4 sm:$0xff]   ;;  %v2387_v3 = vld [vmem:[#allocation5] ss:$12 sps:$4 sm:$0xff]   ;;  %v377_v28 = vlaneseq }
  0xb9   : > { %2754 = vsyncadd (%p3283_p5), [#allocation12], 4294966784  ;;  %549 = vmatprep.mubr.bf16.mxu0 %v2787_v0  ;;  %2188 = vmatprep.subr.bf16.mxu1 %v2788_v1  ;;  %v2388_v4 = vld [vmem:[#allocation5 + $0x1c] ss:$12 sps:$4 sm:$0xff]   ;;  %v2390_v5 = vld [vmem:[#allocation5 + $0x18] ss:$12 sps:$4 sm:$0xff]  }
  0xba   : > { %517 = vmatprep.subr.bf16.mxu0 %v2385_v2  ;;  %v2391_v6 = vld [vmem:[#allocation5 + $0x34] ss:$12 sps:$4 sm:$0xff]   ;;  %v2393_v7 = vld [vmem:[#allocation5 + $0x30] ss:$12 sps:$4 sm:$0xff]   ;;  %v2394_v8 = vld [vmem:[#allocation5 + $0x4c] ss:$12 sps:$4 sm:$0xff]  }
  0xbb   : > { %518 = vmatpush1.bf16.msra.mxu0 %v2387_v3  ;;  %v2396_v9 = vld [vmem:[#allocation5 + $0x48] ss:$12 sps:$4 sm:$0xff]   ;;  %v2397_v11 = vld [vmem:[#allocation5 + $0x64] ss:$12 sps:$4 sm:$0xff]   ;;  %v2410_v12 = vld [vmem:[#allocation5 + $0x20] ss:$12 sps:$4 sm:$0xff]  }
  0xbc   : > { %519 = vmatprep.subr.bf16.mxu0 %v2388_v4  ;;  %v2409_v10 = vld [vmem:[#allocation5 + $0x8] ss:$12 sps:$4 sm:$0xff]   ;;  %v2399_v13 = vld [vmem:[#allocation5 + $0x60] ss:$12 sps:$4 sm:$0xff]   ;;  %v2402_v15 = vld [vmem:[#allocation5 + $0x78] ss:$12 sps:$4 sm:$0xff]  }
  0xbd   : > { %2189 = vmatpush3.bf16.msra.mxu1 %v2409_v10  ;;  %v2400_v14 = vld [vmem:[#allocation5 + $0x7c] ss:$12 sps:$4 sm:$0xff]   ;;  %v2411_v16 = vld [vmem:[#allocation5 + $0x38] ss:$12 sps:$4 sm:$0xff]   ;;  %v2403_v17 = vld [vmem:[#allocation5 + $0x94] ss:$12 sps:$4 sm:$0xff]  }
  0xbe   : > { %2190 = vmatprep.subr.bf16.mxu1 %v2788_v1  ;;  %v2412_v18 = vld [vmem:[#allocation5 + $0x50] ss:$12 sps:$4 sm:$0xff]   ;;  %v2406_v20 = vld [vmem:[#allocation5 + $0xac] ss:$12 sps:$4 sm:$0xff]   ;;  %v2413_v21 = vld [vmem:[#allocation5 + $0x68] ss:$12 sps:$4 sm:$0xff]  }
  0xbf   : > { %520 = vmatpush1.bf16.msra.mxu0 %v2390_v5  ;;  %v2405_v19 = vld [vmem:[#allocation5 + $0x90] ss:$12 sps:$4 sm:$0xff]   ;;  %v2408_v22 = vld [vmem:[#allocation5 + $0xa8] ss:$12 sps:$4 sm:$0xff]   ;;  %v2414_v24 = vld [vmem:[#allocation5 + $0x80] ss:$12 sps:$4 sm:$0xff]  }
  0xc0   : > { %521 = vmatprep.subr.bf16.mxu0 %v2391_v6  ;;  %v3083_v23 = vld [vmem:[%s3059_s29] sm:$0xff]  ;;  %vm2789_vm0 = vmmov 0   ;;  %v3099_v29 = vshrl.u32 %v377_v28, 7  ;;  %v3102_v31 = vld [vmem:[#allocation11 + $0x8] sm:$0xff]  ;;  %v3104_v32 = vld [vmem:[#allocation11] sm:$0xff]  ;;  %vm601_vm1 = vcmask 261120  }
  0xc1   : > { %2191 = vmatpush3.bf16.msra.mxu1 %v2410_v12  ;;  %v340_v25 = vpack.c.bf16 %v3083_v23, %v3083_v23  ;;  %v2415_v26 = vld [vmem:[#allocation5 + $0x98] ss:$12 sps:$4 sm:$0xff]   ;;  %v2416_v27 = vld [vmem:[#allocation5 + $0xb0] ss:$12 sps:$4 sm:$0xff]   ;;  %2204 = vmatprep.mubr.msk.bf16.mxu1 %vm2789_vm0, %v2788_v1  ;;  %s2790_s28 = smov 96   ;;  %s2791_s26 = smov 64  }
  0xc2   : > { %2192 = vmatprep.subr.bf16.mxu1 %v2788_v1  ;;  %v379_v30 = vsub.s32 0, %v3099_v29  ;;  %s2792_s11 = smov 32   ;;  %v3118_v44 = vld [vmem:[#allocation11 + $0x10] sm:$0xff]  ;;  %vm664_vm2 = vcmask 1043456   ;;  %vm648_vm3 = vcmask 64512   ;;  %vm1054_vm4 = vcmask 523264  }
  0xc3   : > { %522 = vmatpush1.bf16.msra.mxu0 %v2393_v7  ;;  %vm1056_vm5 = vcmask 785408   ;;  %s2107_s13 = sshll.u32 %s2850_s27, 7  ;;  %s337_s30 = scalar_lea.vmem [#allocation13], %s1995_s14 }
  0xc4   : > { %523 = vmatprep.subr.bf16.mxu0 %v2394_v8  ;;  %v384_v33 = vrot.slane %v3102_v31, %v379_v30  ;;  %v380_v34 = vrot.slane %v3104_v32, %v379_v30  ;;  %v388_v45 = vrot.slane %v3118_v44, %v379_v30  ;;  %s1866_s16 = sshll.u32 %s337_s30, 4  ;;  %s3215_s10 = scalar_lea.hbm %s3265_s6, %s2107_s13  ;;  %s3217_s16 = int_to_ptr.vmem [resolvable:$true] %s1866_s16 }
  0xc5   : > { %2193 = vmatpush3.bf16.msra.mxu1 %v2411_v16  ;;  %s1853_s12 = scalar_lea.sflag [#allocation4], %s3053_s15  ;;  %s2695_s19 = scalar_lea.vmem %s3217_s16, 128 }
  0xc6   : > { %2194 = vmatprep.subr.bf16.mxu1 %v2788_v1  ;;  %p2696_p2 = scmp.ne.s32.totalorder %s3217_s16, %s2695_s19  ;;  %p3284_p7 = scmp.ne.s32.totalorder %s3274_s25, 0 }
  0xc7   : > { %524 = vmatpush1.bf16.msra.mxu0 %v2396_v9  ;;  %s2793_s27 = smov [#allocation13]  }
  0xc8   : > { %525 = vmatprep.subr.bf16.mxu0 %v2397_v11  ;;  %p2697_p10 = pnand %p2696_p2, %p3284_p7  ;;  %s2699_s14 = sshll.u32 %s2793_s27, 4  ;;  %s2700_s14 = int_to_ptr.vmem [resolvable:$false] %s2699_s14 }
  0xc9   : > { %2195 = vmatpush3.bf16.msra.mxu1 %v2412_v18  ;;  %s2701_s20 = scalar_lea.vmem %s2700_s14, 256  ;;  %p2702_p11 = scmp.lt.s32.totalorder %s3217_s16, %s2700_s14 }
  0xca   : > { %2196 = vmatprep.subr.bf16.mxu1 %v2788_v1  ;;  %p2698_p1 = pneg %p2697_p10  ;;  %p2703_p12 = scmp.lt.s32.totalorder %s2701_s20, %s2695_s19 }
  0xcb   : > { %526 = vmatpush1.bf16.msra.mxu0 %v2399_v13 }
  0xcc   : > { %527 = vmatprep.subr.bf16.mxu0 %v2400_v14  ;;  %p2704_p13 = por %p2703_p12, %p2702_p11 }
  0xcd   : > { %2197 = vmatpush3.bf16.msra.mxu1 %v2413_v21 }
  0xce   : > { %2198 = vmatprep.subr.bf16.mxu1 %v2788_v1  ;;  %p2705_p3 = pnand %p2704_p13, %p2698_p1 }
  0xcf   : > { %528 = vmatpush1.bf16.msra.mxu0 %v2402_v15 }
  0xd0   : > { %529 = vmatprep.subr.bf16.mxu0 %v2403_v17 }
  0xd1   : > { %2199 = vmatpush3.bf16.msra.mxu1 %v2414_v24 }
  0xd2   : > { %2200 = vmatprep.subr.bf16.mxu1 %v2788_v1 }
  0xd3   : > { %530 = vmatpush1.bf16.msra.mxu0 %v2405_v19 }
  0xd4   : > { %531 = vmatprep.subr.bf16.mxu0 %v2406_v20 }
  0xd5   : > { %2201 = vmatpush3.bf16.msra.mxu1 %v2415_v26 }
  0xd6   : > { %2202 = vmatprep.subr.bf16.mxu1 %v2788_v1 }
  0xd7   : > { %532 = vmatpush1.bf16.msra.mxu0 %v2408_v22 }
  0xd8   : > { %2232 = vmatprep.subr.bf16.mxu0 %v2788_v1 }
  0xd9   : > { %2203 = vmatpush3.bf16.msra.mxu1 %v2416_v27 }
  0xda   : > { %550 = vmatmul.mubr.bf16.vlgmr.msra.gmra.mrb[0].mxu0 %v340_v25  ;;  %2208 = vmatprep.subr.bf16.mxu1 %v2788_v1 }
  0xdb   : > { %2234 = vmatprep.mubr.msk.bf16.mxu0 %vm2789_vm0, %v2788_v1 }
  0xdc   : > { %2205 = vmatmul.mubr.bf16.vlgmr.msra.gmra.mrb[0].mxu1 %v340_v25 }
  0xdd   : > { %2210 = vmatprep.mubr.msk.bf16.mxu1 %vm2789_vm0, %v2788_v1 }
 0x1ad   : > { %v551_v35 = vpop.f32.mrb[0].mxu0 }
 0x1ae   : > { %v553_v36 = vpop.f32.mrb[1].mxu0  ;;  %v552_v40 = vadd.f32 %v551_v35, %v380_v34 }
 0x1af   : > { %v554_v37 = vadd.f32 %v553_v36, %v384_v33  ;;  %v555_v38 = vpop.f32.mrb[2].mxu0  ;;  %v592_v46 = vpop.f32.mrb[0].mxu1 }
 0x1b0   : > { %v556_v39 = vpop.f32.mrb[3].mxu0  ;;  %v598_v43 = vpack.c.bf16 %v552_v40, %v552_v40  ;;  %v593_v47 = vadd.f32 %v592_v46, %v388_v45  ;;  %v2206_v48 = vpop.f32.mrb[1].mxu1 }
 0x1b1   : > { %v599_v41 = vpack.c.bf16 %v554_v37, %v554_v37  ;;  %v595_v49 = vpop.f32.mrb[2].mxu1 }
 0x1b2   : > { %v3121_v50 = vpack.c.bf16 %v593_v47, %v593_v47  ;;  %v2207_v51 = vpop.f32.mrb[3].mxu1 }
 0x1b3   : > { %712 = vrot.lane.b32.xlu1 %v599_v41, %s2790_s28  ;;  %v606_v42 = vsel %vm601_vm1, %v599_v41, 0 }
 0x1b4   : > { %2209 = vmatpush3.bf16.xpose.msra.mxu1 %v606_v42  ;;  %v666_v52 = vsel %vm664_vm2, %v3121_v50, 0 }
 0x1b5   : > { %2214 = vmatprep.subr.bf16.mxu1 %v2788_v1 }
 0x1b7   : > { %709 = vrot.lane.b32.xlu1 %v598_v43, %s2790_s28 }
 0x1bb   : > { %821 = vrot.lane.b32.xlu1 %v598_v43, %s2791_s26  ;;  %2211 = vmatmul.mubr.msk.bf16.vlgmr.msra.gmra.mrb[4].mxu1 %vm601_vm1, %v598_v43 }
 0x1bc   : > { %2216 = vmatprep.mubr.msk.bf16.mxu1 %vm2789_vm0, %v2788_v1  ;;  %2215 = vmatpush3.bf16.msra.mxu1 %v666_v52 }
 0x1bd   : > { %2220 = vmatprep.subr.bf16.mxu1 %v2788_v1 }
 0x1bf   : > { %933 = vrot.lane.b32.xlu1 %v599_v41, %s2792_s11 }
 0x1c3   : > { %931 = vrot.lane.b32.xlu1 %v598_v43, %s2792_s11 }
 0x225   : > { %v713_v63 = vpop.permute.xlu1 %712 }
 0x226   : > { %v718_v12 = vsel %vm601_vm1, %v713_v63, 0 }
 0x229   : > { %v710_v2 = vpop.permute.xlu1 %709 }
 0x22d   : > { %v822_v4 = vpop.permute.xlu1 %821 }
 0x231   : > { %v934_v7 = vpop.permute.xlu1 %933 }
 0x232   : > { %v939_v10 = vsel %vm601_vm1, %v934_v7, 0 }
 0x235   : > { %v932_v13 = vpop.permute.xlu1 %931 }
 0x28e   : > { %v642_v53 = vpop.f32.mrb[4].mxu1 }
 0x28f   : > { %v2212_v54 = vpop.f32.mrb[5].mxu1  ;;  %v649_v55 = vsel %vm648_vm3, %v642_v53, -inf }
 0x290   : > { %650 = vmax.xlane.f32.xlu0 %v649_v55  ;;  %v645_v56 = vpop.f32.mrb[6].mxu1 }
 0x291   : > { %v2213_v57 = vpop.f32.mrb[7].mxu1 }
 0x31d   : > { %v651_v58 = vpop.xlane.xlu0 %650 }
 0x31e   : > { %v652_v59 = vsub.f32 %v642_v53, %v651_v58 }
 0x320   : > { %v653_v60 = vmul.f32 1.442695, %v652_v59 }
 0x322   : > { %2505 = vpow2.f32 %v653_v60 }
 0x32c   : > { %v2506_v61 = vpop.eup %2505 }
 0x32d   : > { %v655_v62 = vsel %vm648_vm3, %v2506_v61, 0.0 }
 0x32e   : > { %656 = vadd.xlane.f32.xlu0 %v655_v62 }
 0x344   : > { %823 = vrot.lane.b32.xlu0 %v599_v41, %s2791_s26 }
 0x3bb   : > { %v657_v3 = vpop.xlane.xlu0 %656 }
 0x3bc   : > { %2507 = vrcp.f32 %v657_v3 }
 0x3bf   : > { %v824_v5 = vpop.permute.xlu0 %823 }
 0x3c0   : > { %v829_v6 = vsel %vm601_vm1, %v824_v5, 0 }
 0x3c1   : > { %2233 = vmatpush3.bf16.xpose.msra.mxu0 %v829_v6 }
 0x3c2   : > { %2244 = vmatprep.subr.bf16.mxu0 %v2788_v1 }
 0x3c6   : > { %v2508_v8 = vpop.eup %2507 }
 0x3c7   : > { %v659_v9 = vmul.f32 %v2508_v8, %v2506_v61 }
 0x3c8   : > { %2235 = vmatmul.mubr.msk.bf16.vlgmr.msra.gmra.mrb[4].mxu0 %vm601_vm1, %v822_v4 }
 0x3c9   : > { %2245 = vmatpush3.bf16.xpose.msra.mxu0 %v939_v10  ;;  %v660_v11 = vpack.c.bf16 %v659_v9, %v659_v9  ;;  %2246 = vmatprep.mubr.msk.bf16.mxu0 %vm2789_vm0, %v2788_v1  ;;  %v2417_v9 = vld [vmem:[#allocation7] sm:$0xff]   ;;  %v2418_v10 = vld [vmem:[#allocation7 + $0x8] sm:$0xff]  }
 0x3ca   : > { %2256 = vmatprep.subr.bf16.mxu0 %v2788_v1 }
 0x3cb   : > { %2217 = vmatmul.mubr.msk.bf16.vlgmr.msra.gmra.mrb[8].mxu1 %vm648_vm3, %v660_v11  ;;  %v2419_v11 = vld [vmem:[#allocation7 + $0x10] sm:$0xff]  }
 0x3cc   : > { %2221 = vmatpush3.bf16.xpose.msra.mxu1 %v718_v12  ;;  %2222 = vmatprep.mubr.msk.bf16.mxu1 %vm2789_vm0, %v2788_v1  ;;  %v2420_v12 = vld [vmem:[#allocation7 + $0x18] sm:$0xff]  }
 0x3cd   : > { %2226 = vmatprep.subr.bf16.mxu1 %v2788_v1 }
 0x3d0   : > { %2247 = vmatmul.mubr.msk.bf16.vlgmr.msra.gmra.mrb[8].mxu0 %vm601_vm1, %v932_v13  ;;  %v2421_v13 = vld [vmem:[#allocation7 + $0x20] sm:$0xff]  }
 0x3d1   : > { %2272 = vmatprep.mubr.msk.bf16.mxu0 %vm2789_vm0, %v2788_v1  ;;  %2257 = vmatpush3.bf16.msra.mxu0 %v2417_v9  ;;  %v2460_v9 = vld [vmem:[#allocation8 + $0xac] ss:$16 sps:$4 sm:$0xff]  }
 0x3d2   : > { %2258 = vmatprep.subr.bf16.mxu0 %v2788_v1 }
 0x3d3   : > { %2223 = vmatmul.mubr.msk.bf16.vlgmr.msra.gmra.mrb[12].mxu1 %vm601_vm1, %v710_v2 }
 0x3d4   : > { %2228 = vmatprep.mubr.msk.bf16.mxu1 %vm2789_vm0, %v2788_v1 }
 0x3d5   : > { %2259 = vmatpush3.bf16.msra.mxu0 %v2418_v10  ;;  %v2455_v10 = vld [vmem:[#allocation8 + $0xa0] ss:$16 sps:$4 sm:$0xff]  }
 0x3d6   : > { %2260 = vmatprep.subr.bf16.mxu0 %v2788_v1 }
 0x3d9   : > { %2261 = vmatpush3.bf16.msra.mxu0 %v2419_v11  ;;  %v2458_v11 = vld [vmem:[#allocation8 + $0xa8] ss:$16 sps:$4 sm:$0xff]  }
 0x3da   : > { %2262 = vmatprep.subr.bf16.mxu0 %v2788_v1 }
 0x3dd   : > { %2263 = vmatpush3.bf16.msra.mxu0 %v2420_v12  ;;  %v2463_v12 = vld [vmem:[#allocation8 + $0xc4] ss:$16 sps:$4 sm:$0xff]  }
 0x3de   : > { %2264 = vmatprep.subr.bf16.mxu0 %v2788_v1 }
 0x3e1   : > { %2265 = vmatpush3.bf16.msra.mxu0 %v2421_v13  ;;  %v2466_v13 = vld [vmem:[#allocation8 + $0xcc] ss:$16 sps:$4 sm:$0xff]  }
 0x3e2   : > { %2266 = vmatprep.subr.bf16.mxu0 %v2788_v1 }
 0x49b   : > { %v865_v14 = vpop.f32.mrb[4].mxu0 }
 0x49c   : > { %v2236_v15 = vpop.f32.mrb[5].mxu0  ;;  %v871_v16 = vsel %vm648_vm3, %v865_v14, -inf }
 0x49d   : > { %872 = vmax.xlane.f32.xlu0 %v871_v16  ;;  %v868_v17 = vpop.f32.mrb[6].mxu0  ;;  %v2423_v15 = vld [vmem:[#allocation7 + $0x30] sm:$0xff]  }
 0x49e   : > { %v3148_v18 = vpop.f32.mrb[8].mxu1  ;;  %v2237_v19 = vpop.f32.mrb[7].mxu0 }
 0x49f   : > { %v2218_v20 = vpop.f32.mrb[9].mxu1 }
 0x4a0   : > { %v705_v21 = vpop.f32.mrb[10].mxu1 }
 0x4a1   : > { %v2219_v22 = vpop.f32.mrb[11].mxu1  ;;  %v2424_v21 = vld [vmem:[#allocation7 + $0x38] sm:$0xff]  }
 0x4a3   : > { %v975_v24 = vpop.f32.mrb[8].mxu0 }
 0x4a4   : > { %v2248_v25 = vpop.f32.mrb[9].mxu0  ;;  %v981_v36 = vsel %vm648_vm3, %v975_v24, -inf }
 0x4a5   : > { %v978_v26 = vpop.f32.mrb[10].mxu0 }
 0x4a6   : > { %v754_v27 = vpop.f32.mrb[12].mxu1  ;;  %v2249_v28 = vpop.f32.mrb[11].mxu0 }
 0x4a7   : > { %v2224_v30 = vpop.f32.mrb[13].mxu1  ;;  %v760_v33 = vsel %vm648_vm3, %v754_v27, -inf }
 0x4a8   : > { %761 = vmax.xlane.f32.xlu1 %v760_v33  ;;  %v757_v34 = vpop.f32.mrb[14].mxu1 }
 0x4a9   : > { %v2225_v35 = vpop.f32.mrb[15].mxu1 }
 0x4ac   : > { %982 = vmax.xlane.f32.xlu1 %v981_v36 }
 0x52a   : > { %v873_v37 = vpop.xlane.xlu0 %872 }
 0x52b   : > { %v874_v38 = vsub.f32 %v865_v14, %v873_v37  ;;  %v2422_v14 = vld [vmem:[#allocation7 + $0x28] sm:$0xff]  }
 0x52c   : > { %2267 = vmatpush3.bf16.msra.mxu0 %v2422_v14  ;;  %v2461_v14 = vld [vmem:[#allocation8 + $0xc0] ss:$16 sps:$4 sm:$0xff]  }
 0x52d   : > { %v875_v39 = vmul.f32 1.442695, %v874_v38  ;;  %2268 = vmatprep.subr.bf16.mxu0 %v2788_v1 }
 0x52f   : > { %2509 = vpow2.f32 %v875_v39 }
 0x530   : > { %2269 = vmatpush3.bf16.msra.mxu0 %v2423_v15  ;;  %v2464_v15 = vld [vmem:[#allocation8 + $0xc8] ss:$16 sps:$4 sm:$0xff]  }
 0x531   : > { %2270 = vmatprep.subr.bf16.mxu0 %v2788_v1 }
 0x534   : > { %2271 = vmatpush3.bf16.msra.mxu0 %v2424_v21  ;;  %v2473_v21 = vld [vmem:[#allocation10 + $0x40] sm:$0xff]  }
 0x535   : > { %v762_v40 = vpop.xlane.xlu1 %761 }
 0x536   : > { %v763_v41 = vsub.f32 %v754_v27, %v762_v40  ;;  %v1077_v40 = vsub.s32 2, %v3099_v29 }
 0x538   : > { %v764_v47 = vmul.f32 1.442695, %v763_v41  ;;  %v1078_v41 = vrot.slane %v3104_v32, %v1077_v40  ;;  %v2477_v40 = vld [vmem:[#allocation10 + $0x48] sm:$0xff]  }
 0x539   : > { %v2510_v42 = vpop.eup %2509  ;;  %v983_v43 = vpop.xlane.xlu1 %982 }
 0x53a   : > { %v984_v45 = vsub.f32 %v975_v24, %v983_v43  ;;  %v877_v46 = vsel %vm648_vm3, %v2510_v42, 0.0 }
 0x53b   : > { %878 = vadd.xlane.f32.xlu0 %v877_v46 }
 0x53c   : > { %v985_v48 = vmul.f32 1.442695, %v984_v45 }
 0x53e   : > { %2511 = vpow2.f32 %v985_v48 }
 0x53f   : > { %2513 = vpow2.f32 %v764_v47 }
 0x548   : > { %v2512_v49 = vpop.eup %2511 }
 0x549   : > { %v987_v51 = vsel %vm648_vm3, %v2512_v49, 0.0  ;;  %v2514_v52 = vpop.eup %2513 }
 0x54a   : > { %988 = vadd.xlane.f32.xlu1 %v987_v51  ;;  %v766_v53 = vsel %vm648_vm3, %v2514_v52, 0.0  ;;  %v2428_v51 = vld [vmem:[#allocation8 + $0x8] ss:$16 sps:$4 sm:$0xff]  }
 0x54e   : > { %767 = vadd.xlane.f32.xlu1 %v766_v53  ;;  %v2433_v53 = vld [vmem:[#allocation8 + $0x24] ss:$16 sps:$4 sm:$0xff]  }
 0x551   : > { %773 = vrot.lane.b32.xlu0 %v3121_v50, %s2790_s28 }
 0x55f   : > { %883 = vrot.lane.b32.xlu1 %v3121_v50, %s2791_s26 }
 0x563   : > { %993 = vrot.lane.b32.xlu1 %v3121_v50, %s2792_s11 }
 0x5c8   : > { %v879_v54 = vpop.xlane.xlu0 %878 }
 0x5cc   : > { %v774_v55 = vpop.permute.xlu0 %773 }
 0x5cd   : > { %v779_v56 = vsel %vm664_vm2, %v774_v55, 0  ;;  %v2434_v55 = vld [vmem:[#allocation8 + $0x28] ss:$16 sps:$4 sm:$0xff]  }
 0x5ce   : > { %2227 = vmatpush3.bf16.msra.mxu1 %v779_v56  ;;  %v2439_v56 = vld [vmem:[#allocation8 + $0x44] ss:$16 sps:$4 sm:$0xff]  }
 0x5cf   : > { %2238 = vmatprep.subr.bf16.mxu1 %v2788_v1 }
 0x5d7   : > { %v989_v57 = vpop.xlane.xlu1 %988 }
 0x5db   : > { %v768_v58 = vpop.xlane.xlu1 %767 }
 0x5dc   : > { %2515 = vrcp.f32 %v768_v58  ;;  %v2437_v58 = vld [vmem:[#allocation8 + $0x40] ss:$16 sps:$4 sm:$0xff]  }
 0x5dd   : > { %2517 = vrcp.f32 %v879_v54  ;;  %v2436_v54 = vld [vmem:[#allocation8 + $0x2c] ss:$16 sps:$4 sm:$0xff]  }
 0x5de   : > { %2519 = vrcp.f32 %v989_v57  ;;  %v2442_v57 = vld [vmem:[#allocation8 + $0x4c] ss:$16 sps:$4 sm:$0xff]  }
 0x5df   : > { %v884_v61 = vpop.permute.xlu1 %883 }
 0x5e0   : > { %v889_v2 = vsel %vm664_vm2, %v884_v61, 0 }
 0x5e3   : > { %v994_v3 = vpop.permute.xlu1 %993 }
 0x5e4   : > { %v999_v6 = vsel %vm664_vm2, %v994_v3, 0  ;;  %v2446_v3 = vld [vmem:[#allocation8 + $0x68] ss:$16 sps:$4 sm:$0xff]  }
 0x5e6   : > { %v2516_v59 = vpop.eup %2515 }
 0x5e7   : > { %v770_v60 = vmul.f32 %v2516_v59, %v2514_v52  ;;  %v2518_v63 = vpop.eup %2517  ;;  %v2430_v52 = vld [vmem:[#allocation8 + $0xc] ss:$16 sps:$4 sm:$0xff]  }
 0x5e8   : > { %v881_v50 = vmul.f32 %v2518_v63, %v2510_v42  ;;  %v2520_v5 = vpop.eup %2519  ;;  %1440 = vmatprep.subr.bf16.mxu0 %v2430_v52  ;;  %v2445_v63 = vld [vmem:[#allocation8 + $0x64] ss:$16 sps:$4 sm:$0xff]   ;;  %v2488_v52 = vld [vmem:[#allocation10 + $0x98] sm:$0xff]  }
 0x5e9   : > { %v771_v62 = vpack.c.bf16 %v770_v60, %v770_v60  ;;  %v991_v7 = vmul.f32 %v2520_v5, %v2512_v49  ;;  %v2427_v49 = vld [vmem:[#allocation8 + $0x4] ss:$16 sps:$4 sm:$0xff]   ;;  %v2454_v5 = vld [vmem:[#allocation8 + $0x8c] ss:$16 sps:$4 sm:$0xff]  }
 0x5ea   : > { %v882_v4 = vpack.c.bf16 %v881_v50, %v881_v50  ;;  %v2443_v50 = vld [vmem:[#allocation8 + $0x60] ss:$16 sps:$4 sm:$0xff]  }
 0x5eb   : > { %2229 = vmatmul.mubr.msk.bf16.vlgmr.msra.gmra.mrb[16].mxu1 %vm648_vm3, %v771_v62  ;;  %v992_v8 = vpack.c.bf16 %v991_v7, %v991_v7  ;;  %v2452_v7 = vld [vmem:[#allocation8 + $0x88] ss:$16 sps:$4 sm:$0xff]  }
 0x5ec   : > { %2239 = vmatpush3.bf16.msra.mxu1 %v889_v2  ;;  %2240 = vmatprep.mubr.msk.bf16.mxu1 %vm2789_vm0, %v2788_v1  ;;  %v2448_v2 = vld [vmem:[#allocation8 + $0x6c] ss:$16 sps:$4 sm:$0xff]  }
 0x5ed   : > { %2250 = vmatprep.subr.bf16.mxu1 %v2788_v1 }
 0x5f3   : > { %2241 = vmatmul.mubr.msk.bf16.vlgmr.msra.gmra.mrb[20].mxu1 %vm648_vm3, %v882_v4  ;;  %v2451_v4 = vld [vmem:[#allocation8 + $0x84] ss:$16 sps:$4 sm:$0xff]  }
 0x5f4   : > { %2251 = vmatpush3.bf16.msra.mxu1 %v999_v6  ;;  %2252 = vmatprep.mubr.msk.bf16.mxu1 %vm2789_vm0, %v2788_v1  ;;  %v2449_v6 = vld [vmem:[#allocation8 + $0x80] ss:$16 sps:$4 sm:$0xff]  }
 0x5f5   : > { %1399 = vmatprep.subr.bf16.mxu1 %v2427_v49  ;;  %v2486_v49 = vld [vmem:[#allocation10 + $0xd8] sm:$0xff]  }
 0x5fb   : > { %2253 = vmatmul.mubr.msk.bf16.vlgmr.msra.gmra.mrb[24].mxu1 %vm648_vm3, %v992_v8  ;;  %v2457_v8 = vld [vmem:[#allocation8 + $0xa4] ss:$16 sps:$4 sm:$0xff]  }
 0x5fc   : > { %1431 = vmatprep.mubr.bf16.mxu1 %v2787_v0 }
 0x6be   : > { %v815_v16 = vpop.f32.mrb[16].mxu1 }
 0x6bf   : > { %1042 = vrot.lane.b32.xlu0 %v815_v16, %s2792_s11  ;;  %v2230_v17 = vpop.f32.mrb[17].mxu1  ;;  %v2469_v16 = vld [vmem:[#allocation8 + $0xe4] ss:$16 sps:$4 sm:$0xff]  }
 0x6c0   : > { %v818_v19 = vpop.f32.mrb[18].mxu1  ;;  %v2472_v17 = vld [vmem:[#allocation8 + $0xec] ss:$16 sps:$4 sm:$0xff]  }
 0x6c1   : > { %v2231_v20 = vpop.f32.mrb[19].mxu1  ;;  %v2467_v19 = vld [vmem:[#allocation8 + $0xe0] ss:$16 sps:$4 sm:$0xff]  }
 0x6c2   : > { %v2470_v20 = vld [vmem:[#allocation8 + $0xe8] ss:$16 sps:$4 sm:$0xff]  }
 0x6c6   : > { %v925_v22 = vpop.f32.mrb[20].mxu1 }
 0x6c7   : > { %1046 = vrot.lane.b32.xlu1 %v925_v22, %s2791_s26  ;;  %v2242_v24 = vpop.f32.mrb[21].mxu1  ;;  %v2474_v22 = vld [vmem:[#allocation10 + $0xc0] sm:$0xff]  }
 0x6c8   : > { %v928_v25 = vpop.f32.mrb[22].mxu1 }
 0x6c9   : > { %v2243_v26 = vpop.f32.mrb[23].mxu1 }
 0x6ce   : > { %v1035_v27 = vpop.f32.mrb[24].mxu1 }
 0x6cf   : > { %1050 = vrot.lane.b32.xlu0 %v1035_v27, %s2790_s28  ;;  %v2254_v28 = vpop.f32.mrb[25].mxu1  ;;  %v1182_v27 = vsub.s32 3, %v3099_v29 }
 0x6d0   : > { %v1038_v30 = vpop.f32.mrb[26].mxu1  ;;  %v1187_v28 = vsub.s32 4, %v3099_v29 }
 0x6d1   : > { %v2255_v33 = vpop.f32.mrb[27].mxu1  ;;  %v1183_v30 = vrot.slane %v3104_v32, %v1182_v27 }
 0x731   : > { %v1043_v34 = vpop.permute.xlu0 %1042 }
 0x732   : > { %v1053_v1 = vsel %vm601_vm1, %v3148_v18, %v1043_v34  ;;  %v2425_v18 = vld [vmem:[#allocation8] ss:$16 sps:$4 sm:$0xff]  }
 0x733   : > { %1400 = vmatpush1.bf16.msra.mxu1 %v2425_v18  ;;  %v2485_v18 = vld [vmem:[#allocation10 + $0x58] sm:$0xff]  }
 0x734   : > { %1401 = vmatprep.subr.bf16.mxu1 %v2433_v53  ;;  %v2489_v53 = vld [vmem:[#allocation10 + $0x60] sm:$0xff]  }
 0x739   : > { %v1047_v35 = vpop.permute.xlu1 %1046 }
 0x73a   : > { %v1055_v36 = vsel %vm1054_vm4, %v1053_v1, %v1047_v35  ;;  %v1188_v35 = vrot.slane %v3104_v32, %v1187_v28 }
 0x741   : > { %v1051_v37 = vpop.permute.xlu0 %1050 }
 0x742   : > { %v1057_v38 = vsel %vm1056_vm5, %v1055_v36, %v1051_v37  ;;  %v2475_v37 = vld [vmem:[#allocation10] sm:$0xff]  }
 0x743   : > { %v1058_v39 = vpack.c.bf16 %v1057_v38, %v1057_v38  ;;  %v2476_v38 = vld [vmem:[#allocation10 + $0x80] sm:$0xff]  }
 0x745   : > { %2273 = vmatmul.mubr.bf16.vlgmr.msra.gmra.mrb[12].mxu0 %v1058_v39 }
 0x746   : > { %1472 = vmatprep.mubr.bf16.mxu0 %v2787_v0  ;;  %v2431_v0 = vld [vmem:[#allocation8 + $0x20] ss:$16 sps:$4 sm:$0xff]   ;;  %1441 = vmatpush1.bf16.msra.mxu0 %v2428_v51  ;;  %v2487_v51 = vld [vmem:[#allocation10 + $0x18] sm:$0xff]  }
 0x747   : > { %1442 = vmatprep.subr.bf16.mxu0 %v2436_v54  ;;  %1402 = vmatpush1.bf16.msra.mxu1 %v2431_v0  ;;  %v2490_v54 = vld [vmem:[#allocation10 + $0xe0] sm:$0xff]  }
 0x748   : > { %1403 = vmatprep.subr.bf16.mxu1 %v2439_v56  ;;  %v2491_v0 = vld [vmem:[#allocation10 + $0x20] sm:$0xff]   ;;  %v2493_v56 = vld [vmem:[#allocation10 + $0x68] sm:$0xff]  }
 0x74a   : > { %1443 = vmatpush1.bf16.msra.mxu0 %v2434_v55  ;;  %v2492_v55 = vld [vmem:[#allocation10 + $0xa0] sm:$0xff]  }
 0x74b   : > { %1444 = vmatprep.subr.bf16.mxu0 %v2442_v57  ;;  %1404 = vmatpush1.bf16.msra.mxu1 %v2437_v58  ;;  %v2494_v57 = vld [vmem:[#allocation10 + $0xe8] sm:$0xff]  }
 0x74c   : > { %1405 = vmatprep.subr.bf16.mxu1 %v2445_v63  ;;  %v2495_v58 = vld [vmem:[#allocation10 + $0x28] sm:$0xff]   ;;  %v2501_v63 = vld [vmem:[#allocation10 + $0x78] sm:$0xff]  }
 0x74f   : > { %1406 = vmatpush1.bf16.msra.mxu1 %v2443_v50  ;;  %v2503_v50 = vld [vmem:[#allocation10 + $0x38] sm:$0xff]  }
 0x750   : > { %1407 = vmatprep.subr.bf16.mxu1 %v2451_v4  ;;  %v1225_v4 = vsub.s32 1, %v3099_v29 }
 0x753   : > { %1408 = vmatpush1.bf16.msra.mxu1 %v2449_v6  ;;  %v1226_v6 = vrot.slane %v3104_v32, %v1225_v4 }
 0x754   : > { %1409 = vmatprep.subr.bf16.mxu1 %v2457_v8  ;;  %v1230_v8 = vrot.slane %v3102_v31, %v1225_v4 }
 0x757   : > { %1410 = vmatpush1.bf16.msra.mxu1 %v2455_v10 }
 0x758   : > { %1411 = vmatprep.subr.bf16.mxu1 %v2463_v12 }
 0x75b   : > { %1412 = vmatpush1.bf16.msra.mxu1 %v2461_v14 }
 0x75c   : > { %1413 = vmatprep.subr.bf16.mxu1 %v2469_v16 }
 0x75f   : > { %1414 = vmatpush1.bf16.msra.mxu1 %v2467_v19 }
 0x760   : > { %2144 = vmatprep.subr.bf16.mxu1 %v2473_v21 }
 0x818   : > { %v1161_v42 = vpop.f32.mrb[12].mxu0 }
 0x819   : > { %v1162_v43 = vadd.f32 %v1161_v42, %v1078_v41  ;;  %v2274_v45 = vpop.f32.mrb[13].mxu0  ;;  %v2478_v41 = vld [vmem:[#allocation10 + $0xc8] sm:$0xff]  }
 0x81a   : > { %v1164_v46 = vpop.f32.mrb[14].mxu0  ;;  %v2479_v42 = vld [vmem:[#allocation10 + $0x8] sm:$0xff]   ;;  %v2481_v45 = vld [vmem:[#allocation10 + $0x50] sm:$0xff]  }
 0x81b   : > { %v2275_v47 = vpop.f32.mrb[15].mxu0  ;;  %v1167_v48 = vadd.f32 %v1162_v43, %v3083_v23  ;;  %v2440_v23 = vld [vmem:[#allocation8 + $0x48] ss:$16 sps:$4 sm:$0xff]   ;;  %v2482_v46 = vld [vmem:[#allocation10 + $0xd0] sm:$0xff]  }
 0x81c   : > { %1445 = vmatpush1.bf16.msra.mxu0 %v2440_v23  ;;  %v2480_v43 = vld [vmem:[#allocation10 + $0x88] sm:$0xff]   ;;  %v2483_v47 = vld [vmem:[#allocation10 + $0x10] sm:$0xff]  }
 0x81d   : > { %1168 = vadd.xlane.f32.xlu1 %v1167_v48  ;;  %1446 = vmatprep.subr.bf16.mxu0 %v2448_v2  ;;  %v2496_v23 = vld [vmem:[#allocation10 + $0xa8] sm:$0xff]   ;;  %v2502_v2 = vld [vmem:[#allocation10 + $0xf8] sm:$0xff]  }
 0x820   : > { %1447 = vmatpush1.bf16.msra.mxu0 %v2446_v3  ;;  %v2504_v3 = vld [vmem:[#allocation10 + $0xb8] sm:$0xff]  }
 0x821   : > { %1448 = vmatprep.subr.bf16.mxu0 %v2454_v5  ;;  %v344_v5 = vld [vmem:[#allocation11 + $0x18] sm:$0xff] }
 0x824   : > { %1449 = vmatpush1.bf16.msra.mxu0 %v2452_v7  ;;  %v1234_v7 = vrot.slane %v3118_v44, %v1225_v4 }
 0x825   : > { %1450 = vmatprep.subr.bf16.mxu0 %v2460_v9  ;;  %v1238_v9 = vrot.slane %v344_v5, %v1225_v4 }
 0x828   : > { %1451 = vmatpush1.bf16.msra.mxu0 %v2458_v11 }
 0x829   : > { %1452 = vmatprep.subr.bf16.mxu0 %v2466_v13 }
 0x82c   : > { %1453 = vmatpush1.bf16.msra.mxu0 %v2464_v15 }
 0x82d   : > { %1454 = vmatprep.subr.bf16.mxu0 %v2472_v17 }
 0x830   : > { %1455 = vmatpush1.bf16.msra.mxu0 %v2470_v20 }
 0x831   : > { %2166 = vmatprep.subr.bf16.mxu0 %v2474_v22 }
 0x8aa   : > { %v1169_v59 = vpop.xlane.xlu1 %1168 }
 0x8ab   : > { %v1171_v60 = vmul.f32 0.0078125, %v1169_v59  ;;  %v2497_v59 = vld [vmem:[#allocation10 + $0x70] sm:$0xff]  }
 0x8ad   : > { %v1172_v61 = vsub.f32 %v1167_v48, %v1171_v60  ;;  %v2484_v48 = vld [vmem:[#allocation10 + $0x90] sm:$0xff]  }
 0x8ae   : > { %v2498_v60 = vld [vmem:[#allocation10 + $0xf0] sm:$0xff]  }
 0x8af   : > { %v1173_v62 = vmul.f32 %v1172_v61, %v1172_v61 }
 0x8b1   : > { %1174 = vadd.xlane.f32.xlu0 %v1173_v62  ;;  %v2500_v62 = vld [vmem:[#allocation10 + $0xb0] sm:$0xff]  }
 0x93e   : > { %v1175_v24 = vpop.xlane.xlu0 %1174 }
 0x93f   : > { %v1176_v25 = vmul.f32 0.0078125, %v1175_v24 }
 0x941   : > { %v1177_v26 = vadd.f32 1e-05, %v1176_v25 }
 0x943   : > { %2521 = vrsqrt.f32 %v1177_v26 }
 0x94d   : > { %v2522_v33 = vpop.eup %2521 }
 0x94e   : > { %v1179_v34 = vmul.f32 %v2522_v33, %v1172_v61  ;;  %v2499_v61 = vld [vmem:[#allocation10 + $0x30] sm:$0xff]   ;;  %v1555_v33 = vsub.s32 5, %v3099_v29 }
 0x950   : > { %v1184_v1 = vmul.f32 %v1183_v30, %v1179_v34 }
 0x952   : > { %v3194_v36 = vadd.f32 %v1188_v35, %v1184_v1  ;;  %v1556_v1 = vrot.slane %v3104_v32, %v1555_v33 }
 0x954   : > { %v1190_v39 = vpack.c.bf16 %v3194_v36, %v3194_v36 }
 0x956   : > { %1432 = vmatmul.mubr.bf16.vlgmr.msra.gmra.mrb[28].mxu1 %v1190_v39  ;;  %1473 = vmatmul.mubr.bf16.vlgmr.msra.gmra.mrb[16].mxu0 %v1190_v39 }
 0x957   : > { %2145 = vmatpush3.bf16.msra.mxu1 %v2475_v37  ;;  %2167 = vmatpush3.bf16.msra.mxu0 %v2476_v38 }
 0x958   : > { %2146 = vmatprep.subr.bf16.mxu1 %v2477_v40  ;;  %2168 = vmatprep.subr.bf16.mxu0 %v2478_v41 }
 0x95b   : > { %2147 = vmatpush3.bf16.msra.mxu1 %v2479_v42  ;;  %2169 = vmatpush3.bf16.msra.mxu0 %v2480_v43 }
 0x95c   : > { %2148 = vmatprep.subr.bf16.mxu1 %v2481_v45  ;;  %2170 = vmatprep.subr.bf16.mxu0 %v2482_v46 }
 0x95f   : > { %2149 = vmatpush3.bf16.msra.mxu1 %v2483_v47  ;;  %2171 = vmatpush3.bf16.msra.mxu0 %v2484_v48 }
 0x960   : > { %2150 = vmatprep.subr.bf16.mxu1 %v2485_v18  ;;  %2172 = vmatprep.subr.bf16.mxu0 %v2486_v49 }
 0x963   : > { %2151 = vmatpush3.bf16.msra.mxu1 %v2487_v51  ;;  %2173 = vmatpush3.bf16.msra.mxu0 %v2488_v52 }
 0x964   : > { %2152 = vmatprep.subr.bf16.mxu1 %v2489_v53  ;;  %2174 = vmatprep.subr.bf16.mxu0 %v2490_v54 }
 0x967   : > { %2153 = vmatpush3.bf16.msra.mxu1 %v2491_v0  ;;  %2175 = vmatpush3.bf16.msra.mxu0 %v2492_v55  ;;  %v1843_v55 = vsub.s32 6, %v3099_v29 }
 0x968   : > { %2154 = vmatprep.subr.bf16.mxu1 %v2493_v56  ;;  %2176 = vmatprep.subr.bf16.mxu0 %v2494_v57  ;;  %v1848_v56 = vsub.s32 7, %v3099_v29 }
 0x96b   : > { %2155 = vmatpush3.bf16.msra.mxu1 %v2495_v58  ;;  %2177 = vmatpush3.bf16.msra.mxu0 %v2496_v23  ;;  %v1849_v23 = vrot.slane %v3104_v32, %v1848_v56 }
 0x96c   : > { %2156 = vmatprep.subr.bf16.mxu1 %v2497_v59  ;;  %2178 = vmatprep.subr.bf16.mxu0 %v2498_v60 }
 0x96f   : > { %2157 = vmatpush3.bf16.msra.mxu1 %v2499_v61  ;;  %2179 = vmatpush3.bf16.msra.mxu0 %v2500_v62 }
 0x970   : > { %2158 = vmatprep.subr.bf16.mxu1 %v2501_v63  ;;  %2180 = vmatprep.subr.bf16.mxu0 %v2502_v2 }
 0x973   : > { %2159 = vmatpush3.bf16.msra.mxu1 %v2503_v50  ;;  %2181 = vmatpush3.bf16.msra.mxu0 %v2504_v3 }
 0xa29   : > { %v1433_v10 = vpop.f32.mrb[28].mxu1  ;;  %v1474_v11 = vpop.f32.mrb[16].mxu0 }
 0xa2a   : > { %v1434_v12 = vadd.f32 %v1433_v10, %v1226_v6  ;;  %v1475_v13 = vadd.f32 %v1474_v11, %v1234_v7  ;;  %v1435_v14 = vpop.f32.mrb[29].mxu1  ;;  %v1476_v15 = vpop.f32.mrb[17].mxu0 }
 0xa2b   : > { %v1436_v16 = vadd.f32 %v1435_v14, %v1230_v8  ;;  %v1477_v17 = vadd.f32 %v1476_v15, %v1238_v9  ;;  %v1437_v19 = vpop.f32.mrb[30].mxu1  ;;  %v1478_v20 = vpop.f32.mrb[18].mxu0 }
 0xa2c   : > { %v1481_v21 = vmax.f32 %v1434_v12, 0.0  ;;  %v1483_v22 = vmax.f32 %v1475_v13, 0.0  ;;  %v1438_v24 = vpop.f32.mrb[31].mxu1  ;;  %v1479_v25 = vpop.f32.mrb[19].mxu0 }
 0xa2d   : > { %v1482_v26 = vmax.f32 %v1436_v16, 0.0  ;;  %v1484_v27 = vmax.f32 %v1477_v17, 0.0 }
 0xa2e   : > { %v1485_v31 = vpack.c.bf16 %v1481_v21, %v1481_v21  ;;  %v1487_v30 = vpack.c.bf16 %v1483_v22, %v1483_v22 }
 0xa2f   : > { %v1486_v44 = vpack.c.bf16 %v1482_v26, %v1482_v26  ;;  %v1488_v28 = vpack.c.bf16 %v1484_v27, %v1484_v27 }
 0xa31   : > { %1781 = vmatprep.mubr.bf16.mxu1 %v1486_v44  ;;  %1821 = vmatprep.mubr.bf16.mxu0 %v1488_v28 }
 0xa32   : > { %1782 = vmatmul.mubr.bf16.vlgmr.msra.gmra.mrb[32].mxu1 %v1485_v31  ;;  %1822 = vmatmul.mubr.bf16.vlgmr.msra.gmra.mrb[20].mxu0 %v1487_v30 }
 0xb05   : > { %v2160_v34 = vpop.f32.mrb[32].mxu1  ;;  %v2182_v35 = vpop.f32.mrb[20].mxu0 }
 0xb06   : > { %v2161_v37 = vpop.f32.mrb[33].mxu1  ;;  %v2183_v38 = vpop.f32.mrb[21].mxu0 }
 0xb07   : > { %v2162_v39 = vadd.f32 %v2161_v37, %v2160_v34  ;;  %v2184_v40 = vadd.f32 %v2183_v38, %v2182_v35  ;;  %v2163_v41 = vpop.f32.mrb[34].mxu1  ;;  %v2185_v42 = vpop.f32.mrb[22].mxu0 }
 0xb08   : > { %v2164_v43 = vpop.f32.mrb[35].mxu1  ;;  %v2186_v45 = vpop.f32.mrb[23].mxu0 }
 0xb09   : > { %v1784_v46 = vadd.f32 %v2162_v39, %v1556_v1 }
 0xb0b   : > { %v1824_v47 = vadd.f32 %v2184_v40, %v1784_v46 }
 0xb0d   : > { %v1829_v48 = vadd.f32 %v1824_v47, %v3194_v36  ;;  %v1844_v36 = vrot.slane %v3104_v32, %v1843_v55 }
 0xb0f   : > { %1830 = vadd.xlane.f32.xlu0 %v1829_v48 }
 0xb9c   : > { %v1831_v18 = vpop.xlane.xlu0 %1830 }
 0xb9d   : > { %v1832_v49 = vmul.f32 0.0078125, %v1831_v18 }
 0xb9f   : > { %v1833_v51 = vsub.f32 %v1829_v48, %v1832_v49 }
 0xba1   : > { %v1834_v52 = vmul.f32 %v1833_v51, %v1833_v51 }
 0xba3   : > { %1835 = vadd.xlane.f32.xlu1 %v1834_v52 }
 0xc30   : > { %v1836_v53 = vpop.xlane.xlu1 %1835 }
 0xc31   : > { %v1837_v54 = vmul.f32 0.0078125, %v1836_v53 }
 0xc33   : > { %v1838_v0 = vadd.f32 1e-05, %v1837_v54 }
 0xc35   : > { %2523 = vrsqrt.f32 %v1838_v0 }
 0xc3f   : > { %v2524_v57 = vpop.eup %2523 }
 0xc40   : > { %v1840_v58 = vmul.f32 %v2524_v57, %v1833_v51 }
 0xc42   : > { %v1845_v59 = vmul.f32 %v1844_v36, %v1840_v58 }
 0xc44   : > { %v1850_v60 = vadd.f32 %v1849_v23, %v1845_v59 }
 0xc46   : > { %1851 = vst [vmem:[%s337_s30] sm:$0xff] %v1850_v60 }
 0xc47   : > { %2708 = shalt.err (!%p2705_p3)
}
 0xc48   : > { %s2709_s15 = scalar_lea.hbm %s3215_s10, 128  ;;  %s2713_s26 = scalar_lea.hbm %s3265_s6, 256 }
 0xc49   : > { %p2710_p6 = scmp.ne.s32.totalorder %s3215_s10, %s2709_s15  ;;  %p2714_p8 = scmp.lt.u32.totalorder %s3215_s10, %s3265_s6 }
 0xc4a   : > { %p2715_p0 = scmp.lt.u32.totalorder %s2713_s26, %s2709_s15  ;;  %p2717_p2 = scmp.lt.u32.totalorder %s2709_s15, %s3215_s10 }
 0xc4b   : > { %p2711_p9 = pnand %p2710_p6, %p3284_p7 }
 0xc4c   : > { %p2716_p5 = por %p2715_p0, %p2714_p8 }
 0xc4d   : > { %p2712_p4 = pneg %p2711_p9 }
 0xc4e   : > { %p2718_p10 = por %p2717_p2, %p2716_p5 }
 0xc50   : > { %p2719_p1 = pnand %p2718_p10, %p2712_p4 }
 0xc52   : > { %2722 = shalt.err (!%p2719_p1)
}
 0xc53   : > { %2298 = dma.vmem_to_hbm [thread:$0]  (%p3284_p7), %s3217_s16, 128, %s3215_s10, %s1853_s12  }
 0xc54 PF: > { %s1878_s30 = sand.u32 1, %s2761_s21   ;;  %p3285_p11 = scmp.ne.s32.totalorder %s3275_s18, 0 }
 0xc55   : > { %p3286_p12 = scmp.ge.s32.totalorder %s2773_s24, 2  ;;  %s1879_s8 = scalar_lea.sflag [#allocation4], %s1878_s30 }
 0xc57   : > { %p2321_p13 = pnand %p3286_p12, %p3285_p11 }
 0xc59   : > { %2756 = dma.done.wait (!%p2321_p13), %s1879_s8, 128  }
 0xc5a   : > { %2758 = vsyncadd (!%p2321_p13), %s1879_s8, 4294967168  ;;  %p22_p3 = scmp.ge.s32.totalorder %s2983_s7, 4   ;;  %s3287_s21 = smov %s2765_s22 }
 0xc5b   : > { %s3288_s22 = smov %s2769_s23  ;;  %s3289_s23 = smov %s2995_s9 }
 0xc5c   : > { %s3290_s24 = smov %s2983_s7  ;;  %24 = sbr.rel (!%p22_p3) target bundleno = 8 (0x8), region = 109 }
 0xc63   :  { %1884 = vsyncpa [#allocation3], 1 }
 0xc64   :  { %1886 = vsyncpa [#allocation3 + $0x1], 1 }
 0xc65   :  { %1887 = vsyncpa [#allocation6], 1 }
 0xc66   :  { %1888 = vsyncpa [#allocation9], 1 }
 0xc67   :  { %1889 = vsyncpa [#allocation12], 1 }
 0xc68   :  { %1890 = vsyncpa [#allocation4], 1 }
 0xc69   :  { %1892 = vsyncpa [#allocation4 + $0x1], 1 }

</bundles_post_ra>
